<compile_context>
chip_gen: v5e
topology: v5e:2x2
jax: 0.10.0
libtpu: 0.0.40
codegen_flags: <defaults>
</compile_context>

<pallas_src>
import functools

import numpy as np
import jax
import jax.numpy as jnp
from jax import lax
from jax.experimental import pallas as pl
from jax.experimental.pallas import tpu as pltpu


def _roi_pool_kernel(roi_ref, feat_ref, out_ref, *, pool_h, pool_w, height, width,
                     roi_axis):
    # roi_ref : SMEM (5*N,) int32  -> [batch, x1, y1, x2, y2] per ROI (flattened)
    # feat_ref: VMEM (H, W, C_TILE) slab of this ROI's batch element (NHWC)
    # out_ref : VMEM (pool_h*pool_w, C_TILE) output block for this ROI / C tile
    n = pl.program_id(roi_axis)
    base = 5 * n
    sw = roi_ref[base + 1]
    sh = roi_ref[base + 2]
    ew = roi_ref[base + 3]
    eh = roi_ref[base + 4]

    # Malformed ROIs are forced to be 1x1 (matches the CUDA kernel).
    roi_w = jnp.maximum(ew - sw + 1, 1)
    roi_h = jnp.maximum(eh - sh + 1, 1)
    bin_h = roi_h.astype(jnp.float32) / jnp.float32(pool_h)
    bin_w = roi_w.astype(jnp.float32) / jnp.float32(pool_w)

    # TODO(synk): assumes floating-point features; argmax_data (only needed for
    # the backward pass) is not emitted.
    fill = jnp.asarray(jnp.finfo(feat_ref.dtype).min, dtype=feat_ref.dtype)

    # Plain sublane iotas -- no div/mod, computed once per grid step.
    h_ids = lax.broadcasted_iota(jnp.int32, (height, 1), 0)      # (H, 1)
    w_ids = lax.broadcasted_iota(jnp.int32, (width, 1), 0)       # (W, 1)
    phw = pool_h * pool_w
    row_ids = lax.broadcasted_iota(jnp.int32, (phw, 1), 0)       # (phw, 1)

    def window(p, bin_sz, start, limit):
        lo = jnp.minimum(jnp.maximum(
            jnp.floor(jnp.float32(p) * bin_sz).astype(jnp.int32) + start, 0), limit)
        hi = jnp.minimum(jnp.maximum(
            jnp.ceil(jnp.float32(p + 1) * bin_sz).astype(jnp.int32) + start, 0), limit)
        return lo, hi

    # Hoisted row (ph) windows / masks, reused for every output column pw.
    h_windows = [window(ph, bin_h, sh, height) for ph in range(pool_h)]
    h_masks = [(h_ids >= hs) & (h_ids < he) for hs, he in h_windows]   # (H, 1)

    result = jnp.zeros(out_ref.shape, out_ref.dtype)
    for pw in range(pool_w):
        ws, we = window(pw, bin_w, sw, width)
        wmask = (w_ids >= ws) & (w_ids < we)                      # (W, 1)
        # Stage 1: masked max over the w-window -> (H, C_TILE).  Single pass over
        # the slab; W is the sublane axis so the reduce is a sublane reduction.
        vals = jnp.where(wmask, feat_ref[...], fill)              # (H, W, C_TILE)
        partial = jnp.max(vals, axis=1)                           # (H, C_TILE)
        w_empty = we <= ws
        for ph in range(pool_h):
            hs, he = h_windows[ph]
            # Stage 2: tiny masked max over the h-window on the partial.
            m = jnp.max(jnp.where(h_masks[ph], partial, fill),
                        axis=0, keepdims=True)                    # (1, C_TILE)
            empty = jnp.logical_or(w_empty, he <= hs)
            m = jnp.where(empty, jnp.zeros_like(m), m)            # empty bin -> 0
            # Row placement via a cheap select keeps the final write as ONE
            # unmasked lane-dense (phw, C_TILE) store.
            result = jnp.where(row_ids == (ph * pool_w + pw), m, result)
    out_ref[...] = result


@functools.partial(jax.jit, static_argnums=(2, 3, 4))
def roi_pool(features, rois, pool_height, pool_width, spatial_scale):
    B, C, H, W = features.shape
    N = rois.shape[0]
    c_tile = 128

    # Glue: NCHW -> NHWC so the 128-lane axis carries channels.
    # TODO(synk): if the producer can emit NHWC directly this transpose (an extra
    # full HBM read+write of the features) disappears.
    feats_cl = jnp.transpose(features, (0, 2, 3, 1))
    # Pad channels to a multiple of 128 so every load / max / store is lane-dense.
    pad_c = (-C) % c_tile
    if pad_c:
        feats_cl = jnp.pad(feats_cl, ((0, 0), (0, 0), (0, 0), (0, pad_c)))
    Cp = C + pad_c
    num_c_tiles = Cp // c_tile

    # ROI table -> feature-map coords (CUDA round()); clamp the batch index so a
    # malformed ROI can never trigger an OOB DMA.  Sort ROIs by batch index so
    # consecutive grid steps share the same feature block (Pallas skips the DMA
    # when the block index is unchanged).
    batch_idx = jnp.clip(rois[:, 0].astype(jnp.int32), 0, B - 1)
    coords = jnp.floor(rois[:, 2:6].astype(jnp.float32) * jnp.float32(spatial_scale)
                       + jnp.float32(0.5)).astype(jnp.int32)      # x1, y1, x2, y2
    order = jnp.argsort(batch_idx)
    roi_tbl = jnp.concatenate([batch_idx[:, None], coords], axis=1)[order]
    roi_flat = roi_tbl.reshape(-1)

    phw = pool_height * pool_width

    if num_c_tiles == 1:
        # Single channel tile: put the ROI axis first so it can shard across
        # v7x's two TensorCores.
        grid = (N,)
        roi_axis = 0
        feat_spec = pl.BlockSpec((None, H, W, c_tile),
                                 lambda n, roi: (roi[5 * n], 0, 0, 0))
        out_spec = pl.BlockSpec((None, phw, c_tile), lambda n, roi: (n, 0, 0))
        dims = ("parallel",)
    else:
        # ROIs innermost so each channel tile streams the features ~once.
        grid = (num_c_tiles, N)
        roi_axis = 1
        feat_spec = pl.BlockSpec((None, H, W, c_tile),
                                 lambda c, n, roi: (roi[5 * n], 0, 0, c))
        out_spec = pl.BlockSpec((None, phw, c_tile), lambda c, n, roi: (n, 0, c))
        dims = ("parallel", "parallel")

    kernel = functools.partial(_roi_pool_kernel, pool_h=pool_height,
                               pool_w=pool_width, height=H, width=W,
                               roi_axis=roi_axis)

    # VMEM budget: per-batch feature block + output block (double-buffered) plus
    # headroom for the masked-slab temporary; never below the 32 MiB default.
    itemsize = jnp.dtype(features.dtype).itemsize
    block_bytes = (H * W * c_tile + phw * c_tile) * itemsize
    vmem_limit = int(min(64 << 20, max(32 << 20, 6 * block_bytes)))

    out_cl = pl.pallas_call(
        kernel,
        out_shape=jax.ShapeDtypeStruct((N, phw, Cp), features.dtype),
        grid_spec=pltpu.PrefetchScalarGridSpec(
            num_scalar_prefetch=1,
            grid=grid,
            in_specs=[feat_spec],
            out_specs=out_spec,
        ),
        compiler_params=pltpu.CompilerParams(
            dimension_semantics=dims,
            vmem_limit_bytes=vmem_limit),
    )(roi_flat, feats_cl)

    # Undo the ROI sort, drop channel padding, back to (N, C, pool_h, pool_w).
    inv_order = jnp.argsort(order)
    out_cl = out_cl[inv_order][:, :, :C]
    out = out_cl.reshape(N, pool_height, pool_width, C)
    return jnp.transpose(out, (0, 3, 1, 2))


class RoIPool:
    """Mirror of the PyTorch RoIPool module's forward pass."""

    def __init__(self, pool_height, pool_width, spatial_scale):
        self.pool_height = int(pool_height)
        self.pool_width = int(pool_width)
        self.spatial_scale = float(spatial_scale)

    def __call__(self, features, rois):
        return roi_pool(features, rois, self.pool_height, self.pool_width,
                        self.spatial_scale)


def roi_pool_reference(features, rois, pool_h, pool_w, spatial_scale):
    """Pure numpy reference with the same arithmetic as the CUDA kernel."""
    features = np.asarray(features)
    rois = np.asarray(rois)
    B, C, H, W = features.shape
    N = rois.shape[0]
    out = np.zeros((N, C, pool_h, pool_w), dtype=features.dtype)
    for n in range(N):
        b = int(rois[n, 0])
        sw = int(np.floor(np.float32(rois[n, 2]) * np.float32(spatial_scale) + np.float32(0.5)))
        sh = int(np.floor(np.float32(rois[n, 3]) * np.float32(spatial_scale) + np.float32(0.5)))
        ew = int(np.floor(np.float32(rois[n, 4]) * np.float32(spatial_scale) + np.float32(0.5)))
        eh = int(np.floor(np.float32(rois[n, 5]) * np.float32(spatial_scale) + np.float32(0.5)))
        roi_w = max(ew - sw + 1, 1)
        roi_h = max(eh - sh + 1, 1)
        bin_h = np.float32(roi_h) / np.float32(pool_h)
        bin_w = np.float32(roi_w) / np.float32(pool_w)
        for ph in range(pool_h):
            hstart = min(max(int(np.floor(np.float32(ph) * bin_h)) + sh, 0), H)
            hend = min(max(int(np.ceil(np.float32(ph + 1) * bin_h)) + sh, 0), H)
            for pw in range(pool_w):
                wstart = min(max(int(np.floor(np.float32(pw) * bin_w)) + sw, 0), W)
                wend = min(max(int(np.ceil(np.float32(pw + 1) * bin_w)) + sw, 0), W)
                if hend <= hstart or wend <= wstart:
                    out[n, :, ph, pw] = 0.0
                else:
                    out[n, :, ph, pw] = features[b, :, hstart:hend, wstart:wend].max(axis=(1, 2))
    return out


if __name__ == "__main__":
    B, C, H, W = 2, 4, 16, 16
    pool_h, pool_w = 7, 7
    spatial_scale = 1.0 / 16.0  # feature map is image / 16

    key = jax.random.PRNGKey(0)
    k1, k2 = jax.random.split(key)
    features = jax.random.normal(k1, (B, C, H, W), dtype=jnp.float32)

    # rois: [batch_idx, class_id, x1, y1, x2, y2, score] in image coordinates.
    rois = jnp.array(
        [[0.0, 1.0, 10.0, 20.0, 150.0, 200.0, 0.9],
         [1.0, 2.0, 0.0, 0.0, 255.0, 255.0, 0.8],
         [0.0, 3.0, 100.0, 40.0, 130.0, 90.0, 0.7]],
        dtype=jnp.float32)

    module = RoIPool(pool_h, pool_w, spatial_scale)

    # Check 1: single channel tile path (C padded 4 -> 128, grid = (N,)).
    out = jax.block_until_ready(module(features, rois))
    assert out.shape == (rois.shape[0], C, pool_h, pool_w)
    ref = roi_pool_reference(features, rois, pool_h, pool_w, spatial_scale)
    np.testing.assert_allclose(np.asarray(out), ref, atol=1e-6)

    # Check 2: multi channel-tile path (C = 256 -> two 128-lane tiles,
    # grid = (2, N)), also exercises the batch-sorted data-dependent index_map.
    C2 = 256
    features2 = jax.random.normal(k2, (B, C2, H, W), dtype=jnp.float32)
    out2 = jax.block_until_ready(module(features2, rois))
    ref2 = roi_pool_reference(features2, rois, pool_h, pool_w, spatial_scale)
    np.testing.assert_allclose(np.asarray(out2), ref2, atol=1e-6)

    print("KERNEL_OK")
</pallas_src>

<mosaic_0001>
module attributes {stable_mosaic.version = 11 : i64} {
  func.func @_roi_pool_kernel(%arg0: i32, %arg1: memref<15xi32, #tpu.memory_space<smem>>, %arg2: memref<1x16x16x128xf32, #tpu.memory_space<vmem>>, %arg3: memref<1x49x128xf32, #tpu.memory_space<vmem>>) attributes {dimension_semantics = [#tpu.dimension_semantics<parallel>], iteration_bounds = array<i64: 3>, scalar_prefetch = 1 : i64, scratch_operands = 0 : i64, tpu.core_type = #tpu.core_type<tc>, window_params = [{transform_indices = @transform_0, window_bounds = array<i64: 1, 16, 16, 128>}, {transform_indices = @transform_1, window_bounds = array<i64: 1, 49, 128>}]} {
    %c5_i32 = arith.constant 5 : i32
    %0 = arith.muli %c5_i32, %arg0 : i32
    %c1_i32 = arith.constant 1 : i32
    %1 = arith.addi %0, %c1_i32 : i32
    %2 = arith.index_cast %1 : i32 to index
    %3 = memref.load %arg1[%2] : memref<15xi32, #tpu.memory_space<smem>>
    %c2_i32 = arith.constant 2 : i32
    %4 = arith.addi %0, %c2_i32 : i32
    %5 = arith.index_cast %4 : i32 to index
    %6 = memref.load %arg1[%5] : memref<15xi32, #tpu.memory_space<smem>>
    %c3_i32 = arith.constant 3 : i32
    %7 = arith.addi %0, %c3_i32 : i32
    %8 = arith.index_cast %7 : i32 to index
    %9 = memref.load %arg1[%8] : memref<15xi32, #tpu.memory_space<smem>>
    %c4_i32 = arith.constant 4 : i32
    %10 = arith.addi %0, %c4_i32 : i32
    %11 = arith.index_cast %10 : i32 to index
    %12 = memref.load %arg1[%11] : memref<15xi32, #tpu.memory_space<smem>>
    %13 = arith.subi %9, %3 : i32
    %c1_i32_0 = arith.constant 1 : i32
    %14 = arith.addi %13, %c1_i32_0 : i32
    %c1_i32_1 = arith.constant 1 : i32
    %15 = arith.maxsi %14, %c1_i32_1 : i32
    %16 = arith.subi %12, %6 : i32
    %c1_i32_2 = arith.constant 1 : i32
    %17 = arith.addi %16, %c1_i32_2 : i32
    %c1_i32_3 = arith.constant 1 : i32
    %18 = arith.maxsi %17, %c1_i32_3 : i32
    %19 = arith.sitofp %18 : i32 to f32
    %cst = arith.constant 7.000000e+00 : f32
    %20 = arith.divf %19, %cst : f32
    %21 = arith.sitofp %15 : i32 to f32
    %cst_4 = arith.constant 7.000000e+00 : f32
    %22 = arith.divf %21, %cst_4 : f32
    %23 = tpu.iota {dimensions = array<i32: 0>} : vector<16x1xi32>
    %24 = tpu.iota {dimensions = array<i32: 0>} : vector<16x1xi32>
    %25 = tpu.iota {dimensions = array<i32: 0>} : vector<49x1xi32>
    %cst_5 = arith.constant 0.000000e+00 : f32
    %26 = arith.mulf %cst_5, %20 : f32
    %27 = math.floor %26 : f32
    %28 = arith.fptosi %27 : f32 to i32
    %29 = arith.addi %28, %6 : i32
    %c0_i32 = arith.constant 0 : i32
    %30 = arith.maxsi %29, %c0_i32 : i32
    %c16_i32 = arith.constant 16 : i32
    %31 = arith.minsi %30, %c16_i32 : i32
    %cst_6 = arith.constant 1.000000e+00 : f32
    %32 = arith.mulf %cst_6, %20 : f32
    %33 = math.ceil %32 : f32
    %34 = arith.fptosi %33 : f32 to i32
    %35 = arith.addi %34, %6 : i32
    %c0_i32_7 = arith.constant 0 : i32
    %36 = arith.maxsi %35, %c0_i32_7 : i32
    %c16_i32_8 = arith.constant 16 : i32
    %37 = arith.minsi %36, %c16_i32_8 : i32
    %cst_9 = arith.constant 1.000000e+00 : f32
    %38 = arith.mulf %cst_9, %20 : f32
    %39 = math.floor %38 : f32
    %40 = arith.fptosi %39 : f32 to i32
    %41 = arith.addi %40, %6 : i32
    %c0_i32_10 = arith.constant 0 : i32
    %42 = arith.maxsi %41, %c0_i32_10 : i32
    %c16_i32_11 = arith.constant 16 : i32
    %43 = arith.minsi %42, %c16_i32_11 : i32
    %cst_12 = arith.constant 2.000000e+00 : f32
    %44 = arith.mulf %cst_12, %20 : f32
    %45 = math.ceil %44 : f32
    %46 = arith.fptosi %45 : f32 to i32
    %47 = arith.addi %46, %6 : i32
    %c0_i32_13 = arith.constant 0 : i32
    %48 = arith.maxsi %47, %c0_i32_13 : i32
    %c16_i32_14 = arith.constant 16 : i32
    %49 = arith.minsi %48, %c16_i32_14 : i32
    %cst_15 = arith.constant 2.000000e+00 : f32
    %50 = arith.mulf %cst_15, %20 : f32
    %51 = math.floor %50 : f32
    %52 = arith.fptosi %51 : f32 to i32
    %53 = arith.addi %52, %6 : i32
    %c0_i32_16 = arith.constant 0 : i32
    %54 = arith.maxsi %53, %c0_i32_16 : i32
    %c16_i32_17 = arith.constant 16 : i32
    %55 = arith.minsi %54, %c16_i32_17 : i32
    %cst_18 = arith.constant 3.000000e+00 : f32
    %56 = arith.mulf %cst_18, %20 : f32
    %57 = math.ceil %56 : f32
    %58 = arith.fptosi %57 : f32 to i32
    %59 = arith.addi %58, %6 : i32
    %c0_i32_19 = arith.constant 0 : i32
    %60 = arith.maxsi %59, %c0_i32_19 : i32
    %c16_i32_20 = arith.constant 16 : i32
    %61 = arith.minsi %60, %c16_i32_20 : i32
    %cst_21 = arith.constant 3.000000e+00 : f32
    %62 = arith.mulf %cst_21, %20 : f32
    %63 = math.floor %62 : f32
    %64 = arith.fptosi %63 : f32 to i32
    %65 = arith.addi %64, %6 : i32
    %c0_i32_22 = arith.constant 0 : i32
    %66 = arith.maxsi %65, %c0_i32_22 : i32
    %c16_i32_23 = arith.constant 16 : i32
    %67 = arith.minsi %66, %c16_i32_23 : i32
    %cst_24 = arith.constant 4.000000e+00 : f32
    %68 = arith.mulf %cst_24, %20 : f32
    %69 = math.ceil %68 : f32
    %70 = arith.fptosi %69 : f32 to i32
    %71 = arith.addi %70, %6 : i32
    %c0_i32_25 = arith.constant 0 : i32
    %72 = arith.maxsi %71, %c0_i32_25 : i32
    %c16_i32_26 = arith.constant 16 : i32
    %73 = arith.minsi %72, %c16_i32_26 : i32
    %cst_27 = arith.constant 4.000000e+00 : f32
    %74 = arith.mulf %cst_27, %20 : f32
    %75 = math.floor %74 : f32
    %76 = arith.fptosi %75 : f32 to i32
    %77 = arith.addi %76, %6 : i32
    %c0_i32_28 = arith.constant 0 : i32
    %78 = arith.maxsi %77, %c0_i32_28 : i32
    %c16_i32_29 = arith.constant 16 : i32
    %79 = arith.minsi %78, %c16_i32_29 : i32
    %cst_30 = arith.constant 5.000000e+00 : f32
    %80 = arith.mulf %cst_30, %20 : f32
    %81 = math.ceil %80 : f32
    %82 = arith.fptosi %81 : f32 to i32
    %83 = arith.addi %82, %6 : i32
    %c0_i32_31 = arith.constant 0 : i32
    %84 = arith.maxsi %83, %c0_i32_31 : i32
    %c16_i32_32 = arith.constant 16 : i32
    %85 = arith.minsi %84, %c16_i32_32 : i32
    %cst_33 = arith.constant 5.000000e+00 : f32
    %86 = arith.mulf %cst_33, %20 : f32
    %87 = math.floor %86 : f32
    %88 = arith.fptosi %87 : f32 to i32
    %89 = arith.addi %88, %6 : i32
    %c0_i32_34 = arith.constant 0 : i32
    %90 = arith.maxsi %89, %c0_i32_34 : i32
    %c16_i32_35 = arith.constant 16 : i32
    %91 = arith.minsi %90, %c16_i32_35 : i32
    %cst_36 = arith.constant 6.000000e+00 : f32
    %92 = arith.mulf %cst_36, %20 : f32
    %93 = math.ceil %92 : f32
    %94 = arith.fptosi %93 : f32 to i32
    %95 = arith.addi %94, %6 : i32
    %c0_i32_37 = arith.constant 0 : i32
    %96 = arith.maxsi %95, %c0_i32_37 : i32
    %c16_i32_38 = arith.constant 16 : i32
    %97 = arith.minsi %96, %c16_i32_38 : i32
    %cst_39 = arith.constant 6.000000e+00 : f32
    %98 = arith.mulf %cst_39, %20 : f32
    %99 = math.floor %98 : f32
    %100 = arith.fptosi %99 : f32 to i32
    %101 = arith.addi %100, %6 : i32
    %c0_i32_40 = arith.constant 0 : i32
    %102 = arith.maxsi %101, %c0_i32_40 : i32
    %c16_i32_41 = arith.constant 16 : i32
    %103 = arith.minsi %102, %c16_i32_41 : i32
    %cst_42 = arith.constant 7.000000e+00 : f32
    %104 = arith.mulf %cst_42, %20 : f32
    %105 = math.ceil %104 : f32
    %106 = arith.fptosi %105 : f32 to i32
    %107 = arith.addi %106, %6 : i32
    %c0_i32_43 = arith.constant 0 : i32
    %108 = arith.maxsi %107, %c0_i32_43 : i32
    %c16_i32_44 = arith.constant 16 : i32
    %109 = arith.minsi %108, %c16_i32_44 : i32
    %110 = vector.broadcast %31 : i32 to vector<16x1xi32>
    %111 = arith.cmpi sge, %23, %110 : vector<16x1xi32>
    %112 = vector.broadcast %37 : i32 to vector<16x1xi32>
    %113 = arith.cmpi slt, %23, %112 : vector<16x1xi32>
    %114 = arith.andi %111, %113 : vector<16x1xi1>
    %115 = vector.broadcast %43 : i32 to vector<16x1xi32>
    %116 = arith.cmpi sge, %23, %115 : vector<16x1xi32>
    %117 = vector.broadcast %49 : i32 to vector<16x1xi32>
    %118 = arith.cmpi slt, %23, %117 : vector<16x1xi32>
    %119 = arith.andi %116, %118 : vector<16x1xi1>
    %120 = vector.broadcast %55 : i32 to vector<16x1xi32>
    %121 = arith.cmpi sge, %23, %120 : vector<16x1xi32>
    %122 = vector.broadcast %61 : i32 to vector<16x1xi32>
    %123 = arith.cmpi slt, %23, %122 : vector<16x1xi32>
    %124 = arith.andi %121, %123 : vector<16x1xi1>
    %125 = vector.broadcast %67 : i32 to vector<16x1xi32>
    %126 = arith.cmpi sge, %23, %125 : vector<16x1xi32>
    %127 = vector.broadcast %73 : i32 to vector<16x1xi32>
    %128 = arith.cmpi slt, %23, %127 : vector<16x1xi32>
    %129 = arith.andi %126, %128 : vector<16x1xi1>
    %130 = vector.broadcast %79 : i32 to vector<16x1xi32>
    %131 = arith.cmpi sge, %23, %130 : vector<16x1xi32>
    %132 = vector.broadcast %85 : i32 to vector<16x1xi32>
    %133 = arith.cmpi slt, %23, %132 : vector<16x1xi32>
    %134 = arith.andi %131, %133 : vector<16x1xi1>
    %135 = vector.broadcast %91 : i32 to vector<16x1xi32>
    %136 = arith.cmpi sge, %23, %135 : vector<16x1xi32>
    %137 = vector.broadcast %97 : i32 to vector<16x1xi32>
    %138 = arith.cmpi slt, %23, %137 : vector<16x1xi32>
    %139 = arith.andi %136, %138 : vector<16x1xi1>
    %140 = vector.broadcast %103 : i32 to vector<16x1xi32>
    %141 = arith.cmpi sge, %23, %140 : vector<16x1xi32>
    %142 = vector.broadcast %109 : i32 to vector<16x1xi32>
    %143 = arith.cmpi slt, %23, %142 : vector<16x1xi32>
    %144 = arith.andi %141, %143 : vector<16x1xi1>
    %cst_45 = arith.constant 0.000000e+00 : f32
    %145 = vector.broadcast %cst_45 : f32 to vector<49x128xf32>
    %cst_46 = arith.constant 0.000000e+00 : f32
    %146 = arith.mulf %cst_46, %22 : f32
    %147 = math.floor %146 : f32
    %148 = arith.fptosi %147 : f32 to i32
    %149 = arith.addi %148, %3 : i32
    %c0_i32_47 = arith.constant 0 : i32
    %150 = arith.maxsi %149, %c0_i32_47 : i32
    %c16_i32_48 = arith.constant 16 : i32
    %151 = arith.minsi %150, %c16_i32_48 : i32
    %cst_49 = arith.constant 1.000000e+00 : f32
    %152 = arith.mulf %cst_49, %22 : f32
    %153 = math.ceil %152 : f32
    %154 = arith.fptosi %153 : f32 to i32
    %155 = arith.addi %154, %3 : i32
    %c0_i32_50 = arith.constant 0 : i32
    %156 = arith.maxsi %155, %c0_i32_50 : i32
    %c16_i32_51 = arith.constant 16 : i32
    %157 = arith.minsi %156, %c16_i32_51 : i32
    %158 = vector.broadcast %151 : i32 to vector<16x1xi32>
    %159 = arith.cmpi sge, %24, %158 : vector<16x1xi32>
    %160 = vector.broadcast %157 : i32 to vector<16x1xi32>
    %161 = arith.cmpi slt, %24, %160 : vector<16x1xi32>
    %162 = arith.andi %159, %161 : vector<16x1xi1>
    %c0 = arith.constant 0 : index
    %c0_52 = arith.constant 0 : index
    %c0_53 = arith.constant 0 : index
    %c0_54 = arith.constant 0 : index
    %163 = vector.load %arg2[%c0, %c0_52, %c0_53, %c0_54] : memref<1x16x16x128xf32, #tpu.memory_space<vmem>>, vector<1x16x16x128xf32>
    %164 = vector.shape_cast %163 : vector<1x16x16x128xf32> to vector<16x16x128xf32>
    %cst_55 = arith.constant -3.40282347E+38 : f32
    %165 = vector.shape_cast %162 : vector<16x1xi1> to vector<1x16x1xi1>
    %166 = vector.broadcast %165 : vector<1x16x1xi1> to vector<16x16x128xi1>
    %167 = vector.broadcast %cst_55 : f32 to vector<16x16x128xf32>
    %168 = arith.select %166, %164, %167 : vector<16x16x128xi1>, vector<16x16x128xf32>
    %cst_56 = arith.constant dense<0xFF800000> : vector<16x128xf32>
    %169 = vector.multi_reduction <maximumf>, %168, %cst_56 [1] : vector<16x16x128xf32> to vector<16x128xf32>
    %170 = arith.cmpi sle, %157, %151 : i32
    %cst_57 = arith.constant -3.40282347E+38 : f32
    %171 = vector.shape_cast %114 : vector<16x1xi1> to vector<16x1xi1>
    %172 = vector.broadcast %171 : vector<16x1xi1> to vector<16x128xi1>
    %173 = vector.broadcast %cst_57 : f32 to vector<16x128xf32>
    %174 = arith.select %172, %169, %173 : vector<16x128xi1>, vector<16x128xf32>
    %cst_58 = arith.constant dense<0xFF800000> : vector<128xf32>
    %175 = vector.multi_reduction <maximumf>, %174, %cst_58 [0] : vector<16x128xf32> to vector<128xf32>
    %176 = vector.shape_cast %175 : vector<128xf32> to vector<1x128xf32>
    %177 = arith.cmpi sle, %37, %31 : i32
    %178 = arith.ori %170, %177 : i1
    %cst_59 = arith.constant 0.000000e+00 : f32
    %179 = vector.broadcast %cst_59 : f32 to vector<1x128xf32>
    %180 = arith.select %178, %179, %176 : vector<1x128xf32>
    %c0_i32_60 = arith.constant 0 : i32
    %181 = vector.broadcast %c0_i32_60 : i32 to vector<49x1xi32>
    %182 = arith.cmpi eq, %25, %181 : vector<49x1xi32>
    %183 = vector.shape_cast %182 : vector<49x1xi1> to vector<49x1xi1>
    %184 = vector.broadcast %183 : vector<49x1xi1> to vector<49x128xi1>
    %185 = vector.shape_cast %180 : vector<1x128xf32> to vector<1x128xf32>
    %186 = vector.broadcast %185 : vector<1x128xf32> to vector<49x128xf32>
    %187 = arith.select %184, %186, %145 : vector<49x128xi1>, vector<49x128xf32>
    %cst_61 = arith.constant -3.40282347E+38 : f32
    %188 = vector.shape_cast %119 : vector<16x1xi1> to vector<16x1xi1>
    %189 = vector.broadcast %188 : vector<16x1xi1> to vector<16x128xi1>
    %190 = vector.broadcast %cst_61 : f32 to vector<16x128xf32>
    %191 = arith.select %189, %169, %190 : vector<16x128xi1>, vector<16x128xf32>
    %cst_62 = arith.constant dense<0xFF800000> : vector<128xf32>
    %192 = vector.multi_reduction <maximumf>, %191, %cst_62 [0] : vector<16x128xf32> to vector<128xf32>
    %193 = vector.shape_cast %192 : vector<128xf32> to vector<1x128xf32>
    %194 = arith.cmpi sle, %49, %43 : i32
    %195 = arith.ori %170, %194 : i1
    %cst_63 = arith.constant 0.000000e+00 : f32
    %196 = vector.broadcast %cst_63 : f32 to vector<1x128xf32>
    %197 = arith.select %195, %196, %193 : vector<1x128xf32>
    %c7_i32 = arith.constant 7 : i32
    %198 = vector.broadcast %c7_i32 : i32 to vector<49x1xi32>
    %199 = arith.cmpi eq, %25, %198 : vector<49x1xi32>
    %200 = vector.shape_cast %199 : vector<49x1xi1> to vector<49x1xi1>
    %201 = vector.broadcast %200 : vector<49x1xi1> to vector<49x128xi1>
    %202 = vector.shape_cast %197 : vector<1x128xf32> to vector<1x128xf32>
    %203 = vector.broadcast %202 : vector<1x128xf32> to vector<49x128xf32>
    %204 = arith.select %201, %203, %187 : vector<49x128xi1>, vector<49x128xf32>
    %cst_64 = arith.constant -3.40282347E+38 : f32
    %205 = vector.shape_cast %124 : vector<16x1xi1> to vector<16x1xi1>
    %206 = vector.broadcast %205 : vector<16x1xi1> to vector<16x128xi1>
    %207 = vector.broadcast %cst_64 : f32 to vector<16x128xf32>
    %208 = arith.select %206, %169, %207 : vector<16x128xi1>, vector<16x128xf32>
    %cst_65 = arith.constant dense<0xFF800000> : vector<128xf32>
    %209 = vector.multi_reduction <maximumf>, %208, %cst_65 [0] : vector<16x128xf32> to vector<128xf32>
    %210 = vector.shape_cast %209 : vector<128xf32> to vector<1x128xf32>
    %211 = arith.cmpi sle, %61, %55 : i32
    %212 = arith.ori %170, %211 : i1
    %cst_66 = arith.constant 0.000000e+00 : f32
    %213 = vector.broadcast %cst_66 : f32 to vector<1x128xf32>
    %214 = arith.select %212, %213, %210 : vector<1x128xf32>
    %c14_i32 = arith.constant 14 : i32
    %215 = vector.broadcast %c14_i32 : i32 to vector<49x1xi32>
    %216 = arith.cmpi eq, %25, %215 : vector<49x1xi32>
    %217 = vector.shape_cast %216 : vector<49x1xi1> to vector<49x1xi1>
    %218 = vector.broadcast %217 : vector<49x1xi1> to vector<49x128xi1>
    %219 = vector.shape_cast %214 : vector<1x128xf32> to vector<1x128xf32>
    %220 = vector.broadcast %219 : vector<1x128xf32> to vector<49x128xf32>
    %221 = arith.select %218, %220, %204 : vector<49x128xi1>, vector<49x128xf32>
    %cst_67 = arith.constant -3.40282347E+38 : f32
    %222 = vector.shape_cast %129 : vector<16x1xi1> to vector<16x1xi1>
    %223 = vector.broadcast %222 : vector<16x1xi1> to vector<16x128xi1>
    %224 = vector.broadcast %cst_67 : f32 to vector<16x128xf32>
    %225 = arith.select %223, %169, %224 : vector<16x128xi1>, vector<16x128xf32>
    %cst_68 = arith.constant dense<0xFF800000> : vector<128xf32>
    %226 = vector.multi_reduction <maximumf>, %225, %cst_68 [0] : vector<16x128xf32> to vector<128xf32>
    %227 = vector.shape_cast %226 : vector<128xf32> to vector<1x128xf32>
    %228 = arith.cmpi sle, %73, %67 : i32
    %229 = arith.ori %170, %228 : i1
    %cst_69 = arith.constant 0.000000e+00 : f32
    %230 = vector.broadcast %cst_69 : f32 to vector<1x128xf32>
    %231 = arith.select %229, %230, %227 : vector<1x128xf32>
    %c21_i32 = arith.constant 21 : i32
    %232 = vector.broadcast %c21_i32 : i32 to vector<49x1xi32>
    %233 = arith.cmpi eq, %25, %232 : vector<49x1xi32>
    %234 = vector.shape_cast %233 : vector<49x1xi1> to vector<49x1xi1>
    %235 = vector.broadcast %234 : vector<49x1xi1> to vector<49x128xi1>
    %236 = vector.shape_cast %231 : vector<1x128xf32> to vector<1x128xf32>
    %237 = vector.broadcast %236 : vector<1x128xf32> to vector<49x128xf32>
    %238 = arith.select %235, %237, %221 : vector<49x128xi1>, vector<49x128xf32>
    %cst_70 = arith.constant -3.40282347E+38 : f32
    %239 = vector.shape_cast %134 : vector<16x1xi1> to vector<16x1xi1>
    %240 = vector.broadcast %239 : vector<16x1xi1> to vector<16x128xi1>
    %241 = vector.broadcast %cst_70 : f32 to vector<16x128xf32>
    %242 = arith.select %240, %169, %241 : vector<16x128xi1>, vector<16x128xf32>
    %cst_71 = arith.constant dense<0xFF800000> : vector<128xf32>
    %243 = vector.multi_reduction <maximumf>, %242, %cst_71 [0] : vector<16x128xf32> to vector<128xf32>
    %244 = vector.shape_cast %243 : vector<128xf32> to vector<1x128xf32>
    %245 = arith.cmpi sle, %85, %79 : i32
    %246 = arith.ori %170, %245 : i1
    %cst_72 = arith.constant 0.000000e+00 : f32
    %247 = vector.broadcast %cst_72 : f32 to vector<1x128xf32>
    %248 = arith.select %246, %247, %244 : vector<1x128xf32>
    %c28_i32 = arith.constant 28 : i32
    %249 = vector.broadcast %c28_i32 : i32 to vector<49x1xi32>
    %250 = arith.cmpi eq, %25, %249 : vector<49x1xi32>
    %251 = vector.shape_cast %250 : vector<49x1xi1> to vector<49x1xi1>
    %252 = vector.broadcast %251 : vector<49x1xi1> to vector<49x128xi1>
    %253 = vector.shape_cast %248 : vector<1x128xf32> to vector<1x128xf32>
    %254 = vector.broadcast %253 : vector<1x128xf32> to vector<49x128xf32>
    %255 = arith.select %252, %254, %238 : vector<49x128xi1>, vector<49x128xf32>
    %cst_73 = arith.constant -3.40282347E+38 : f32
    %256 = vector.shape_cast %139 : vector<16x1xi1> to vector<16x1xi1>
    %257 = vector.broadcast %256 : vector<16x1xi1> to vector<16x128xi1>
    %258 = vector.broadcast %cst_73 : f32 to vector<16x128xf32>
    %259 = arith.select %257, %169, %258 : vector<16x128xi1>, vector<16x128xf32>
    %cst_74 = arith.constant dense<0xFF800000> : vector<128xf32>
    %260 = vector.multi_reduction <maximumf>, %259, %cst_74 [0] : vector<16x128xf32> to vector<128xf32>
    %261 = vector.shape_cast %260 : vector<128xf32> to vector<1x128xf32>
    %262 = arith.cmpi sle, %97, %91 : i32
    %263 = arith.ori %170, %262 : i1
    %cst_75 = arith.constant 0.000000e+00 : f32
    %264 = vector.broadcast %cst_75 : f32 to vector<1x128xf32>
    %265 = arith.select %263, %264, %261 : vector<1x128xf32>
    %c35_i32 = arith.constant 35 : i32
    %266 = vector.broadcast %c35_i32 : i32 to vector<49x1xi32>
    %267 = arith.cmpi eq, %25, %266 : vector<49x1xi32>
    %268 = vector.shape_cast %267 : vector<49x1xi1> to vector<49x1xi1>
    %269 = vector.broadcast %268 : vector<49x1xi1> to vector<49x128xi1>
    %270 = vector.shape_cast %265 : vector<1x128xf32> to vector<1x128xf32>
    %271 = vector.broadcast %270 : vector<1x128xf32> to vector<49x128xf32>
    %272 = arith.select %269, %271, %255 : vector<49x128xi1>, vector<49x128xf32>
    %cst_76 = arith.constant -3.40282347E+38 : f32
    %273 = vector.shape_cast %144 : vector<16x1xi1> to vector<16x1xi1>
    %274 = vector.broadcast %273 : vector<16x1xi1> to vector<16x128xi1>
    %275 = vector.broadcast %cst_76 : f32 to vector<16x128xf32>
    %276 = arith.select %274, %169, %275 : vector<16x128xi1>, vector<16x128xf32>
    %cst_77 = arith.constant dense<0xFF800000> : vector<128xf32>
    %277 = vector.multi_reduction <maximumf>, %276, %cst_77 [0] : vector<16x128xf32> to vector<128xf32>
    %278 = vector.shape_cast %277 : vector<128xf32> to vector<1x128xf32>
    %279 = arith.cmpi sle, %109, %103 : i32
    %280 = arith.ori %170, %279 : i1
    %cst_78 = arith.constant 0.000000e+00 : f32
    %281 = vector.broadcast %cst_78 : f32 to vector<1x128xf32>
    %282 = arith.select %280, %281, %278 : vector<1x128xf32>
    %c42_i32 = arith.constant 42 : i32
    %283 = vector.broadcast %c42_i32 : i32 to vector<49x1xi32>
    %284 = arith.cmpi eq, %25, %283 : vector<49x1xi32>
    %285 = vector.shape_cast %284 : vector<49x1xi1> to vector<49x1xi1>
    %286 = vector.broadcast %285 : vector<49x1xi1> to vector<49x128xi1>
    %287 = vector.shape_cast %282 : vector<1x128xf32> to vector<1x128xf32>
    %288 = vector.broadcast %287 : vector<1x128xf32> to vector<49x128xf32>
    %289 = arith.select %286, %288, %272 : vector<49x128xi1>, vector<49x128xf32>
    %cst_79 = arith.constant 1.000000e+00 : f32
    %290 = arith.mulf %cst_79, %22 : f32
    %291 = math.floor %290 : f32
    %292 = arith.fptosi %291 : f32 to i32
    %293 = arith.addi %292, %3 : i32
    %c0_i32_80 = arith.constant 0 : i32
    %294 = arith.maxsi %293, %c0_i32_80 : i32
    %c16_i32_81 = arith.constant 16 : i32
    %295 = arith.minsi %294, %c16_i32_81 : i32
    %cst_82 = arith.constant 2.000000e+00 : f32
    %296 = arith.mulf %cst_82, %22 : f32
    %297 = math.ceil %296 : f32
    %298 = arith.fptosi %297 : f32 to i32
    %299 = arith.addi %298, %3 : i32
    %c0_i32_83 = arith.constant 0 : i32
    %300 = arith.maxsi %299, %c0_i32_83 : i32
    %c16_i32_84 = arith.constant 16 : i32
    %301 = arith.minsi %300, %c16_i32_84 : i32
    %302 = vector.broadcast %295 : i32 to vector<16x1xi32>
    %303 = arith.cmpi sge, %24, %302 : vector<16x1xi32>
    %304 = vector.broadcast %301 : i32 to vector<16x1xi32>
    %305 = arith.cmpi slt, %24, %304 : vector<16x1xi32>
    %306 = arith.andi %303, %305 : vector<16x1xi1>
    %c0_85 = arith.constant 0 : index
    %c0_86 = arith.constant 0 : index
    %c0_87 = arith.constant 0 : index
    %c0_88 = arith.constant 0 : index
    %307 = vector.load %arg2[%c0_85, %c0_86, %c0_87, %c0_88] : memref<1x16x16x128xf32, #tpu.memory_space<vmem>>, vector<1x16x16x128xf32>
    %308 = vector.shape_cast %307 : vector<1x16x16x128xf32> to vector<16x16x128xf32>
    %cst_89 = arith.constant -3.40282347E+38 : f32
    %309 = vector.shape_cast %306 : vector<16x1xi1> to vector<1x16x1xi1>
    %310 = vector.broadcast %309 : vector<1x16x1xi1> to vector<16x16x128xi1>
    %311 = vector.broadcast %cst_89 : f32 to vector<16x16x128xf32>
    %312 = arith.select %310, %308, %311 : vector<16x16x128xi1>, vector<16x16x128xf32>
    %cst_90 = arith.constant dense<0xFF800000> : vector<16x128xf32>
    %313 = vector.multi_reduction <maximumf>, %312, %cst_90 [1] : vector<16x16x128xf32> to vector<16x128xf32>
    %314 = arith.cmpi sle, %301, %295 : i32
    %cst_91 = arith.constant -3.40282347E+38 : f32
    %315 = vector.shape_cast %114 : vector<16x1xi1> to vector<16x1xi1>
    %316 = vector.broadcast %315 : vector<16x1xi1> to vector<16x128xi1>
    %317 = vector.broadcast %cst_91 : f32 to vector<16x128xf32>
    %318 = arith.select %316, %313, %317 : vector<16x128xi1>, vector<16x128xf32>
    %cst_92 = arith.constant dense<0xFF800000> : vector<128xf32>
    %319 = vector.multi_reduction <maximumf>, %318, %cst_92 [0] : vector<16x128xf32> to vector<128xf32>
    %320 = vector.shape_cast %319 : vector<128xf32> to vector<1x128xf32>
    %321 = arith.cmpi sle, %37, %31 : i32
    %322 = arith.ori %314, %321 : i1
    %cst_93 = arith.constant 0.000000e+00 : f32
    %323 = vector.broadcast %cst_93 : f32 to vector<1x128xf32>
    %324 = arith.select %322, %323, %320 : vector<1x128xf32>
    %c1_i32_94 = arith.constant 1 : i32
    %325 = vector.broadcast %c1_i32_94 : i32 to vector<49x1xi32>
    %326 = arith.cmpi eq, %25, %325 : vector<49x1xi32>
    %327 = vector.shape_cast %326 : vector<49x1xi1> to vector<49x1xi1>
    %328 = vector.broadcast %327 : vector<49x1xi1> to vector<49x128xi1>
    %329 = vector.shape_cast %324 : vector<1x128xf32> to vector<1x128xf32>
    %330 = vector.broadcast %329 : vector<1x128xf32> to vector<49x128xf32>
    %331 = arith.select %328, %330, %289 : vector<49x128xi1>, vector<49x128xf32>
    %cst_95 = arith.constant -3.40282347E+38 : f32
    %332 = vector.shape_cast %119 : vector<16x1xi1> to vector<16x1xi1>
    %333 = vector.broadcast %332 : vector<16x1xi1> to vector<16x128xi1>
    %334 = vector.broadcast %cst_95 : f32 to vector<16x128xf32>
    %335 = arith.select %333, %313, %334 : vector<16x128xi1>, vector<16x128xf32>
    %cst_96 = arith.constant dense<0xFF800000> : vector<128xf32>
    %336 = vector.multi_reduction <maximumf>, %335, %cst_96 [0] : vector<16x128xf32> to vector<128xf32>
    %337 = vector.shape_cast %336 : vector<128xf32> to vector<1x128xf32>
    %338 = arith.cmpi sle, %49, %43 : i32
    %339 = arith.ori %314, %338 : i1
    %cst_97 = arith.constant 0.000000e+00 : f32
    %340 = vector.broadcast %cst_97 : f32 to vector<1x128xf32>
    %341 = arith.select %339, %340, %337 : vector<1x128xf32>
    %c8_i32 = arith.constant 8 : i32
    %342 = vector.broadcast %c8_i32 : i32 to vector<49x1xi32>
    %343 = arith.cmpi eq, %25, %342 : vector<49x1xi32>
    %344 = vector.shape_cast %343 : vector<49x1xi1> to vector<49x1xi1>
    %345 = vector.broadcast %344 : vector<49x1xi1> to vector<49x128xi1>
    %346 = vector.shape_cast %341 : vector<1x128xf32> to vector<1x128xf32>
    %347 = vector.broadcast %346 : vector<1x128xf32> to vector<49x128xf32>
    %348 = arith.select %345, %347, %331 : vector<49x128xi1>, vector<49x128xf32>
    %cst_98 = arith.constant -3.40282347E+38 : f32
    %349 = vector.shape_cast %124 : vector<16x1xi1> to vector<16x1xi1>
    %350 = vector.broadcast %349 : vector<16x1xi1> to vector<16x128xi1>
    %351 = vector.broadcast %cst_98 : f32 to vector<16x128xf32>
    %352 = arith.select %350, %313, %351 : vector<16x128xi1>, vector<16x128xf32>
    %cst_99 = arith.constant dense<0xFF800000> : vector<128xf32>
    %353 = vector.multi_reduction <maximumf>, %352, %cst_99 [0] : vector<16x128xf32> to vector<128xf32>
    %354 = vector.shape_cast %353 : vector<128xf32> to vector<1x128xf32>
    %355 = arith.cmpi sle, %61, %55 : i32
    %356 = arith.ori %314, %355 : i1
    %cst_100 = arith.constant 0.000000e+00 : f32
    %357 = vector.broadcast %cst_100 : f32 to vector<1x128xf32>
    %358 = arith.select %356, %357, %354 : vector<1x128xf32>
    %c15_i32 = arith.constant 15 : i32
    %359 = vector.broadcast %c15_i32 : i32 to vector<49x1xi32>
    %360 = arith.cmpi eq, %25, %359 : vector<49x1xi32>
    %361 = vector.shape_cast %360 : vector<49x1xi1> to vector<49x1xi1>
    %362 = vector.broadcast %361 : vector<49x1xi1> to vector<49x128xi1>
    %363 = vector.shape_cast %358 : vector<1x128xf32> to vector<1x128xf32>
    %364 = vector.broadcast %363 : vector<1x128xf32> to vector<49x128xf32>
    %365 = arith.select %362, %364, %348 : vector<49x128xi1>, vector<49x128xf32>
    %cst_101 = arith.constant -3.40282347E+38 : f32
    %366 = vector.shape_cast %129 : vector<16x1xi1> to vector<16x1xi1>
    %367 = vector.broadcast %366 : vector<16x1xi1> to vector<16x128xi1>
    %368 = vector.broadcast %cst_101 : f32 to vector<16x128xf32>
    %369 = arith.select %367, %313, %368 : vector<16x128xi1>, vector<16x128xf32>
    %cst_102 = arith.constant dense<0xFF800000> : vector<128xf32>
    %370 = vector.multi_reduction <maximumf>, %369, %cst_102 [0] : vector<16x128xf32> to vector<128xf32>
    %371 = vector.shape_cast %370 : vector<128xf32> to vector<1x128xf32>
    %372 = arith.cmpi sle, %73, %67 : i32
    %373 = arith.ori %314, %372 : i1
    %cst_103 = arith.constant 0.000000e+00 : f32
    %374 = vector.broadcast %cst_103 : f32 to vector<1x128xf32>
    %375 = arith.select %373, %374, %371 : vector<1x128xf32>
    %c22_i32 = arith.constant 22 : i32
    %376 = vector.broadcast %c22_i32 : i32 to vector<49x1xi32>
    %377 = arith.cmpi eq, %25, %376 : vector<49x1xi32>
    %378 = vector.shape_cast %377 : vector<49x1xi1> to vector<49x1xi1>
    %379 = vector.broadcast %378 : vector<49x1xi1> to vector<49x128xi1>
    %380 = vector.shape_cast %375 : vector<1x128xf32> to vector<1x128xf32>
    %381 = vector.broadcast %380 : vector<1x128xf32> to vector<49x128xf32>
    %382 = arith.select %379, %381, %365 : vector<49x128xi1>, vector<49x128xf32>
    %cst_104 = arith.constant -3.40282347E+38 : f32
    %383 = vector.shape_cast %134 : vector<16x1xi1> to vector<16x1xi1>
    %384 = vector.broadcast %383 : vector<16x1xi1> to vector<16x128xi1>
    %385 = vector.broadcast %cst_104 : f32 to vector<16x128xf32>
    %386 = arith.select %384, %313, %385 : vector<16x128xi1>, vector<16x128xf32>
    %cst_105 = arith.constant dense<0xFF800000> : vector<128xf32>
    %387 = vector.multi_reduction <maximumf>, %386, %cst_105 [0] : vector<16x128xf32> to vector<128xf32>
    %388 = vector.shape_cast %387 : vector<128xf32> to vector<1x128xf32>
    %389 = arith.cmpi sle, %85, %79 : i32
    %390 = arith.ori %314, %389 : i1
    %cst_106 = arith.constant 0.000000e+00 : f32
    %391 = vector.broadcast %cst_106 : f32 to vector<1x128xf32>
    %392 = arith.select %390, %391, %388 : vector<1x128xf32>
    %c29_i32 = arith.constant 29 : i32
    %393 = vector.broadcast %c29_i32 : i32 to vector<49x1xi32>
    %394 = arith.cmpi eq, %25, %393 : vector<49x1xi32>
    %395 = vector.shape_cast %394 : vector<49x1xi1> to vector<49x1xi1>
    %396 = vector.broadcast %395 : vector<49x1xi1> to vector<49x128xi1>
    %397 = vector.shape_cast %392 : vector<1x128xf32> to vector<1x128xf32>
    %398 = vector.broadcast %397 : vector<1x128xf32> to vector<49x128xf32>
    %399 = arith.select %396, %398, %382 : vector<49x128xi1>, vector<49x128xf32>
    %cst_107 = arith.constant -3.40282347E+38 : f32
    %400 = vector.shape_cast %139 : vector<16x1xi1> to vector<16x1xi1>
    %401 = vector.broadcast %400 : vector<16x1xi1> to vector<16x128xi1>
    %402 = vector.broadcast %cst_107 : f32 to vector<16x128xf32>
    %403 = arith.select %401, %313, %402 : vector<16x128xi1>, vector<16x128xf32>
    %cst_108 = arith.constant dense<0xFF800000> : vector<128xf32>
    %404 = vector.multi_reduction <maximumf>, %403, %cst_108 [0] : vector<16x128xf32> to vector<128xf32>
    %405 = vector.shape_cast %404 : vector<128xf32> to vector<1x128xf32>
    %406 = arith.cmpi sle, %97, %91 : i32
    %407 = arith.ori %314, %406 : i1
    %cst_109 = arith.constant 0.000000e+00 : f32
    %408 = vector.broadcast %cst_109 : f32 to vector<1x128xf32>
    %409 = arith.select %407, %408, %405 : vector<1x128xf32>
    %c36_i32 = arith.constant 36 : i32
    %410 = vector.broadcast %c36_i32 : i32 to vector<49x1xi32>
    %411 = arith.cmpi eq, %25, %410 : vector<49x1xi32>
    %412 = vector.shape_cast %411 : vector<49x1xi1> to vector<49x1xi1>
    %413 = vector.broadcast %412 : vector<49x1xi1> to vector<49x128xi1>
    %414 = vector.shape_cast %409 : vector<1x128xf32> to vector<1x128xf32>
    %415 = vector.broadcast %414 : vector<1x128xf32> to vector<49x128xf32>
    %416 = arith.select %413, %415, %399 : vector<49x128xi1>, vector<49x128xf32>
    %cst_110 = arith.constant -3.40282347E+38 : f32
    %417 = vector.shape_cast %144 : vector<16x1xi1> to vector<16x1xi1>
    %418 = vector.broadcast %417 : vector<16x1xi1> to vector<16x128xi1>
    %419 = vector.broadcast %cst_110 : f32 to vector<16x128xf32>
    %420 = arith.select %418, %313, %419 : vector<16x128xi1>, vector<16x128xf32>
    %cst_111 = arith.constant dense<0xFF800000> : vector<128xf32>
    %421 = vector.multi_reduction <maximumf>, %420, %cst_111 [0] : vector<16x128xf32> to vector<128xf32>
    %422 = vector.shape_cast %421 : vector<128xf32> to vector<1x128xf32>
    %423 = arith.cmpi sle, %109, %103 : i32
    %424 = arith.ori %314, %423 : i1
    %cst_112 = arith.constant 0.000000e+00 : f32
    %425 = vector.broadcast %cst_112 : f32 to vector<1x128xf32>
    %426 = arith.select %424, %425, %422 : vector<1x128xf32>
    %c43_i32 = arith.constant 43 : i32
    %427 = vector.broadcast %c43_i32 : i32 to vector<49x1xi32>
    %428 = arith.cmpi eq, %25, %427 : vector<49x1xi32>
    %429 = vector.shape_cast %428 : vector<49x1xi1> to vector<49x1xi1>
    %430 = vector.broadcast %429 : vector<49x1xi1> to vector<49x128xi1>
    %431 = vector.shape_cast %426 : vector<1x128xf32> to vector<1x128xf32>
    %432 = vector.broadcast %431 : vector<1x128xf32> to vector<49x128xf32>
    %433 = arith.select %430, %432, %416 : vector<49x128xi1>, vector<49x128xf32>
    %cst_113 = arith.constant 2.000000e+00 : f32
    %434 = arith.mulf %cst_113, %22 : f32
    %435 = math.floor %434 : f32
    %436 = arith.fptosi %435 : f32 to i32
    %437 = arith.addi %436, %3 : i32
    %c0_i32_114 = arith.constant 0 : i32
    %438 = arith.maxsi %437, %c0_i32_114 : i32
    %c16_i32_115 = arith.constant 16 : i32
    %439 = arith.minsi %438, %c16_i32_115 : i32
    %cst_116 = arith.constant 3.000000e+00 : f32
    %440 = arith.mulf %cst_116, %22 : f32
    %441 = math.ceil %440 : f32
    %442 = arith.fptosi %441 : f32 to i32
    %443 = arith.addi %442, %3 : i32
    %c0_i32_117 = arith.constant 0 : i32
    %444 = arith.maxsi %443, %c0_i32_117 : i32
    %c16_i32_118 = arith.constant 16 : i32
    %445 = arith.minsi %444, %c16_i32_118 : i32
    %446 = vector.broadcast %439 : i32 to vector<16x1xi32>
    %447 = arith.cmpi sge, %24, %446 : vector<16x1xi32>
    %448 = vector.broadcast %445 : i32 to vector<16x1xi32>
    %449 = arith.cmpi slt, %24, %448 : vector<16x1xi32>
    %450 = arith.andi %447, %449 : vector<16x1xi1>
    %c0_119 = arith.constant 0 : index
    %c0_120 = arith.constant 0 : index
    %c0_121 = arith.constant 0 : index
    %c0_122 = arith.constant 0 : index
    %451 = vector.load %arg2[%c0_119, %c0_120, %c0_121, %c0_122] : memref<1x16x16x128xf32, #tpu.memory_space<vmem>>, vector<1x16x16x128xf32>
    %452 = vector.shape_cast %451 : vector<1x16x16x128xf32> to vector<16x16x128xf32>
    %cst_123 = arith.constant -3.40282347E+38 : f32
    %453 = vector.shape_cast %450 : vector<16x1xi1> to vector<1x16x1xi1>
    %454 = vector.broadcast %453 : vector<1x16x1xi1> to vector<16x16x128xi1>
    %455 = vector.broadcast %cst_123 : f32 to vector<16x16x128xf32>
    %456 = arith.select %454, %452, %455 : vector<16x16x128xi1>, vector<16x16x128xf32>
    %cst_124 = arith.constant dense<0xFF800000> : vector<16x128xf32>
    %457 = vector.multi_reduction <maximumf>, %456, %cst_124 [1] : vector<16x16x128xf32> to vector<16x128xf32>
    %458 = arith.cmpi sle, %445, %439 : i32
    %cst_125 = arith.constant -3.40282347E+38 : f32
    %459 = vector.shape_cast %114 : vector<16x1xi1> to vector<16x1xi1>
    %460 = vector.broadcast %459 : vector<16x1xi1> to vector<16x128xi1>
    %461 = vector.broadcast %cst_125 : f32 to vector<16x128xf32>
    %462 = arith.select %460, %457, %461 : vector<16x128xi1>, vector<16x128xf32>
    %cst_126 = arith.constant dense<0xFF800000> : vector<128xf32>
    %463 = vector.multi_reduction <maximumf>, %462, %cst_126 [0] : vector<16x128xf32> to vector<128xf32>
    %464 = vector.shape_cast %463 : vector<128xf32> to vector<1x128xf32>
    %465 = arith.cmpi sle, %37, %31 : i32
    %466 = arith.ori %458, %465 : i1
    %cst_127 = arith.constant 0.000000e+00 : f32
    %467 = vector.broadcast %cst_127 : f32 to vector<1x128xf32>
    %468 = arith.select %466, %467, %464 : vector<1x128xf32>
    %c2_i32_128 = arith.constant 2 : i32
    %469 = vector.broadcast %c2_i32_128 : i32 to vector<49x1xi32>
    %470 = arith.cmpi eq, %25, %469 : vector<49x1xi32>
    %471 = vector.shape_cast %470 : vector<49x1xi1> to vector<49x1xi1>
    %472 = vector.broadcast %471 : vector<49x1xi1> to vector<49x128xi1>
    %473 = vector.shape_cast %468 : vector<1x128xf32> to vector<1x128xf32>
    %474 = vector.broadcast %473 : vector<1x128xf32> to vector<49x128xf32>
    %475 = arith.select %472, %474, %433 : vector<49x128xi1>, vector<49x128xf32>
    %cst_129 = arith.constant -3.40282347E+38 : f32
    %476 = vector.shape_cast %119 : vector<16x1xi1> to vector<16x1xi1>
    %477 = vector.broadcast %476 : vector<16x1xi1> to vector<16x128xi1>
    %478 = vector.broadcast %cst_129 : f32 to vector<16x128xf32>
    %479 = arith.select %477, %457, %478 : vector<16x128xi1>, vector<16x128xf32>
    %cst_130 = arith.constant dense<0xFF800000> : vector<128xf32>
    %480 = vector.multi_reduction <maximumf>, %479, %cst_130 [0] : vector<16x128xf32> to vector<128xf32>
    %481 = vector.shape_cast %480 : vector<128xf32> to vector<1x128xf32>
    %482 = arith.cmpi sle, %49, %43 : i32
    %483 = arith.ori %458, %482 : i1
    %cst_131 = arith.constant 0.000000e+00 : f32
    %484 = vector.broadcast %cst_131 : f32 to vector<1x128xf32>
    %485 = arith.select %483, %484, %481 : vector<1x128xf32>
    %c9_i32 = arith.constant 9 : i32
    %486 = vector.broadcast %c9_i32 : i32 to vector<49x1xi32>
    %487 = arith.cmpi eq, %25, %486 : vector<49x1xi32>
    %488 = vector.shape_cast %487 : vector<49x1xi1> to vector<49x1xi1>
    %489 = vector.broadcast %488 : vector<49x1xi1> to vector<49x128xi1>
    %490 = vector.shape_cast %485 : vector<1x128xf32> to vector<1x128xf32>
    %491 = vector.broadcast %490 : vector<1x128xf32> to vector<49x128xf32>
    %492 = arith.select %489, %491, %475 : vector<49x128xi1>, vector<49x128xf32>
    %cst_132 = arith.constant -3.40282347E+38 : f32
    %493 = vector.shape_cast %124 : vector<16x1xi1> to vector<16x1xi1>
    %494 = vector.broadcast %493 : vector<16x1xi1> to vector<16x128xi1>
    %495 = vector.broadcast %cst_132 : f32 to vector<16x128xf32>
    %496 = arith.select %494, %457, %495 : vector<16x128xi1>, vector<16x128xf32>
    %cst_133 = arith.constant dense<0xFF800000> : vector<128xf32>
    %497 = vector.multi_reduction <maximumf>, %496, %cst_133 [0] : vector<16x128xf32> to vector<128xf32>
    %498 = vector.shape_cast %497 : vector<128xf32> to vector<1x128xf32>
    %499 = arith.cmpi sle, %61, %55 : i32
    %500 = arith.ori %458, %499 : i1
    %cst_134 = arith.constant 0.000000e+00 : f32
    %501 = vector.broadcast %cst_134 : f32 to vector<1x128xf32>
    %502 = arith.select %500, %501, %498 : vector<1x128xf32>
    %c16_i32_135 = arith.constant 16 : i32
    %503 = vector.broadcast %c16_i32_135 : i32 to vector<49x1xi32>
    %504 = arith.cmpi eq, %25, %503 : vector<49x1xi32>
    %505 = vector.shape_cast %504 : vector<49x1xi1> to vector<49x1xi1>
    %506 = vector.broadcast %505 : vector<49x1xi1> to vector<49x128xi1>
    %507 = vector.shape_cast %502 : vector<1x128xf32> to vector<1x128xf32>
    %508 = vector.broadcast %507 : vector<1x128xf32> to vector<49x128xf32>
    %509 = arith.select %506, %508, %492 : vector<49x128xi1>, vector<49x128xf32>
    %cst_136 = arith.constant -3.40282347E+38 : f32
    %510 = vector.shape_cast %129 : vector<16x1xi1> to vector<16x1xi1>
    %511 = vector.broadcast %510 : vector<16x1xi1> to vector<16x128xi1>
    %512 = vector.broadcast %cst_136 : f32 to vector<16x128xf32>
    %513 = arith.select %511, %457, %512 : vector<16x128xi1>, vector<16x128xf32>
    %cst_137 = arith.constant dense<0xFF800000> : vector<128xf32>
    %514 = vector.multi_reduction <maximumf>, %513, %cst_137 [0] : vector<16x128xf32> to vector<128xf32>
    %515 = vector.shape_cast %514 : vector<128xf32> to vector<1x128xf32>
    %516 = arith.cmpi sle, %73, %67 : i32
    %517 = arith.ori %458, %516 : i1
    %cst_138 = arith.constant 0.000000e+00 : f32
    %518 = vector.broadcast %cst_138 : f32 to vector<1x128xf32>
    %519 = arith.select %517, %518, %515 : vector<1x128xf32>
    %c23_i32 = arith.constant 23 : i32
    %520 = vector.broadcast %c23_i32 : i32 to vector<49x1xi32>
    %521 = arith.cmpi eq, %25, %520 : vector<49x1xi32>
    %522 = vector.shape_cast %521 : vector<49x1xi1> to vector<49x1xi1>
    %523 = vector.broadcast %522 : vector<49x1xi1> to vector<49x128xi1>
    %524 = vector.shape_cast %519 : vector<1x128xf32> to vector<1x128xf32>
    %525 = vector.broadcast %524 : vector<1x128xf32> to vector<49x128xf32>
    %526 = arith.select %523, %525, %509 : vector<49x128xi1>, vector<49x128xf32>
    %cst_139 = arith.constant -3.40282347E+38 : f32
    %527 = vector.shape_cast %134 : vector<16x1xi1> to vector<16x1xi1>
    %528 = vector.broadcast %527 : vector<16x1xi1> to vector<16x128xi1>
    %529 = vector.broadcast %cst_139 : f32 to vector<16x128xf32>
    %530 = arith.select %528, %457, %529 : vector<16x128xi1>, vector<16x128xf32>
    %cst_140 = arith.constant dense<0xFF800000> : vector<128xf32>
    %531 = vector.multi_reduction <maximumf>, %530, %cst_140 [0] : vector<16x128xf32> to vector<128xf32>
    %532 = vector.shape_cast %531 : vector<128xf32> to vector<1x128xf32>
    %533 = arith.cmpi sle, %85, %79 : i32
    %534 = arith.ori %458, %533 : i1
    %cst_141 = arith.constant 0.000000e+00 : f32
    %535 = vector.broadcast %cst_141 : f32 to vector<1x128xf32>
    %536 = arith.select %534, %535, %532 : vector<1x128xf32>
    %c30_i32 = arith.constant 30 : i32
    %537 = vector.broadcast %c30_i32 : i32 to vector<49x1xi32>
    %538 = arith.cmpi eq, %25, %537 : vector<49x1xi32>
    %539 = vector.shape_cast %538 : vector<49x1xi1> to vector<49x1xi1>
    %540 = vector.broadcast %539 : vector<49x1xi1> to vector<49x128xi1>
    %541 = vector.shape_cast %536 : vector<1x128xf32> to vector<1x128xf32>
    %542 = vector.broadcast %541 : vector<1x128xf32> to vector<49x128xf32>
    %543 = arith.select %540, %542, %526 : vector<49x128xi1>, vector<49x128xf32>
    %cst_142 = arith.constant -3.40282347E+38 : f32
    %544 = vector.shape_cast %139 : vector<16x1xi1> to vector<16x1xi1>
    %545 = vector.broadcast %544 : vector<16x1xi1> to vector<16x128xi1>
    %546 = vector.broadcast %cst_142 : f32 to vector<16x128xf32>
    %547 = arith.select %545, %457, %546 : vector<16x128xi1>, vector<16x128xf32>
    %cst_143 = arith.constant dense<0xFF800000> : vector<128xf32>
    %548 = vector.multi_reduction <maximumf>, %547, %cst_143 [0] : vector<16x128xf32> to vector<128xf32>
    %549 = vector.shape_cast %548 : vector<128xf32> to vector<1x128xf32>
    %550 = arith.cmpi sle, %97, %91 : i32
    %551 = arith.ori %458, %550 : i1
    %cst_144 = arith.constant 0.000000e+00 : f32
    %552 = vector.broadcast %cst_144 : f32 to vector<1x128xf32>
    %553 = arith.select %551, %552, %549 : vector<1x128xf32>
    %c37_i32 = arith.constant 37 : i32
    %554 = vector.broadcast %c37_i32 : i32 to vector<49x1xi32>
    %555 = arith.cmpi eq, %25, %554 : vector<49x1xi32>
    %556 = vector.shape_cast %555 : vector<49x1xi1> to vector<49x1xi1>
    %557 = vector.broadcast %556 : vector<49x1xi1> to vector<49x128xi1>
    %558 = vector.shape_cast %553 : vector<1x128xf32> to vector<1x128xf32>
    %559 = vector.broadcast %558 : vector<1x128xf32> to vector<49x128xf32>
    %560 = arith.select %557, %559, %543 : vector<49x128xi1>, vector<49x128xf32>
    %cst_145 = arith.constant -3.40282347E+38 : f32
    %561 = vector.shape_cast %144 : vector<16x1xi1> to vector<16x1xi1>
    %562 = vector.broadcast %561 : vector<16x1xi1> to vector<16x128xi1>
    %563 = vector.broadcast %cst_145 : f32 to vector<16x128xf32>
    %564 = arith.select %562, %457, %563 : vector<16x128xi1>, vector<16x128xf32>
    %cst_146 = arith.constant dense<0xFF800000> : vector<128xf32>
    %565 = vector.multi_reduction <maximumf>, %564, %cst_146 [0] : vector<16x128xf32> to vector<128xf32>
    %566 = vector.shape_cast %565 : vector<128xf32> to vector<1x128xf32>
    %567 = arith.cmpi sle, %109, %103 : i32
    %568 = arith.ori %458, %567 : i1
    %cst_147 = arith.constant 0.000000e+00 : f32
    %569 = vector.broadcast %cst_147 : f32 to vector<1x128xf32>
    %570 = arith.select %568, %569, %566 : vector<1x128xf32>
    %c44_i32 = arith.constant 44 : i32
    %571 = vector.broadcast %c44_i32 : i32 to vector<49x1xi32>
    %572 = arith.cmpi eq, %25, %571 : vector<49x1xi32>
    %573 = vector.shape_cast %572 : vector<49x1xi1> to vector<49x1xi1>
    %574 = vector.broadcast %573 : vector<49x1xi1> to vector<49x128xi1>
    %575 = vector.shape_cast %570 : vector<1x128xf32> to vector<1x128xf32>
    %576 = vector.broadcast %575 : vector<1x128xf32> to vector<49x128xf32>
    %577 = arith.select %574, %576, %560 : vector<49x128xi1>, vector<49x128xf32>
    %cst_148 = arith.constant 3.000000e+00 : f32
    %578 = arith.mulf %cst_148, %22 : f32
    %579 = math.floor %578 : f32
    %580 = arith.fptosi %579 : f32 to i32
    %581 = arith.addi %580, %3 : i32
    %c0_i32_149 = arith.constant 0 : i32
    %582 = arith.maxsi %581, %c0_i32_149 : i32
    %c16_i32_150 = arith.constant 16 : i32
    %583 = arith.minsi %582, %c16_i32_150 : i32
    %cst_151 = arith.constant 4.000000e+00 : f32
    %584 = arith.mulf %cst_151, %22 : f32
    %585 = math.ceil %584 : f32
    %586 = arith.fptosi %585 : f32 to i32
    %587 = arith.addi %586, %3 : i32
    %c0_i32_152 = arith.constant 0 : i32
    %588 = arith.maxsi %587, %c0_i32_152 : i32
    %c16_i32_153 = arith.constant 16 : i32
    %589 = arith.minsi %588, %c16_i32_153 : i32
    %590 = vector.broadcast %583 : i32 to vector<16x1xi32>
    %591 = arith.cmpi sge, %24, %590 : vector<16x1xi32>
    %592 = vector.broadcast %589 : i32 to vector<16x1xi32>
    %593 = arith.cmpi slt, %24, %592 : vector<16x1xi32>
    %594 = arith.andi %591, %593 : vector<16x1xi1>
    %c0_154 = arith.constant 0 : index
    %c0_155 = arith.constant 0 : index
    %c0_156 = arith.constant 0 : index
    %c0_157 = arith.constant 0 : index
    %595 = vector.load %arg2[%c0_154, %c0_155, %c0_156, %c0_157] : memref<1x16x16x128xf32, #tpu.memory_space<vmem>>, vector<1x16x16x128xf32>
    %596 = vector.shape_cast %595 : vector<1x16x16x128xf32> to vector<16x16x128xf32>
    %cst_158 = arith.constant -3.40282347E+38 : f32
    %597 = vector.shape_cast %594 : vector<16x1xi1> to vector<1x16x1xi1>
    %598 = vector.broadcast %597 : vector<1x16x1xi1> to vector<16x16x128xi1>
    %599 = vector.broadcast %cst_158 : f32 to vector<16x16x128xf32>
    %600 = arith.select %598, %596, %599 : vector<16x16x128xi1>, vector<16x16x128xf32>
    %cst_159 = arith.constant dense<0xFF800000> : vector<16x128xf32>
    %601 = vector.multi_reduction <maximumf>, %600, %cst_159 [1] : vector<16x16x128xf32> to vector<16x128xf32>
    %602 = arith.cmpi sle, %589, %583 : i32
    %cst_160 = arith.constant -3.40282347E+38 : f32
    %603 = vector.shape_cast %114 : vector<16x1xi1> to vector<16x1xi1>
    %604 = vector.broadcast %603 : vector<16x1xi1> to vector<16x128xi1>
    %605 = vector.broadcast %cst_160 : f32 to vector<16x128xf32>
    %606 = arith.select %604, %601, %605 : vector<16x128xi1>, vector<16x128xf32>
    %cst_161 = arith.constant dense<0xFF800000> : vector<128xf32>
    %607 = vector.multi_reduction <maximumf>, %606, %cst_161 [0] : vector<16x128xf32> to vector<128xf32>
    %608 = vector.shape_cast %607 : vector<128xf32> to vector<1x128xf32>
    %609 = arith.cmpi sle, %37, %31 : i32
    %610 = arith.ori %602, %609 : i1
    %cst_162 = arith.constant 0.000000e+00 : f32
    %611 = vector.broadcast %cst_162 : f32 to vector<1x128xf32>
    %612 = arith.select %610, %611, %608 : vector<1x128xf32>
    %c3_i32_163 = arith.constant 3 : i32
    %613 = vector.broadcast %c3_i32_163 : i32 to vector<49x1xi32>
    %614 = arith.cmpi eq, %25, %613 : vector<49x1xi32>
    %615 = vector.shape_cast %614 : vector<49x1xi1> to vector<49x1xi1>
    %616 = vector.broadcast %615 : vector<49x1xi1> to vector<49x128xi1>
    %617 = vector.shape_cast %612 : vector<1x128xf32> to vector<1x128xf32>
    %618 = vector.broadcast %617 : vector<1x128xf32> to vector<49x128xf32>
    %619 = arith.select %616, %618, %577 : vector<49x128xi1>, vector<49x128xf32>
    %cst_164 = arith.constant -3.40282347E+38 : f32
    %620 = vector.shape_cast %119 : vector<16x1xi1> to vector<16x1xi1>
    %621 = vector.broadcast %620 : vector<16x1xi1> to vector<16x128xi1>
    %622 = vector.broadcast %cst_164 : f32 to vector<16x128xf32>
    %623 = arith.select %621, %601, %622 : vector<16x128xi1>, vector<16x128xf32>
    %cst_165 = arith.constant dense<0xFF800000> : vector<128xf32>
    %624 = vector.multi_reduction <maximumf>, %623, %cst_165 [0] : vector<16x128xf32> to vector<128xf32>
    %625 = vector.shape_cast %624 : vector<128xf32> to vector<1x128xf32>
    %626 = arith.cmpi sle, %49, %43 : i32
    %627 = arith.ori %602, %626 : i1
    %cst_166 = arith.constant 0.000000e+00 : f32
    %628 = vector.broadcast %cst_166 : f32 to vector<1x128xf32>
    %629 = arith.select %627, %628, %625 : vector<1x128xf32>
    %c10_i32 = arith.constant 10 : i32
    %630 = vector.broadcast %c10_i32 : i32 to vector<49x1xi32>
    %631 = arith.cmpi eq, %25, %630 : vector<49x1xi32>
    %632 = vector.shape_cast %631 : vector<49x1xi1> to vector<49x1xi1>
    %633 = vector.broadcast %632 : vector<49x1xi1> to vector<49x128xi1>
    %634 = vector.shape_cast %629 : vector<1x128xf32> to vector<1x128xf32>
    %635 = vector.broadcast %634 : vector<1x128xf32> to vector<49x128xf32>
    %636 = arith.select %633, %635, %619 : vector<49x128xi1>, vector<49x128xf32>
    %cst_167 = arith.constant -3.40282347E+38 : f32
    %637 = vector.shape_cast %124 : vector<16x1xi1> to vector<16x1xi1>
    %638 = vector.broadcast %637 : vector<16x1xi1> to vector<16x128xi1>
    %639 = vector.broadcast %cst_167 : f32 to vector<16x128xf32>
    %640 = arith.select %638, %601, %639 : vector<16x128xi1>, vector<16x128xf32>
    %cst_168 = arith.constant dense<0xFF800000> : vector<128xf32>
    %641 = vector.multi_reduction <maximumf>, %640, %cst_168 [0] : vector<16x128xf32> to vector<128xf32>
    %642 = vector.shape_cast %641 : vector<128xf32> to vector<1x128xf32>
    %643 = arith.cmpi sle, %61, %55 : i32
    %644 = arith.ori %602, %643 : i1
    %cst_169 = arith.constant 0.000000e+00 : f32
    %645 = vector.broadcast %cst_169 : f32 to vector<1x128xf32>
    %646 = arith.select %644, %645, %642 : vector<1x128xf32>
    %c17_i32 = arith.constant 17 : i32
    %647 = vector.broadcast %c17_i32 : i32 to vector<49x1xi32>
    %648 = arith.cmpi eq, %25, %647 : vector<49x1xi32>
    %649 = vector.shape_cast %648 : vector<49x1xi1> to vector<49x1xi1>
    %650 = vector.broadcast %649 : vector<49x1xi1> to vector<49x128xi1>
    %651 = vector.shape_cast %646 : vector<1x128xf32> to vector<1x128xf32>
    %652 = vector.broadcast %651 : vector<1x128xf32> to vector<49x128xf32>
    %653 = arith.select %650, %652, %636 : vector<49x128xi1>, vector<49x128xf32>
    %cst_170 = arith.constant -3.40282347E+38 : f32
    %654 = vector.shape_cast %129 : vector<16x1xi1> to vector<16x1xi1>
    %655 = vector.broadcast %654 : vector<16x1xi1> to vector<16x128xi1>
    %656 = vector.broadcast %cst_170 : f32 to vector<16x128xf32>
    %657 = arith.select %655, %601, %656 : vector<16x128xi1>, vector<16x128xf32>
    %cst_171 = arith.constant dense<0xFF800000> : vector<128xf32>
    %658 = vector.multi_reduction <maximumf>, %657, %cst_171 [0] : vector<16x128xf32> to vector<128xf32>
    %659 = vector.shape_cast %658 : vector<128xf32> to vector<1x128xf32>
    %660 = arith.cmpi sle, %73, %67 : i32
    %661 = arith.ori %602, %660 : i1
    %cst_172 = arith.constant 0.000000e+00 : f32
    %662 = vector.broadcast %cst_172 : f32 to vector<1x128xf32>
    %663 = arith.select %661, %662, %659 : vector<1x128xf32>
    %c24_i32 = arith.constant 24 : i32
    %664 = vector.broadcast %c24_i32 : i32 to vector<49x1xi32>
    %665 = arith.cmpi eq, %25, %664 : vector<49x1xi32>
    %666 = vector.shape_cast %665 : vector<49x1xi1> to vector<49x1xi1>
    %667 = vector.broadcast %666 : vector<49x1xi1> to vector<49x128xi1>
    %668 = vector.shape_cast %663 : vector<1x128xf32> to vector<1x128xf32>
    %669 = vector.broadcast %668 : vector<1x128xf32> to vector<49x128xf32>
    %670 = arith.select %667, %669, %653 : vector<49x128xi1>, vector<49x128xf32>
    %cst_173 = arith.constant -3.40282347E+38 : f32
    %671 = vector.shape_cast %134 : vector<16x1xi1> to vector<16x1xi1>
    %672 = vector.broadcast %671 : vector<16x1xi1> to vector<16x128xi1>
    %673 = vector.broadcast %cst_173 : f32 to vector<16x128xf32>
    %674 = arith.select %672, %601, %673 : vector<16x128xi1>, vector<16x128xf32>
    %cst_174 = arith.constant dense<0xFF800000> : vector<128xf32>
    %675 = vector.multi_reduction <maximumf>, %674, %cst_174 [0] : vector<16x128xf32> to vector<128xf32>
    %676 = vector.shape_cast %675 : vector<128xf32> to vector<1x128xf32>
    %677 = arith.cmpi sle, %85, %79 : i32
    %678 = arith.ori %602, %677 : i1
    %cst_175 = arith.constant 0.000000e+00 : f32
    %679 = vector.broadcast %cst_175 : f32 to vector<1x128xf32>
    %680 = arith.select %678, %679, %676 : vector<1x128xf32>
    %c31_i32 = arith.constant 31 : i32
    %681 = vector.broadcast %c31_i32 : i32 to vector<49x1xi32>
    %682 = arith.cmpi eq, %25, %681 : vector<49x1xi32>
    %683 = vector.shape_cast %682 : vector<49x1xi1> to vector<49x1xi1>
    %684 = vector.broadcast %683 : vector<49x1xi1> to vector<49x128xi1>
    %685 = vector.shape_cast %680 : vector<1x128xf32> to vector<1x128xf32>
    %686 = vector.broadcast %685 : vector<1x128xf32> to vector<49x128xf32>
    %687 = arith.select %684, %686, %670 : vector<49x128xi1>, vector<49x128xf32>
    %cst_176 = arith.constant -3.40282347E+38 : f32
    %688 = vector.shape_cast %139 : vector<16x1xi1> to vector<16x1xi1>
    %689 = vector.broadcast %688 : vector<16x1xi1> to vector<16x128xi1>
    %690 = vector.broadcast %cst_176 : f32 to vector<16x128xf32>
    %691 = arith.select %689, %601, %690 : vector<16x128xi1>, vector<16x128xf32>
    %cst_177 = arith.constant dense<0xFF800000> : vector<128xf32>
    %692 = vector.multi_reduction <maximumf>, %691, %cst_177 [0] : vector<16x128xf32> to vector<128xf32>
    %693 = vector.shape_cast %692 : vector<128xf32> to vector<1x128xf32>
    %694 = arith.cmpi sle, %97, %91 : i32
    %695 = arith.ori %602, %694 : i1
    %cst_178 = arith.constant 0.000000e+00 : f32
    %696 = vector.broadcast %cst_178 : f32 to vector<1x128xf32>
    %697 = arith.select %695, %696, %693 : vector<1x128xf32>
    %c38_i32 = arith.constant 38 : i32
    %698 = vector.broadcast %c38_i32 : i32 to vector<49x1xi32>
    %699 = arith.cmpi eq, %25, %698 : vector<49x1xi32>
    %700 = vector.shape_cast %699 : vector<49x1xi1> to vector<49x1xi1>
    %701 = vector.broadcast %700 : vector<49x1xi1> to vector<49x128xi1>
    %702 = vector.shape_cast %697 : vector<1x128xf32> to vector<1x128xf32>
    %703 = vector.broadcast %702 : vector<1x128xf32> to vector<49x128xf32>
    %704 = arith.select %701, %703, %687 : vector<49x128xi1>, vector<49x128xf32>
    %cst_179 = arith.constant -3.40282347E+38 : f32
    %705 = vector.shape_cast %144 : vector<16x1xi1> to vector<16x1xi1>
    %706 = vector.broadcast %705 : vector<16x1xi1> to vector<16x128xi1>
    %707 = vector.broadcast %cst_179 : f32 to vector<16x128xf32>
    %708 = arith.select %706, %601, %707 : vector<16x128xi1>, vector<16x128xf32>
    %cst_180 = arith.constant dense<0xFF800000> : vector<128xf32>
    %709 = vector.multi_reduction <maximumf>, %708, %cst_180 [0] : vector<16x128xf32> to vector<128xf32>
    %710 = vector.shape_cast %709 : vector<128xf32> to vector<1x128xf32>
    %711 = arith.cmpi sle, %109, %103 : i32
    %712 = arith.ori %602, %711 : i1
    %cst_181 = arith.constant 0.000000e+00 : f32
    %713 = vector.broadcast %cst_181 : f32 to vector<1x128xf32>
    %714 = arith.select %712, %713, %710 : vector<1x128xf32>
    %c45_i32 = arith.constant 45 : i32
    %715 = vector.broadcast %c45_i32 : i32 to vector<49x1xi32>
    %716 = arith.cmpi eq, %25, %715 : vector<49x1xi32>
    %717 = vector.shape_cast %716 : vector<49x1xi1> to vector<49x1xi1>
    %718 = vector.broadcast %717 : vector<49x1xi1> to vector<49x128xi1>
    %719 = vector.shape_cast %714 : vector<1x128xf32> to vector<1x128xf32>
    %720 = vector.broadcast %719 : vector<1x128xf32> to vector<49x128xf32>
    %721 = arith.select %718, %720, %704 : vector<49x128xi1>, vector<49x128xf32>
    %cst_182 = arith.constant 4.000000e+00 : f32
    %722 = arith.mulf %cst_182, %22 : f32
    %723 = math.floor %722 : f32
    %724 = arith.fptosi %723 : f32 to i32
    %725 = arith.addi %724, %3 : i32
    %c0_i32_183 = arith.constant 0 : i32
    %726 = arith.maxsi %725, %c0_i32_183 : i32
    %c16_i32_184 = arith.constant 16 : i32
    %727 = arith.minsi %726, %c16_i32_184 : i32
    %cst_185 = arith.constant 5.000000e+00 : f32
    %728 = arith.mulf %cst_185, %22 : f32
    %729 = math.ceil %728 : f32
    %730 = arith.fptosi %729 : f32 to i32
    %731 = arith.addi %730, %3 : i32
    %c0_i32_186 = arith.constant 0 : i32
    %732 = arith.maxsi %731, %c0_i32_186 : i32
    %c16_i32_187 = arith.constant 16 : i32
    %733 = arith.minsi %732, %c16_i32_187 : i32
    %734 = vector.broadcast %727 : i32 to vector<16x1xi32>
    %735 = arith.cmpi sge, %24, %734 : vector<16x1xi32>
    %736 = vector.broadcast %733 : i32 to vector<16x1xi32>
    %737 = arith.cmpi slt, %24, %736 : vector<16x1xi32>
    %738 = arith.andi %735, %737 : vector<16x1xi1>
    %c0_188 = arith.constant 0 : index
    %c0_189 = arith.constant 0 : index
    %c0_190 = arith.constant 0 : index
    %c0_191 = arith.constant 0 : index
    %739 = vector.load %arg2[%c0_188, %c0_189, %c0_190, %c0_191] : memref<1x16x16x128xf32, #tpu.memory_space<vmem>>, vector<1x16x16x128xf32>
    %740 = vector.shape_cast %739 : vector<1x16x16x128xf32> to vector<16x16x128xf32>
    %cst_192 = arith.constant -3.40282347E+38 : f32
    %741 = vector.shape_cast %738 : vector<16x1xi1> to vector<1x16x1xi1>
    %742 = vector.broadcast %741 : vector<1x16x1xi1> to vector<16x16x128xi1>
    %743 = vector.broadcast %cst_192 : f32 to vector<16x16x128xf32>
    %744 = arith.select %742, %740, %743 : vector<16x16x128xi1>, vector<16x16x128xf32>
    %cst_193 = arith.constant dense<0xFF800000> : vector<16x128xf32>
    %745 = vector.multi_reduction <maximumf>, %744, %cst_193 [1] : vector<16x16x128xf32> to vector<16x128xf32>
    %746 = arith.cmpi sle, %733, %727 : i32
    %cst_194 = arith.constant -3.40282347E+38 : f32
    %747 = vector.shape_cast %114 : vector<16x1xi1> to vector<16x1xi1>
    %748 = vector.broadcast %747 : vector<16x1xi1> to vector<16x128xi1>
    %749 = vector.broadcast %cst_194 : f32 to vector<16x128xf32>
    %750 = arith.select %748, %745, %749 : vector<16x128xi1>, vector<16x128xf32>
    %cst_195 = arith.constant dense<0xFF800000> : vector<128xf32>
    %751 = vector.multi_reduction <maximumf>, %750, %cst_195 [0] : vector<16x128xf32> to vector<128xf32>
    %752 = vector.shape_cast %751 : vector<128xf32> to vector<1x128xf32>
    %753 = arith.cmpi sle, %37, %31 : i32
    %754 = arith.ori %746, %753 : i1
    %cst_196 = arith.constant 0.000000e+00 : f32
    %755 = vector.broadcast %cst_196 : f32 to vector<1x128xf32>
    %756 = arith.select %754, %755, %752 : vector<1x128xf32>
    %c4_i32_197 = arith.constant 4 : i32
    %757 = vector.broadcast %c4_i32_197 : i32 to vector<49x1xi32>
    %758 = arith.cmpi eq, %25, %757 : vector<49x1xi32>
    %759 = vector.shape_cast %758 : vector<49x1xi1> to vector<49x1xi1>
    %760 = vector.broadcast %759 : vector<49x1xi1> to vector<49x128xi1>
    %761 = vector.shape_cast %756 : vector<1x128xf32> to vector<1x128xf32>
    %762 = vector.broadcast %761 : vector<1x128xf32> to vector<49x128xf32>
    %763 = arith.select %760, %762, %721 : vector<49x128xi1>, vector<49x128xf32>
    %cst_198 = arith.constant -3.40282347E+38 : f32
    %764 = vector.shape_cast %119 : vector<16x1xi1> to vector<16x1xi1>
    %765 = vector.broadcast %764 : vector<16x1xi1> to vector<16x128xi1>
    %766 = vector.broadcast %cst_198 : f32 to vector<16x128xf32>
    %767 = arith.select %765, %745, %766 : vector<16x128xi1>, vector<16x128xf32>
    %cst_199 = arith.constant dense<0xFF800000> : vector<128xf32>
    %768 = vector.multi_reduction <maximumf>, %767, %cst_199 [0] : vector<16x128xf32> to vector<128xf32>
    %769 = vector.shape_cast %768 : vector<128xf32> to vector<1x128xf32>
    %770 = arith.cmpi sle, %49, %43 : i32
    %771 = arith.ori %746, %770 : i1
    %cst_200 = arith.constant 0.000000e+00 : f32
    %772 = vector.broadcast %cst_200 : f32 to vector<1x128xf32>
    %773 = arith.select %771, %772, %769 : vector<1x128xf32>
    %c11_i32 = arith.constant 11 : i32
    %774 = vector.broadcast %c11_i32 : i32 to vector<49x1xi32>
    %775 = arith.cmpi eq, %25, %774 : vector<49x1xi32>
    %776 = vector.shape_cast %775 : vector<49x1xi1> to vector<49x1xi1>
    %777 = vector.broadcast %776 : vector<49x1xi1> to vector<49x128xi1>
    %778 = vector.shape_cast %773 : vector<1x128xf32> to vector<1x128xf32>
    %779 = vector.broadcast %778 : vector<1x128xf32> to vector<49x128xf32>
    %780 = arith.select %777, %779, %763 : vector<49x128xi1>, vector<49x128xf32>
    %cst_201 = arith.constant -3.40282347E+38 : f32
    %781 = vector.shape_cast %124 : vector<16x1xi1> to vector<16x1xi1>
    %782 = vector.broadcast %781 : vector<16x1xi1> to vector<16x128xi1>
    %783 = vector.broadcast %cst_201 : f32 to vector<16x128xf32>
    %784 = arith.select %782, %745, %783 : vector<16x128xi1>, vector<16x128xf32>
    %cst_202 = arith.constant dense<0xFF800000> : vector<128xf32>
    %785 = vector.multi_reduction <maximumf>, %784, %cst_202 [0] : vector<16x128xf32> to vector<128xf32>
    %786 = vector.shape_cast %785 : vector<128xf32> to vector<1x128xf32>
    %787 = arith.cmpi sle, %61, %55 : i32
    %788 = arith.ori %746, %787 : i1
    %cst_203 = arith.constant 0.000000e+00 : f32
    %789 = vector.broadcast %cst_203 : f32 to vector<1x128xf32>
    %790 = arith.select %788, %789, %786 : vector<1x128xf32>
    %c18_i32 = arith.constant 18 : i32
    %791 = vector.broadcast %c18_i32 : i32 to vector<49x1xi32>
    %792 = arith.cmpi eq, %25, %791 : vector<49x1xi32>
    %793 = vector.shape_cast %792 : vector<49x1xi1> to vector<49x1xi1>
    %794 = vector.broadcast %793 : vector<49x1xi1> to vector<49x128xi1>
    %795 = vector.shape_cast %790 : vector<1x128xf32> to vector<1x128xf32>
    %796 = vector.broadcast %795 : vector<1x128xf32> to vector<49x128xf32>
    %797 = arith.select %794, %796, %780 : vector<49x128xi1>, vector<49x128xf32>
    %cst_204 = arith.constant -3.40282347E+38 : f32
    %798 = vector.shape_cast %129 : vector<16x1xi1> to vector<16x1xi1>
    %799 = vector.broadcast %798 : vector<16x1xi1> to vector<16x128xi1>
    %800 = vector.broadcast %cst_204 : f32 to vector<16x128xf32>
    %801 = arith.select %799, %745, %800 : vector<16x128xi1>, vector<16x128xf32>
    %cst_205 = arith.constant dense<0xFF800000> : vector<128xf32>
    %802 = vector.multi_reduction <maximumf>, %801, %cst_205 [0] : vector<16x128xf32> to vector<128xf32>
    %803 = vector.shape_cast %802 : vector<128xf32> to vector<1x128xf32>
    %804 = arith.cmpi sle, %73, %67 : i32
    %805 = arith.ori %746, %804 : i1
    %cst_206 = arith.constant 0.000000e+00 : f32
    %806 = vector.broadcast %cst_206 : f32 to vector<1x128xf32>
    %807 = arith.select %805, %806, %803 : vector<1x128xf32>
    %c25_i32 = arith.constant 25 : i32
    %808 = vector.broadcast %c25_i32 : i32 to vector<49x1xi32>
    %809 = arith.cmpi eq, %25, %808 : vector<49x1xi32>
    %810 = vector.shape_cast %809 : vector<49x1xi1> to vector<49x1xi1>
    %811 = vector.broadcast %810 : vector<49x1xi1> to vector<49x128xi1>
    %812 = vector.shape_cast %807 : vector<1x128xf32> to vector<1x128xf32>
    %813 = vector.broadcast %812 : vector<1x128xf32> to vector<49x128xf32>
    %814 = arith.select %811, %813, %797 : vector<49x128xi1>, vector<49x128xf32>
    %cst_207 = arith.constant -3.40282347E+38 : f32
    %815 = vector.shape_cast %134 : vector<16x1xi1> to vector<16x1xi1>
    %816 = vector.broadcast %815 : vector<16x1xi1> to vector<16x128xi1>
    %817 = vector.broadcast %cst_207 : f32 to vector<16x128xf32>
    %818 = arith.select %816, %745, %817 : vector<16x128xi1>, vector<16x128xf32>
    %cst_208 = arith.constant dense<0xFF800000> : vector<128xf32>
    %819 = vector.multi_reduction <maximumf>, %818, %cst_208 [0] : vector<16x128xf32> to vector<128xf32>
    %820 = vector.shape_cast %819 : vector<128xf32> to vector<1x128xf32>
    %821 = arith.cmpi sle, %85, %79 : i32
    %822 = arith.ori %746, %821 : i1
    %cst_209 = arith.constant 0.000000e+00 : f32
    %823 = vector.broadcast %cst_209 : f32 to vector<1x128xf32>
    %824 = arith.select %822, %823, %820 : vector<1x128xf32>
    %c32_i32 = arith.constant 32 : i32
    %825 = vector.broadcast %c32_i32 : i32 to vector<49x1xi32>
    %826 = arith.cmpi eq, %25, %825 : vector<49x1xi32>
    %827 = vector.shape_cast %826 : vector<49x1xi1> to vector<49x1xi1>
    %828 = vector.broadcast %827 : vector<49x1xi1> to vector<49x128xi1>
    %829 = vector.shape_cast %824 : vector<1x128xf32> to vector<1x128xf32>
    %830 = vector.broadcast %829 : vector<1x128xf32> to vector<49x128xf32>
    %831 = arith.select %828, %830, %814 : vector<49x128xi1>, vector<49x128xf32>
    %cst_210 = arith.constant -3.40282347E+38 : f32
    %832 = vector.shape_cast %139 : vector<16x1xi1> to vector<16x1xi1>
    %833 = vector.broadcast %832 : vector<16x1xi1> to vector<16x128xi1>
    %834 = vector.broadcast %cst_210 : f32 to vector<16x128xf32>
    %835 = arith.select %833, %745, %834 : vector<16x128xi1>, vector<16x128xf32>
    %cst_211 = arith.constant dense<0xFF800000> : vector<128xf32>
    %836 = vector.multi_reduction <maximumf>, %835, %cst_211 [0] : vector<16x128xf32> to vector<128xf32>
    %837 = vector.shape_cast %836 : vector<128xf32> to vector<1x128xf32>
    %838 = arith.cmpi sle, %97, %91 : i32
    %839 = arith.ori %746, %838 : i1
    %cst_212 = arith.constant 0.000000e+00 : f32
    %840 = vector.broadcast %cst_212 : f32 to vector<1x128xf32>
    %841 = arith.select %839, %840, %837 : vector<1x128xf32>
    %c39_i32 = arith.constant 39 : i32
    %842 = vector.broadcast %c39_i32 : i32 to vector<49x1xi32>
    %843 = arith.cmpi eq, %25, %842 : vector<49x1xi32>
    %844 = vector.shape_cast %843 : vector<49x1xi1> to vector<49x1xi1>
    %845 = vector.broadcast %844 : vector<49x1xi1> to vector<49x128xi1>
    %846 = vector.shape_cast %841 : vector<1x128xf32> to vector<1x128xf32>
    %847 = vector.broadcast %846 : vector<1x128xf32> to vector<49x128xf32>
    %848 = arith.select %845, %847, %831 : vector<49x128xi1>, vector<49x128xf32>
    %cst_213 = arith.constant -3.40282347E+38 : f32
    %849 = vector.shape_cast %144 : vector<16x1xi1> to vector<16x1xi1>
    %850 = vector.broadcast %849 : vector<16x1xi1> to vector<16x128xi1>
    %851 = vector.broadcast %cst_213 : f32 to vector<16x128xf32>
    %852 = arith.select %850, %745, %851 : vector<16x128xi1>, vector<16x128xf32>
    %cst_214 = arith.constant dense<0xFF800000> : vector<128xf32>
    %853 = vector.multi_reduction <maximumf>, %852, %cst_214 [0] : vector<16x128xf32> to vector<128xf32>
    %854 = vector.shape_cast %853 : vector<128xf32> to vector<1x128xf32>
    %855 = arith.cmpi sle, %109, %103 : i32
    %856 = arith.ori %746, %855 : i1
    %cst_215 = arith.constant 0.000000e+00 : f32
    %857 = vector.broadcast %cst_215 : f32 to vector<1x128xf32>
    %858 = arith.select %856, %857, %854 : vector<1x128xf32>
    %c46_i32 = arith.constant 46 : i32
    %859 = vector.broadcast %c46_i32 : i32 to vector<49x1xi32>
    %860 = arith.cmpi eq, %25, %859 : vector<49x1xi32>
    %861 = vector.shape_cast %860 : vector<49x1xi1> to vector<49x1xi1>
    %862 = vector.broadcast %861 : vector<49x1xi1> to vector<49x128xi1>
    %863 = vector.shape_cast %858 : vector<1x128xf32> to vector<1x128xf32>
    %864 = vector.broadcast %863 : vector<1x128xf32> to vector<49x128xf32>
    %865 = arith.select %862, %864, %848 : vector<49x128xi1>, vector<49x128xf32>
    %cst_216 = arith.constant 5.000000e+00 : f32
    %866 = arith.mulf %cst_216, %22 : f32
    %867 = math.floor %866 : f32
    %868 = arith.fptosi %867 : f32 to i32
    %869 = arith.addi %868, %3 : i32
    %c0_i32_217 = arith.constant 0 : i32
    %870 = arith.maxsi %869, %c0_i32_217 : i32
    %c16_i32_218 = arith.constant 16 : i32
    %871 = arith.minsi %870, %c16_i32_218 : i32
    %cst_219 = arith.constant 6.000000e+00 : f32
    %872 = arith.mulf %cst_219, %22 : f32
    %873 = math.ceil %872 : f32
    %874 = arith.fptosi %873 : f32 to i32
    %875 = arith.addi %874, %3 : i32
    %c0_i32_220 = arith.constant 0 : i32
    %876 = arith.maxsi %875, %c0_i32_220 : i32
    %c16_i32_221 = arith.constant 16 : i32
    %877 = arith.minsi %876, %c16_i32_221 : i32
    %878 = vector.broadcast %871 : i32 to vector<16x1xi32>
    %879 = arith.cmpi sge, %24, %878 : vector<16x1xi32>
    %880 = vector.broadcast %877 : i32 to vector<16x1xi32>
    %881 = arith.cmpi slt, %24, %880 : vector<16x1xi32>
    %882 = arith.andi %879, %881 : vector<16x1xi1>
    %c0_222 = arith.constant 0 : index
    %c0_223 = arith.constant 0 : index
    %c0_224 = arith.constant 0 : index
    %c0_225 = arith.constant 0 : index
    %883 = vector.load %arg2[%c0_222, %c0_223, %c0_224, %c0_225] : memref<1x16x16x128xf32, #tpu.memory_space<vmem>>, vector<1x16x16x128xf32>
    %884 = vector.shape_cast %883 : vector<1x16x16x128xf32> to vector<16x16x128xf32>
    %cst_226 = arith.constant -3.40282347E+38 : f32
    %885 = vector.shape_cast %882 : vector<16x1xi1> to vector<1x16x1xi1>
    %886 = vector.broadcast %885 : vector<1x16x1xi1> to vector<16x16x128xi1>
    %887 = vector.broadcast %cst_226 : f32 to vector<16x16x128xf32>
    %888 = arith.select %886, %884, %887 : vector<16x16x128xi1>, vector<16x16x128xf32>
    %cst_227 = arith.constant dense<0xFF800000> : vector<16x128xf32>
    %889 = vector.multi_reduction <maximumf>, %888, %cst_227 [1] : vector<16x16x128xf32> to vector<16x128xf32>
    %890 = arith.cmpi sle, %877, %871 : i32
    %cst_228 = arith.constant -3.40282347E+38 : f32
    %891 = vector.shape_cast %114 : vector<16x1xi1> to vector<16x1xi1>
    %892 = vector.broadcast %891 : vector<16x1xi1> to vector<16x128xi1>
    %893 = vector.broadcast %cst_228 : f32 to vector<16x128xf32>
    %894 = arith.select %892, %889, %893 : vector<16x128xi1>, vector<16x128xf32>
    %cst_229 = arith.constant dense<0xFF800000> : vector<128xf32>
    %895 = vector.multi_reduction <maximumf>, %894, %cst_229 [0] : vector<16x128xf32> to vector<128xf32>
    %896 = vector.shape_cast %895 : vector<128xf32> to vector<1x128xf32>
    %897 = arith.cmpi sle, %37, %31 : i32
    %898 = arith.ori %890, %897 : i1
    %cst_230 = arith.constant 0.000000e+00 : f32
    %899 = vector.broadcast %cst_230 : f32 to vector<1x128xf32>
    %900 = arith.select %898, %899, %896 : vector<1x128xf32>
    %c5_i32_231 = arith.constant 5 : i32
    %901 = vector.broadcast %c5_i32_231 : i32 to vector<49x1xi32>
    %902 = arith.cmpi eq, %25, %901 : vector<49x1xi32>
    %903 = vector.shape_cast %902 : vector<49x1xi1> to vector<49x1xi1>
    %904 = vector.broadcast %903 : vector<49x1xi1> to vector<49x128xi1>
    %905 = vector.shape_cast %900 : vector<1x128xf32> to vector<1x128xf32>
    %906 = vector.broadcast %905 : vector<1x128xf32> to vector<49x128xf32>
    %907 = arith.select %904, %906, %865 : vector<49x128xi1>, vector<49x128xf32>
    %cst_232 = arith.constant -3.40282347E+38 : f32
    %908 = vector.shape_cast %119 : vector<16x1xi1> to vector<16x1xi1>
    %909 = vector.broadcast %908 : vector<16x1xi1> to vector<16x128xi1>
    %910 = vector.broadcast %cst_232 : f32 to vector<16x128xf32>
    %911 = arith.select %909, %889, %910 : vector<16x128xi1>, vector<16x128xf32>
    %cst_233 = arith.constant dense<0xFF800000> : vector<128xf32>
    %912 = vector.multi_reduction <maximumf>, %911, %cst_233 [0] : vector<16x128xf32> to vector<128xf32>
    %913 = vector.shape_cast %912 : vector<128xf32> to vector<1x128xf32>
    %914 = arith.cmpi sle, %49, %43 : i32
    %915 = arith.ori %890, %914 : i1
    %cst_234 = arith.constant 0.000000e+00 : f32
    %916 = vector.broadcast %cst_234 : f32 to vector<1x128xf32>
    %917 = arith.select %915, %916, %913 : vector<1x128xf32>
    %c12_i32 = arith.constant 12 : i32
    %918 = vector.broadcast %c12_i32 : i32 to vector<49x1xi32>
    %919 = arith.cmpi eq, %25, %918 : vector<49x1xi32>
    %920 = vector.shape_cast %919 : vector<49x1xi1> to vector<49x1xi1>
    %921 = vector.broadcast %920 : vector<49x1xi1> to vector<49x128xi1>
    %922 = vector.shape_cast %917 : vector<1x128xf32> to vector<1x128xf32>
    %923 = vector.broadcast %922 : vector<1x128xf32> to vector<49x128xf32>
    %924 = arith.select %921, %923, %907 : vector<49x128xi1>, vector<49x128xf32>
    %cst_235 = arith.constant -3.40282347E+38 : f32
    %925 = vector.shape_cast %124 : vector<16x1xi1> to vector<16x1xi1>
    %926 = vector.broadcast %925 : vector<16x1xi1> to vector<16x128xi1>
    %927 = vector.broadcast %cst_235 : f32 to vector<16x128xf32>
    %928 = arith.select %926, %889, %927 : vector<16x128xi1>, vector<16x128xf32>
    %cst_236 = arith.constant dense<0xFF800000> : vector<128xf32>
    %929 = vector.multi_reduction <maximumf>, %928, %cst_236 [0] : vector<16x128xf32> to vector<128xf32>
    %930 = vector.shape_cast %929 : vector<128xf32> to vector<1x128xf32>
    %931 = arith.cmpi sle, %61, %55 : i32
    %932 = arith.ori %890, %931 : i1
    %cst_237 = arith.constant 0.000000e+00 : f32
    %933 = vector.broadcast %cst_237 : f32 to vector<1x128xf32>
    %934 = arith.select %932, %933, %930 : vector<1x128xf32>
    %c19_i32 = arith.constant 19 : i32
    %935 = vector.broadcast %c19_i32 : i32 to vector<49x1xi32>
    %936 = arith.cmpi eq, %25, %935 : vector<49x1xi32>
    %937 = vector.shape_cast %936 : vector<49x1xi1> to vector<49x1xi1>
    %938 = vector.broadcast %937 : vector<49x1xi1> to vector<49x128xi1>
    %939 = vector.shape_cast %934 : vector<1x128xf32> to vector<1x128xf32>
    %940 = vector.broadcast %939 : vector<1x128xf32> to vector<49x128xf32>
    %941 = arith.select %938, %940, %924 : vector<49x128xi1>, vector<49x128xf32>
    %cst_238 = arith.constant -3.40282347E+38 : f32
    %942 = vector.shape_cast %129 : vector<16x1xi1> to vector<16x1xi1>
    %943 = vector.broadcast %942 : vector<16x1xi1> to vector<16x128xi1>
    %944 = vector.broadcast %cst_238 : f32 to vector<16x128xf32>
    %945 = arith.select %943, %889, %944 : vector<16x128xi1>, vector<16x128xf32>
    %cst_239 = arith.constant dense<0xFF800000> : vector<128xf32>
    %946 = vector.multi_reduction <maximumf>, %945, %cst_239 [0] : vector<16x128xf32> to vector<128xf32>
    %947 = vector.shape_cast %946 : vector<128xf32> to vector<1x128xf32>
    %948 = arith.cmpi sle, %73, %67 : i32
    %949 = arith.ori %890, %948 : i1
    %cst_240 = arith.constant 0.000000e+00 : f32
    %950 = vector.broadcast %cst_240 : f32 to vector<1x128xf32>
    %951 = arith.select %949, %950, %947 : vector<1x128xf32>
    %c26_i32 = arith.constant 26 : i32
    %952 = vector.broadcast %c26_i32 : i32 to vector<49x1xi32>
    %953 = arith.cmpi eq, %25, %952 : vector<49x1xi32>
    %954 = vector.shape_cast %953 : vector<49x1xi1> to vector<49x1xi1>
    %955 = vector.broadcast %954 : vector<49x1xi1> to vector<49x128xi1>
    %956 = vector.shape_cast %951 : vector<1x128xf32> to vector<1x128xf32>
    %957 = vector.broadcast %956 : vector<1x128xf32> to vector<49x128xf32>
    %958 = arith.select %955, %957, %941 : vector<49x128xi1>, vector<49x128xf32>
    %cst_241 = arith.constant -3.40282347E+38 : f32
    %959 = vector.shape_cast %134 : vector<16x1xi1> to vector<16x1xi1>
    %960 = vector.broadcast %959 : vector<16x1xi1> to vector<16x128xi1>
    %961 = vector.broadcast %cst_241 : f32 to vector<16x128xf32>
    %962 = arith.select %960, %889, %961 : vector<16x128xi1>, vector<16x128xf32>
    %cst_242 = arith.constant dense<0xFF800000> : vector<128xf32>
    %963 = vector.multi_reduction <maximumf>, %962, %cst_242 [0] : vector<16x128xf32> to vector<128xf32>
    %964 = vector.shape_cast %963 : vector<128xf32> to vector<1x128xf32>
    %965 = arith.cmpi sle, %85, %79 : i32
    %966 = arith.ori %890, %965 : i1
    %cst_243 = arith.constant 0.000000e+00 : f32
    %967 = vector.broadcast %cst_243 : f32 to vector<1x128xf32>
    %968 = arith.select %966, %967, %964 : vector<1x128xf32>
    %c33_i32 = arith.constant 33 : i32
    %969 = vector.broadcast %c33_i32 : i32 to vector<49x1xi32>
    %970 = arith.cmpi eq, %25, %969 : vector<49x1xi32>
    %971 = vector.shape_cast %970 : vector<49x1xi1> to vector<49x1xi1>
    %972 = vector.broadcast %971 : vector<49x1xi1> to vector<49x128xi1>
    %973 = vector.shape_cast %968 : vector<1x128xf32> to vector<1x128xf32>
    %974 = vector.broadcast %973 : vector<1x128xf32> to vector<49x128xf32>
    %975 = arith.select %972, %974, %958 : vector<49x128xi1>, vector<49x128xf32>
    %cst_244 = arith.constant -3.40282347E+38 : f32
    %976 = vector.shape_cast %139 : vector<16x1xi1> to vector<16x1xi1>
    %977 = vector.broadcast %976 : vector<16x1xi1> to vector<16x128xi1>
    %978 = vector.broadcast %cst_244 : f32 to vector<16x128xf32>
    %979 = arith.select %977, %889, %978 : vector<16x128xi1>, vector<16x128xf32>
    %cst_245 = arith.constant dense<0xFF800000> : vector<128xf32>
    %980 = vector.multi_reduction <maximumf>, %979, %cst_245 [0] : vector<16x128xf32> to vector<128xf32>
    %981 = vector.shape_cast %980 : vector<128xf32> to vector<1x128xf32>
    %982 = arith.cmpi sle, %97, %91 : i32
    %983 = arith.ori %890, %982 : i1
    %cst_246 = arith.constant 0.000000e+00 : f32
    %984 = vector.broadcast %cst_246 : f32 to vector<1x128xf32>
    %985 = arith.select %983, %984, %981 : vector<1x128xf32>
    %c40_i32 = arith.constant 40 : i32
    %986 = vector.broadcast %c40_i32 : i32 to vector<49x1xi32>
    %987 = arith.cmpi eq, %25, %986 : vector<49x1xi32>
    %988 = vector.shape_cast %987 : vector<49x1xi1> to vector<49x1xi1>
    %989 = vector.broadcast %988 : vector<49x1xi1> to vector<49x128xi1>
    %990 = vector.shape_cast %985 : vector<1x128xf32> to vector<1x128xf32>
    %991 = vector.broadcast %990 : vector<1x128xf32> to vector<49x128xf32>
    %992 = arith.select %989, %991, %975 : vector<49x128xi1>, vector<49x128xf32>
    %cst_247 = arith.constant -3.40282347E+38 : f32
    %993 = vector.shape_cast %144 : vector<16x1xi1> to vector<16x1xi1>
    %994 = vector.broadcast %993 : vector<16x1xi1> to vector<16x128xi1>
    %995 = vector.broadcast %cst_247 : f32 to vector<16x128xf32>
    %996 = arith.select %994, %889, %995 : vector<16x128xi1>, vector<16x128xf32>
    %cst_248 = arith.constant dense<0xFF800000> : vector<128xf32>
    %997 = vector.multi_reduction <maximumf>, %996, %cst_248 [0] : vector<16x128xf32> to vector<128xf32>
    %998 = vector.shape_cast %997 : vector<128xf32> to vector<1x128xf32>
    %999 = arith.cmpi sle, %109, %103 : i32
    %1000 = arith.ori %890, %999 : i1
    %cst_249 = arith.constant 0.000000e+00 : f32
    %1001 = vector.broadcast %cst_249 : f32 to vector<1x128xf32>
    %1002 = arith.select %1000, %1001, %998 : vector<1x128xf32>
    %c47_i32 = arith.constant 47 : i32
    %1003 = vector.broadcast %c47_i32 : i32 to vector<49x1xi32>
    %1004 = arith.cmpi eq, %25, %1003 : vector<49x1xi32>
    %1005 = vector.shape_cast %1004 : vector<49x1xi1> to vector<49x1xi1>
    %1006 = vector.broadcast %1005 : vector<49x1xi1> to vector<49x128xi1>
    %1007 = vector.shape_cast %1002 : vector<1x128xf32> to vector<1x128xf32>
    %1008 = vector.broadcast %1007 : vector<1x128xf32> to vector<49x128xf32>
    %1009 = arith.select %1006, %1008, %992 : vector<49x128xi1>, vector<49x128xf32>
    %cst_250 = arith.constant 6.000000e+00 : f32
    %1010 = arith.mulf %cst_250, %22 : f32
    %1011 = math.floor %1010 : f32
    %1012 = arith.fptosi %1011 : f32 to i32
    %1013 = arith.addi %1012, %3 : i32
    %c0_i32_251 = arith.constant 0 : i32
    %1014 = arith.maxsi %1013, %c0_i32_251 : i32
    %c16_i32_252 = arith.constant 16 : i32
    %1015 = arith.minsi %1014, %c16_i32_252 : i32
    %cst_253 = arith.constant 7.000000e+00 : f32
    %1016 = arith.mulf %cst_253, %22 : f32
    %1017 = math.ceil %1016 : f32
    %1018 = arith.fptosi %1017 : f32 to i32
    %1019 = arith.addi %1018, %3 : i32
    %c0_i32_254 = arith.constant 0 : i32
    %1020 = arith.maxsi %1019, %c0_i32_254 : i32
    %c16_i32_255 = arith.constant 16 : i32
    %1021 = arith.minsi %1020, %c16_i32_255 : i32
    %1022 = vector.broadcast %1015 : i32 to vector<16x1xi32>
    %1023 = arith.cmpi sge, %24, %1022 : vector<16x1xi32>
    %1024 = vector.broadcast %1021 : i32 to vector<16x1xi32>
    %1025 = arith.cmpi slt, %24, %1024 : vector<16x1xi32>
    %1026 = arith.andi %1023, %1025 : vector<16x1xi1>
    %c0_256 = arith.constant 0 : index
    %c0_257 = arith.constant 0 : index
    %c0_258 = arith.constant 0 : index
    %c0_259 = arith.constant 0 : index
    %1027 = vector.load %arg2[%c0_256, %c0_257, %c0_258, %c0_259] : memref<1x16x16x128xf32, #tpu.memory_space<vmem>>, vector<1x16x16x128xf32>
    %1028 = vector.shape_cast %1027 : vector<1x16x16x128xf32> to vector<16x16x128xf32>
    %cst_260 = arith.constant -3.40282347E+38 : f32
    %1029 = vector.shape_cast %1026 : vector<16x1xi1> to vector<1x16x1xi1>
    %1030 = vector.broadcast %1029 : vector<1x16x1xi1> to vector<16x16x128xi1>
    %1031 = vector.broadcast %cst_260 : f32 to vector<16x16x128xf32>
    %1032 = arith.select %1030, %1028, %1031 : vector<16x16x128xi1>, vector<16x16x128xf32>
    %cst_261 = arith.constant dense<0xFF800000> : vector<16x128xf32>
    %1033 = vector.multi_reduction <maximumf>, %1032, %cst_261 [1] : vector<16x16x128xf32> to vector<16x128xf32>
    %1034 = arith.cmpi sle, %1021, %1015 : i32
    %cst_262 = arith.constant -3.40282347E+38 : f32
    %1035 = vector.shape_cast %114 : vector<16x1xi1> to vector<16x1xi1>
    %1036 = vector.broadcast %1035 : vector<16x1xi1> to vector<16x128xi1>
    %1037 = vector.broadcast %cst_262 : f32 to vector<16x128xf32>
    %1038 = arith.select %1036, %1033, %1037 : vector<16x128xi1>, vector<16x128xf32>
    %cst_263 = arith.constant dense<0xFF800000> : vector<128xf32>
    %1039 = vector.multi_reduction <maximumf>, %1038, %cst_263 [0] : vector<16x128xf32> to vector<128xf32>
    %1040 = vector.shape_cast %1039 : vector<128xf32> to vector<1x128xf32>
    %1041 = arith.cmpi sle, %37, %31 : i32
    %1042 = arith.ori %1034, %1041 : i1
    %cst_264 = arith.constant 0.000000e+00 : f32
    %1043 = vector.broadcast %cst_264 : f32 to vector<1x128xf32>
    %1044 = arith.select %1042, %1043, %1040 : vector<1x128xf32>
    %c6_i32 = arith.constant 6 : i32
    %1045 = vector.broadcast %c6_i32 : i32 to vector<49x1xi32>
    %1046 = arith.cmpi eq, %25, %1045 : vector<49x1xi32>
    %1047 = vector.shape_cast %1046 : vector<49x1xi1> to vector<49x1xi1>
    %1048 = vector.broadcast %1047 : vector<49x1xi1> to vector<49x128xi1>
    %1049 = vector.shape_cast %1044 : vector<1x128xf32> to vector<1x128xf32>
    %1050 = vector.broadcast %1049 : vector<1x128xf32> to vector<49x128xf32>
    %1051 = arith.select %1048, %1050, %1009 : vector<49x128xi1>, vector<49x128xf32>
    %cst_265 = arith.constant -3.40282347E+38 : f32
    %1052 = vector.shape_cast %119 : vector<16x1xi1> to vector<16x1xi1>
    %1053 = vector.broadcast %1052 : vector<16x1xi1> to vector<16x128xi1>
    %1054 = vector.broadcast %cst_265 : f32 to vector<16x128xf32>
    %1055 = arith.select %1053, %1033, %1054 : vector<16x128xi1>, vector<16x128xf32>
    %cst_266 = arith.constant dense<0xFF800000> : vector<128xf32>
    %1056 = vector.multi_reduction <maximumf>, %1055, %cst_266 [0] : vector<16x128xf32> to vector<128xf32>
    %1057 = vector.shape_cast %1056 : vector<128xf32> to vector<1x128xf32>
    %1058 = arith.cmpi sle, %49, %43 : i32
    %1059 = arith.ori %1034, %1058 : i1
    %cst_267 = arith.constant 0.000000e+00 : f32
    %1060 = vector.broadcast %cst_267 : f32 to vector<1x128xf32>
    %1061 = arith.select %1059, %1060, %1057 : vector<1x128xf32>
    %c13_i32 = arith.constant 13 : i32
    %1062 = vector.broadcast %c13_i32 : i32 to vector<49x1xi32>
    %1063 = arith.cmpi eq, %25, %1062 : vector<49x1xi32>
    %1064 = vector.shape_cast %1063 : vector<49x1xi1> to vector<49x1xi1>
    %1065 = vector.broadcast %1064 : vector<49x1xi1> to vector<49x128xi1>
    %1066 = vector.shape_cast %1061 : vector<1x128xf32> to vector<1x128xf32>
    %1067 = vector.broadcast %1066 : vector<1x128xf32> to vector<49x128xf32>
    %1068 = arith.select %1065, %1067, %1051 : vector<49x128xi1>, vector<49x128xf32>
    %cst_268 = arith.constant -3.40282347E+38 : f32
    %1069 = vector.shape_cast %124 : vector<16x1xi1> to vector<16x1xi1>
    %1070 = vector.broadcast %1069 : vector<16x1xi1> to vector<16x128xi1>
    %1071 = vector.broadcast %cst_268 : f32 to vector<16x128xf32>
    %1072 = arith.select %1070, %1033, %1071 : vector<16x128xi1>, vector<16x128xf32>
    %cst_269 = arith.constant dense<0xFF800000> : vector<128xf32>
    %1073 = vector.multi_reduction <maximumf>, %1072, %cst_269 [0] : vector<16x128xf32> to vector<128xf32>
    %1074 = vector.shape_cast %1073 : vector<128xf32> to vector<1x128xf32>
    %1075 = arith.cmpi sle, %61, %55 : i32
    %1076 = arith.ori %1034, %1075 : i1
    %cst_270 = arith.constant 0.000000e+00 : f32
    %1077 = vector.broadcast %cst_270 : f32 to vector<1x128xf32>
    %1078 = arith.select %1076, %1077, %1074 : vector<1x128xf32>
    %c20_i32 = arith.constant 20 : i32
    %1079 = vector.broadcast %c20_i32 : i32 to vector<49x1xi32>
    %1080 = arith.cmpi eq, %25, %1079 : vector<49x1xi32>
    %1081 = vector.shape_cast %1080 : vector<49x1xi1> to vector<49x1xi1>
    %1082 = vector.broadcast %1081 : vector<49x1xi1> to vector<49x128xi1>
    %1083 = vector.shape_cast %1078 : vector<1x128xf32> to vector<1x128xf32>
    %1084 = vector.broadcast %1083 : vector<1x128xf32> to vector<49x128xf32>
    %1085 = arith.select %1082, %1084, %1068 : vector<49x128xi1>, vector<49x128xf32>
    %cst_271 = arith.constant -3.40282347E+38 : f32
    %1086 = vector.shape_cast %129 : vector<16x1xi1> to vector<16x1xi1>
    %1087 = vector.broadcast %1086 : vector<16x1xi1> to vector<16x128xi1>
    %1088 = vector.broadcast %cst_271 : f32 to vector<16x128xf32>
    %1089 = arith.select %1087, %1033, %1088 : vector<16x128xi1>, vector<16x128xf32>
    %cst_272 = arith.constant dense<0xFF800000> : vector<128xf32>
    %1090 = vector.multi_reduction <maximumf>, %1089, %cst_272 [0] : vector<16x128xf32> to vector<128xf32>
    %1091 = vector.shape_cast %1090 : vector<128xf32> to vector<1x128xf32>
    %1092 = arith.cmpi sle, %73, %67 : i32
    %1093 = arith.ori %1034, %1092 : i1
    %cst_273 = arith.constant 0.000000e+00 : f32
    %1094 = vector.broadcast %cst_273 : f32 to vector<1x128xf32>
    %1095 = arith.select %1093, %1094, %1091 : vector<1x128xf32>
    %c27_i32 = arith.constant 27 : i32
    %1096 = vector.broadcast %c27_i32 : i32 to vector<49x1xi32>
    %1097 = arith.cmpi eq, %25, %1096 : vector<49x1xi32>
    %1098 = vector.shape_cast %1097 : vector<49x1xi1> to vector<49x1xi1>
    %1099 = vector.broadcast %1098 : vector<49x1xi1> to vector<49x128xi1>
    %1100 = vector.shape_cast %1095 : vector<1x128xf32> to vector<1x128xf32>
    %1101 = vector.broadcast %1100 : vector<1x128xf32> to vector<49x128xf32>
    %1102 = arith.select %1099, %1101, %1085 : vector<49x128xi1>, vector<49x128xf32>
    %cst_274 = arith.constant -3.40282347E+38 : f32
    %1103 = vector.shape_cast %134 : vector<16x1xi1> to vector<16x1xi1>
    %1104 = vector.broadcast %1103 : vector<16x1xi1> to vector<16x128xi1>
    %1105 = vector.broadcast %cst_274 : f32 to vector<16x128xf32>
    %1106 = arith.select %1104, %1033, %1105 : vector<16x128xi1>, vector<16x128xf32>
    %cst_275 = arith.constant dense<0xFF800000> : vector<128xf32>
    %1107 = vector.multi_reduction <maximumf>, %1106, %cst_275 [0] : vector<16x128xf32> to vector<128xf32>
    %1108 = vector.shape_cast %1107 : vector<128xf32> to vector<1x128xf32>
    %1109 = arith.cmpi sle, %85, %79 : i32
    %1110 = arith.ori %1034, %1109 : i1
    %cst_276 = arith.constant 0.000000e+00 : f32
    %1111 = vector.broadcast %cst_276 : f32 to vector<1x128xf32>
    %1112 = arith.select %1110, %1111, %1108 : vector<1x128xf32>
    %c34_i32 = arith.constant 34 : i32
    %1113 = vector.broadcast %c34_i32 : i32 to vector<49x1xi32>
    %1114 = arith.cmpi eq, %25, %1113 : vector<49x1xi32>
    %1115 = vector.shape_cast %1114 : vector<49x1xi1> to vector<49x1xi1>
    %1116 = vector.broadcast %1115 : vector<49x1xi1> to vector<49x128xi1>
    %1117 = vector.shape_cast %1112 : vector<1x128xf32> to vector<1x128xf32>
    %1118 = vector.broadcast %1117 : vector<1x128xf32> to vector<49x128xf32>
    %1119 = arith.select %1116, %1118, %1102 : vector<49x128xi1>, vector<49x128xf32>
    %cst_277 = arith.constant -3.40282347E+38 : f32
    %1120 = vector.shape_cast %139 : vector<16x1xi1> to vector<16x1xi1>
    %1121 = vector.broadcast %1120 : vector<16x1xi1> to vector<16x128xi1>
    %1122 = vector.broadcast %cst_277 : f32 to vector<16x128xf32>
    %1123 = arith.select %1121, %1033, %1122 : vector<16x128xi1>, vector<16x128xf32>
    %cst_278 = arith.constant dense<0xFF800000> : vector<128xf32>
    %1124 = vector.multi_reduction <maximumf>, %1123, %cst_278 [0] : vector<16x128xf32> to vector<128xf32>
    %1125 = vector.shape_cast %1124 : vector<128xf32> to vector<1x128xf32>
    %1126 = arith.cmpi sle, %97, %91 : i32
    %1127 = arith.ori %1034, %1126 : i1
    %cst_279 = arith.constant 0.000000e+00 : f32
    %1128 = vector.broadcast %cst_279 : f32 to vector<1x128xf32>
    %1129 = arith.select %1127, %1128, %1125 : vector<1x128xf32>
    %c41_i32 = arith.constant 41 : i32
    %1130 = vector.broadcast %c41_i32 : i32 to vector<49x1xi32>
    %1131 = arith.cmpi eq, %25, %1130 : vector<49x1xi32>
    %1132 = vector.shape_cast %1131 : vector<49x1xi1> to vector<49x1xi1>
    %1133 = vector.broadcast %1132 : vector<49x1xi1> to vector<49x128xi1>
    %1134 = vector.shape_cast %1129 : vector<1x128xf32> to vector<1x128xf32>
    %1135 = vector.broadcast %1134 : vector<1x128xf32> to vector<49x128xf32>
    %1136 = arith.select %1133, %1135, %1119 : vector<49x128xi1>, vector<49x128xf32>
    %cst_280 = arith.constant -3.40282347E+38 : f32
    %1137 = vector.shape_cast %144 : vector<16x1xi1> to vector<16x1xi1>
    %1138 = vector.broadcast %1137 : vector<16x1xi1> to vector<16x128xi1>
    %1139 = vector.broadcast %cst_280 : f32 to vector<16x128xf32>
    %1140 = arith.select %1138, %1033, %1139 : vector<16x128xi1>, vector<16x128xf32>
    %cst_281 = arith.constant dense<0xFF800000> : vector<128xf32>
    %1141 = vector.multi_reduction <maximumf>, %1140, %cst_281 [0] : vector<16x128xf32> to vector<128xf32>
    %1142 = vector.shape_cast %1141 : vector<128xf32> to vector<1x128xf32>
    %1143 = arith.cmpi sle, %109, %103 : i32
    %1144 = arith.ori %1034, %1143 : i1
    %cst_282 = arith.constant 0.000000e+00 : f32
    %1145 = vector.broadcast %cst_282 : f32 to vector<1x128xf32>
    %1146 = arith.select %1144, %1145, %1142 : vector<1x128xf32>
    %c48_i32 = arith.constant 48 : i32
    %1147 = vector.broadcast %c48_i32 : i32 to vector<49x1xi32>
    %1148 = arith.cmpi eq, %25, %1147 : vector<49x1xi32>
    %1149 = vector.shape_cast %1148 : vector<49x1xi1> to vector<49x1xi1>
    %1150 = vector.broadcast %1149 : vector<49x1xi1> to vector<49x128xi1>
    %1151 = vector.shape_cast %1146 : vector<1x128xf32> to vector<1x128xf32>
    %1152 = vector.broadcast %1151 : vector<1x128xf32> to vector<49x128xf32>
    %1153 = arith.select %1150, %1152, %1136 : vector<49x128xi1>, vector<49x128xf32>
    %c0_283 = arith.constant 0 : index
    %c0_284 = arith.constant 0 : index
    %c0_285 = arith.constant 0 : index
    %1154 = vector.load %arg3[%c0_283, %c0_284, %c0_285] : memref<1x49x128xf32, #tpu.memory_space<vmem>>, vector<1x49x128xf32>
    %1155 = vector.shape_cast %1154 : vector<1x49x128xf32> to vector<49x128xf32>
    %1156 = vector.shape_cast %1153 : vector<49x128xf32> to vector<1x49x128xf32>
    tpu.vector_store %arg3[%c0_283, %c0_284, %c0_285], %1156 {strides = array<i32>} : memref<1x49x128xf32, #tpu.memory_space<vmem>>, vector<1x49x128xf32>,
    return
  }
  func.func @transform_0(%arg0: i32, %arg1: memref<15xi32, #tpu.memory_space<smem>>) -> (i32, i32, i32, i32) {
    %c5_i32 = arith.constant 5 : i32
    %0 = arith.muli %c5_i32, %arg0 : i32
    %1 = arith.index_cast %0 : i32 to index
    %2 = memref.load %arg1[%1] : memref<15xi32, #tpu.memory_space<smem>>
    %c0_i32 = arith.constant 0 : i32
    %c0_i32_0 = arith.constant 0 : i32
    %c0_i32_1 = arith.constant 0 : i32
    %c0_i32_2 = arith.constant 0 : i32
    return %2, %c0_i32, %c0_i32_0, %c0_i32_1 : i32, i32, i32, i32
  }
  func.func @transform_1(%arg0: i32, %arg1: memref<15xi32, #tpu.memory_space<smem>>) -> (i32, i32, i32) {
    %c0_i32 = arith.constant 0 : i32
    %c0_i32_0 = arith.constant 0 : i32
    %c0_i32_1 = arith.constant 0 : i32
    return %arg0, %c0_i32, %c0_i32_0 : i32, i32, i32
  }
}

</mosaic_0001>

<bundles_post_ra>
// kernel: roi_pool.1
= control target key start
LH: loop header
LB: loop body
LE: loop exit
PB: predicated region body
PF: predicated region fallthrough
CT: control target
= control target key end

     0   :  { %s4364_s12 = smov [#allocation3]   ;;  %s8355_s0 = inlined_call_operand.vmem [shape: s32[15], index: 0, kind: input, shape index: {}]   ;;  %s8356_s1 = inlined_call_operand.vmem [shape: f32[2,16,16,128], index: 1, kind: input, shape index: {}]   ;;  %s8357_s2 = inlined_call_operand.vmem [shape: f32[3,49,128], index: 2, kind: output, shape index: {}]  }
   0x1   :  { %s8_s11 = sshll.u32 %s8355_s0, 4  ;;  %s9_s11 = int_to_ptr.vmem [resolvable:$true] %s8_s11 }
   0x2   :  { %11 = dma.vmem_to_smem %s9_s11, 16, %s4364_s12, [#allocation2] }
   0x3   :  { %4358 = dma.done.wait [#allocation2], 16 }
   0x4   :  { %4359 = vsyncadd [#allocation2], 4294967280 }
   0x5   :  { %14 = sfence }
   0x6   :  { %s4384_s13 = smov 0  }
   0x7 LB: > { %s4390_s14 = sadd.s32 4294967295, %s4362_s13   ;;  %p3972_p0 = scmp.ge.s32.totalorder %s4362_s13, 1  ;;  %s4362_s13 = sphi %s4384_s13, %s20_s13  }
   0x8   : > { %p104_p1 = scmp.lt.s32.totalorder %s4362_s13, 4 }
   0xa   : > { %p105_p2 = pnand %p3972_p0, %p104_p1 }
   0xc   : > { %108 = sbr.rel (%p105_p2) target bundleno = 642 (0x282), region = 24 }
  0x11   : > { %v4365_v0 = vmov 7.0   ;;  %s126_s0 = smul.u32 5, %s4390_s14  ;;  %v177_v7 = vlaneseq  ;;  %vm8370_vm7 = vcmask 1041409   ;;  %vm8369_vm8 = vcmask 1042434  }
  0x12   : > { %4244 = vrcp.f32 %v4365_v0  ;;  %vm8368_vm9 = vcmask 1043459   ;;  %vm8367_vm10 = vcmask 1044484   ;;  %vm8365_vm11 = vcmask 1045509  }
  0x13   : > { %s143_s15 = sadd.s32 2, %s126_s0  ;;  %s147_s16 = sadd.s32 4, %s126_s0  ;;  %v4453_v8 = vshrl.u32 %v177_v7, 7  ;;  %vm8364_vm12 = vcmask 1046534   ;;  %vm8366_vm15 = vcmask 1047559  }
  0x14   : > { %s4395_s17 = sld [smem:[#allocation3 + %s143_s15]]  ;;  %s141_s21 = sadd.s32 1, %s126_s0 }
  0x15   : > { %s148_s18 = sld [smem:[#allocation3 + %s147_s16]]  ;;  %s145_s22 = sadd.s32 3, %s126_s0  ;;  %8495 = vst [vmem:[#allocation5_spill] sm:$0xff] %v4453_v8  ;;  %v4458_v9 = vadd.s32 8, %v4453_v8 }
  0x16   : > { %s4398_s24 = sld [smem:[#allocation3 + %s141_s21]] }
  0x17   : > { %s146_s26 = sld [smem:[#allocation3 + %s145_s22]]  ;;  %8496 = vst [vmem:[#allocation6_spill] sm:$0xff] %v4458_v9 }
  0x18   : > { %v4245_v1 = vpop.eup %4244  ;;  %s127_s28 = sld [smem:[#allocation3 + %s126_s0]] }
  0x19   : > { %v159_v2 = vmul.f32 7.0, %v4245_v1  ;;  %vm163_vm0 = vweird.f32 %v4245_v1 }
  0x1b   : > { %v160_v3 = vsub.f32 1.0, %v159_v2  ;;  %s153_s19 = ssub.s32 %s148_s18, %s4395_s17 }
  0x1c   : > { %s154_s20 = sadd.s32 1, %s153_s19 }
  0x1d   : > { %v161_v4 = vmul.f32 %v4245_v1, %v160_v3  ;;  %p155_p3 = scmp.gt.s32.totalorder %s154_s20, 1  ;;  %s149_s3 = ssub.s32 %s146_s26, %s4398_s24 }
  0x1e   : > { %p128_p4 = scmp.lt.s32.totalorder %s127_s28, 1  ;;  %s150_s6 = sadd.s32 1, %s149_s3 }
  0x1f   : > { %v162_v5 = vadd.f32 %v4245_v1, %v161_v4  ;;  %s9193_s20 = smov (!%p155_p3, %s154_s20), 1  ;;  %p151_p5 = scmp.gt.s32.totalorder %s150_s6, 1 }
  0x20   : > { %s157_s23 = scvt.s32.f32 %s9193_s20  ;;  %s9195_s28 = smov (!%p128_p4, %s127_s28), 1 }
  0x21   : > { %v164_v6 = vsel %vm163_vm0, %v4245_v1, %v162_v5  ;;  %s9197_s6 = smov (!%p151_p5, %s150_s6), 1 }
  0x22   : > { %4176 = vpush %v164_v6  ;;  %s167_s21 = scvt.s32.f32 %s9197_s6 }
  0x53   : > { %s4400_s25 = spop %4176 }
  0x54   : > { %s4403_s27 = smul.f32 %s4400_s25, %s157_s23 }
  0x55   : > { %s4423_s3 = smul.f32 %s4400_s25, %s167_s21 }
  0x56   : > { %s185_s29 = smul.f32 0.0, %s4403_s27  ;;  %s193_s30 = sceil.f32 %s4403_s27 }
  0x57   : > { %s4181_s5 = scvt.f32.s32 %s193_s30  ;;  %s200_s9 = sfloor.f32 %s4403_s27 }
  0x58   : > { %s186_s4 = sfloor.f32 %s185_s29  ;;  %s4183_s11 = scvt.f32.s32 %s200_s9 }
  0x59   : > { %s4179_s7 = scvt.f32.s32 %s186_s4  ;;  %s195_s8 = sadd.s32 %s4181_s5, %s4395_s17 }
  0x5a   : > { %p196_p6 = scmp.gt.s32.totalorder %s195_s8, 0  ;;  %s207_s0 = smul.f32 2.0, %s4403_s27 }
  0x5b   : > { %s188_s10 = sadd.s32 %s4179_s7, %s4395_s17  ;;  %p3981_p8 = scmp.lt.s32.totalorder %s195_s8, 16 }
  0x5c   : > { %p189_p7 = scmp.gt.s32.totalorder %s188_s10, 0  ;;  %s202_s15 = sadd.s32 %s4183_s11, %s4395_s17 }
  0x5d   : > { %s197_s12 = scalar_select %p196_p6, %s195_s8, 0 }
  0x5e   : > { %s190_s16 = scalar_select %p189_p7, %s188_s10, 0 }
  0x5f   : > { %s9199_s12 = smov (!%p3981_p8, %s197_s12), 16  ;;  %p3976_p9 = scmp.lt.s32.totalorder %s188_s10, 16 }
  0x60   : > { %s208_s18 = sceil.f32 %s207_s0  ;;  %p203_p10 = scmp.gt.s32.totalorder %s202_s15, 0 }
  0x61   : > { %s215_s19 = sfloor.f32 %s207_s0  ;;  %s9201_s16 = smov (!%p3976_p9, %s190_s16), 16 }
  0x62   : > { %s4185_s20 = scvt.f32.s32 %s208_s18  ;;  %s4187_s22 = scvt.f32.s32 %s215_s19 }
  0x63   : > { %s204_s23 = scalar_select %p203_p10, %s202_s15, 0 }
  0x64   : > { %s222_s26 = smul.f32 3.0, %s4403_s27  ;;  %s210_s29 = sadd.s32 %s4185_s20, %s4395_s17 }
  0x65   : > { %s217_s30 = sadd.s32 %s4187_s22, %s4395_s17  ;;  %p3986_p11 = scmp.lt.s32.totalorder %s202_s15, 16 }
  0x66   : > { %p211_p12 = scmp.gt.s32.totalorder %s210_s29, 0  ;;  %s223_s4 = sceil.f32 %s222_s26 }
  0x67   : > { %s4118_s5 = sshll.u32 %s9195_s28, 8  ;;  %p218_p13 = scmp.gt.s32.totalorder %s217_s30, 0 }
  0x68   : > { %s9203_s23 = smov (!%p3986_p11, %s204_s23), 16  ;;  %s4189_s7 = scvt.f32.s32 %s223_s4 }
  0x69   : > { %s354_s6 = sceil.f32 %s4423_s3  ;;  %p3991_p0 = scmp.lt.s32.totalorder %s210_s29, 16 }
  0x6a   : > { %s212_s8 = scalar_select %p211_p12, %s210_s29, 0 }
  0x6b   : > { %s219_s9 = scalar_select %p218_p13, %s217_s30, 0 }
  0x6c   : > { %s230_s10 = sfloor.f32 %s222_s26  ;;  %s4430_s25 = sadd.s32 %s4189_s7, %s4395_s17 }
  0x6d   : > { %s4209_s11 = scvt.f32.s32 %s354_s6  ;;  %s9205_s8 = smov (!%p3991_p0, %s212_s8), 16 }
  0x6e   : > { %p3996_p1 = scmp.lt.s32.totalorder %s217_s30, 16  ;;  %s4191_s28 = scvt.f32.s32 %s230_s10 }
  0x6f   : > { %p226_p2 = scmp.gt.s32.totalorder %s4430_s25, 0  ;;  %s346_s0 = smul.f32 0.0, %s4423_s3 }
  0x70   : > { %s9207_s9 = smov (!%p3996_p1, %s219_s9), 16  ;;  %s356_s18 = sadd.s32 %s4209_s11, %s4398_s24 }
  0x71   : > { %s347_s15 = sfloor.f32 %s346_s0  ;;  %s4440_s19 = sadd.s32 %s4191_s28, %s4395_s17 }
  0x72   : > { %s4207_s20 = scvt.f32.s32 %s347_s15  ;;  %s4448_s29 = scalar_lea.vmem %s8356_s1, %s4118_s5 }
  0x73   : > { %s4443_s21 = scalar_select %p226_p2, %s4430_s25, 0  ;;  %v4465_v11 = vld [vmem:[%s4448_s29] sm:$0xff]  ;;  %v4468_v12 = vld [vmem:[%s4448_s29 + $0x10] sm:$0xff]  ;;  %v4483_v16 = vld [vmem:[%s4448_s29 + $0x8] sm:$0xff] }
  0x74   : > { %s349_s30 = sadd.s32 %s4207_s20, %s4398_s24  ;;  %s237_s4 = smul.f32 4.0, %s4403_s27  ;;  %v4486_v17 = vld [vmem:[%s4448_s29 + $0x18] sm:$0xff]  ;;  %v4489_v18 = vld [vmem:[%s4448_s29 + $0x20] sm:$0xff]  ;;  %v4492_v19 = vld [vmem:[%s4448_s29 + $0x28] sm:$0xff] }
  0x75   : > { %p357_p3 = scmp.gt.s32.totalorder %s356_s18, 0  ;;  %p233_p4 = scmp.gt.s32.totalorder %s4440_s19, 0  ;;  %v4501_v20 = vld [vmem:[%s4448_s29 + $0x30] sm:$0xff]  ;;  %v4504_v21 = vld [vmem:[%s4448_s29 + $0x38] sm:$0xff]  ;;  %v4507_v22 = vld [vmem:[%s4448_s29 + $0x40] sm:$0xff] }
  0x76   : > { %p350_p5 = scmp.gt.s32.totalorder %s349_s30, 0  ;;  %p4046_p6 = scmp.lt.s32.totalorder %s349_s30, 16  ;;  %v4522_v24 = vld [vmem:[%s4448_s29 + $0x48] sm:$0xff]  ;;  %v4525_v25 = vld [vmem:[%s4448_s29 + $0x50] sm:$0xff]  ;;  %v4528_v26 = vld [vmem:[%s4448_s29 + $0x58] sm:$0xff] }
  0x77   : > { %p4051_p7 = scmp.lt.s32.totalorder %s356_s18, 16  ;;  %s9211_s18 = smov (!%p357_p3, %s356_s18), 0  ;;  %v4539_v28 = vld [vmem:[%s4448_s29 + $0x60] sm:$0xff]  ;;  %v4542_v29 = vld [vmem:[%s4448_s29 + $0x68] sm:$0xff]  ;;  %v4546_v30 = vld [vmem:[%s4448_s29 + $0x70] sm:$0xff] }
  0x78   : > { %s9209_s30 = smov (!%p350_p5, %s349_s30), 0  ;;  %p4001_p8 = scmp.lt.s32.totalorder %s4430_s25, 16  ;;  %v4549_v31 = vld [vmem:[%s4448_s29 + $0x78] sm:$0xff]  ;;  %v4595_v44 = vld [vmem:[%s4448_s29 + $0x80] sm:$0xff]  ;;  %v4605_v47 = vld [vmem:[%s4448_s29 + $0x88] sm:$0xff] }
  0x79   : > { %s9213_s30 = smov (!%p4046_p6, %s9209_s30), 16  ;;  %s9215_s18 = smov (!%p4051_p7, %s9211_s18), 16  ;;  %v4608_v48 = vld [vmem:[%s4448_s29 + $0x90] sm:$0xff]  ;;  %v4618_v53 = vld [vmem:[%s4448_s29 + $0x98] sm:$0xff]  ;;  %v4621_v54 = vld [vmem:[%s4448_s29 + $0xa0] sm:$0xff] }
  0x7a   : > { %s234_s5 = scalar_select %p233_p4, %s4440_s19, 0  ;;  %v361_v10 = vstv %s9213_s30  ;;  %v364_v15 = vstv %s9215_s18  ;;  %v4655_v13 = vld [vmem:[%s4448_s29 + $0xb0] sm:$0xff]  ;;  %v4658_v14 = vld [vmem:[%s4448_s29 + $0xb8] sm:$0xff] }
  0x7b   : > { %vm4472_vm1 = vcmp.ge.s32.totalorder %v4453_v8, %v361_v10  ;;  %vm4477_vm2 = vcmp.ge.s32.totalorder %v4458_v9, %v361_v10  ;;  %p4006_p9 = scmp.lt.s32.totalorder %s4440_s19, 16  ;;  %s4497_s7 = sceil.f32 %s237_s4  ;;  %vm365_vm3 = vcmp.lt.s32.totalorder %v4453_v8, %v364_v15  ;;  %vm366_vm4 = vcmp.lt.s32.totalorder %v4458_v9, %v364_v15  ;;  %v4652_v10 = vld [vmem:[%s4448_s29 + $0xa8] sm:$0xff] }
  0x7c   : > { %s9217_s21 = smov (!%p4001_p8, %s4443_s21), 16  ;;  %vm4517_vm5 = vmand %vm4472_vm1, %vm365_vm3  ;;  %s4193_s6 = scvt.f32.s32 %s4497_s7 }
  0x7d   : > { %s9219_s5 = smov (!%p4006_p9, %s234_s5), 16  ;;  %vm4534_vm6 = vmand %vm4477_vm2, %vm366_vm4  ;;  %v405_v32 = vsel %vm4517_vm5, %v4465_v11, -3.4028235e+38  ;;  %v407_v33 = vsel %vm4517_vm5, %v4468_v12, -3.4028235e+38  ;;  %s4571_s10 = sfloor.f32 %s237_s4 }
  0x7e   : > { %v409_v34 = vsel %vm4517_vm5, %v4489_v18, -3.4028235e+38  ;;  %v406_v35 = vsel %vm4534_vm6, %v4483_v16, -3.4028235e+38  ;;  %v408_v36 = vsel %vm4534_vm6, %v4486_v17, -3.4028235e+38  ;;  %s4592_s25 = sadd.s32 %s4193_s6, %s4395_s17  ;;  %s4195_s11 = scvt.f32.s32 %s4571_s10 }
  0x7f   : > { %v410_v37 = vsel %vm4534_vm6, %v4492_v19, -3.4028235e+38  ;;  %v411_v38 = vsel %vm4517_vm5, %v4501_v20, -3.4028235e+38  ;;  %v412_v39 = vsel %vm4534_vm6, %v4504_v21, -3.4028235e+38  ;;  %v437_v51 = vmax.f32 %v405_v32, %v406_v35 }
  0x80   : > { %v413_v40 = vsel %vm4517_vm5, %v4507_v22, -3.4028235e+38  ;;  %v414_v41 = vsel %vm4534_vm6, %v4522_v24, -3.4028235e+38  ;;  %v415_v42 = vsel %vm4517_vm5, %v4525_v25, -3.4028235e+38  ;;  %v444_v52 = vmax.f32 %v407_v33, %v408_v36  ;;  %s4634_s0 = sadd.s32 %s4195_s11, %s4395_s17 }
  0x81   : > { %v416_v43 = vsel %vm4534_vm6, %v4528_v26, -3.4028235e+38  ;;  %v417_v45 = vsel %vm4517_vm5, %v4539_v28, -3.4028235e+38  ;;  %v418_v46 = vsel %vm4534_vm6, %v4542_v29, -3.4028235e+38  ;;  %v451_v55 = vmax.f32 %v409_v34, %v410_v37 }
  0x82   : > { %v419_v49 = vsel %vm4517_vm5, %v4546_v30, -3.4028235e+38  ;;  %v420_v50 = vsel %vm4534_vm6, %v4549_v31, -3.4028235e+38  ;;  %s252_s28 = smul.f32 5.0, %s4403_s27  ;;  %v458_v56 = vmax.f32 %v411_v38, %v412_v39  ;;  %v465_v57 = vmax.f32 %v413_v40, %v414_v41  ;;  %p241_p10 = scmp.gt.s32.totalorder %s4592_s25, 0 }
  0x83   : > { %v472_v58 = vmax.f32 %v415_v42, %v416_v43  ;;  %v479_v59 = vmax.f32 %v417_v45, %v418_v46  ;;  %v486_v63 = vmax.f32 %v419_v49, %v420_v50  ;;  %v438_v2 = vrot.slane %v437_v51, 4  ;;  %p248_p11 = scmp.gt.s32.totalorder %s4634_s0, 0  ;;  %v4666_v35 = vld [vmem:[%s4448_s29 + $0xc0] sm:$0xff]  ;;  %v4669_v36 = vld [vmem:[%s4448_s29 + $0xc8] sm:$0xff]  ;;  %v4672_v37 = vld [vmem:[%s4448_s29 + $0xd0] sm:$0xff]  ;;  %s267_s6 = smul.f32 6.0, %s4403_s27 }
  0x84   : > { %v445_v3 = vrot.slane %v444_v52, 4  ;;  %s4644_s15 = sceil.f32 %s252_s28  ;;  %v452_v4 = vrot.slane %v451_v55, 4  ;;  %v459_v5 = vrot.slane %v458_v56, 4  ;;  %v466_v6 = vrot.slane %v465_v57, 4  ;;  %s4663_s20 = sfloor.f32 %s252_s28  ;;  %8505 = vst [vmem:[#allocation7_spill] sm:$0xff] %v4672_v37  ;;  %v4676_v42 = vld [vmem:[%s4448_s29 + $0xd8] sm:$0xff] }
  0x85   : > { %v473_v7 = vrot.slane %v472_v58, 4  ;;  %s4649_s19 = scalar_select %p241_p10, %s4592_s25, 0  ;;  %v439_v15 = vmax.f32 %v437_v51, %v438_v2  ;;  %v480_v33 = vrot.slane %v479_v59, 4  ;;  %v487_v34 = vrot.slane %v486_v63, 4  ;;  %8506 = vst [vmem:[#allocation8_spill] sm:$0xff] %v4676_v42  ;;  %v4679_v43 = vld [vmem:[%s4448_s29 + $0xe0] sm:$0xff] }
  0x86   : > { %v446_v32 = vmax.f32 %v444_v52, %v445_v3  ;;  %v453_v38 = vmax.f32 %v451_v55, %v452_v4  ;;  %v460_v39 = vmax.f32 %v458_v56, %v459_v5  ;;  %v467_v40 = vmax.f32 %v465_v57, %v466_v6  ;;  %s4197_s22 = scvt.f32.s32 %s4644_s15  ;;  %8507 = vst [vmem:[#allocation9_spill] sm:$0xff] %v4679_v43  ;;  %v4682_v45 = vld [vmem:[%s4448_s29 + $0xe8] sm:$0xff]  ;;  %s4199_s26 = scvt.f32.s32 %s4663_s20  ;;  %v4703_v3 = vld [vmem:[%s4448_s29 + $0xf0] sm:$0xff]  ;;  %v4706_v4 = vld [vmem:[%s4448_s29 + $0xf8] sm:$0xff] }
  0x87   : > { %v474_v41 = vmax.f32 %v472_v58, %v473_v7  ;;  %8508 = vst [vmem:[#allocation10_spill] sm:$0xff] %v4682_v45  ;;  %v440_v46 = vrot.slane %v439_v15, 2  ;;  %v481_v50 = vmax.f32 %v479_v59, %v480_v33  ;;  %v488_v51 = vmax.f32 %v486_v63, %v487_v34  ;;  %s4700_s4 = scalar_select %p248_p11, %s4634_s0, 0 }
  0x88   : > { %v447_v49 = vrot.slane %v446_v32, 2  ;;  %v426_v52 = vsel %vm4534_vm6, %v4652_v10, -3.4028235e+38  ;;  %v427_v55 = vsel %vm4517_vm5, %v4655_v13, -3.4028235e+38  ;;  %v454_v56 = vrot.slane %v453_v38, 2  ;;  %s4713_s7 = sadd.s32 %s4197_s22, %s4395_s17  ;;  %s4737_s10 = sadd.s32 %s4199_s26, %s4395_s17 }
  0x89   : > { %v461_v57 = vrot.slane %v460_v39, 2  ;;  %v428_v58 = vsel %vm4534_vm6, %v4658_v14, -3.4028235e+38  ;;  %v429_v59 = vsel %vm4517_vm5, %v4666_v35, -3.4028235e+38  ;;  %v468_v63 = vrot.slane %v467_v40, 2 }
  0x8a   : > { %v475_v2 = vrot.slane %v474_v41, 2  ;;  %8509 = vst [vmem:[#allocation11_spill] sm:$0xff] %v4703_v3  ;;  %v4708_v5 = vmax.f32 %v439_v15, %v440_v46  ;;  %v4710_v6 = vmax.f32 %v446_v32, %v447_v49  ;;  %v482_v7 = vrot.slane %v481_v50, 2  ;;  %p4011_p12 = scmp.lt.s32.totalorder %s4592_s25, 16  ;;  %p4016_p13 = scmp.lt.s32.totalorder %s4634_s0, 16 }
  0x8b   : > { %8510 = vst [vmem:[#allocation12_spill] sm:$0xff] %v4706_v4  ;;  %v489_v33 = vrot.slane %v488_v51, 2  ;;  %v430_v34 = vsel %vm4534_vm6, %v4669_v36, -3.4028235e+38  ;;  %v431_v1 = vsel %vm4517_vm5, %v4672_v37, -3.4028235e+38  ;;  %v4722_v62 = vmax.f32 %v453_v38, %v454_v56  ;;  %s4781_s25 = sceil.f32 %s267_s6  ;;  %s4800_s0 = sfloor.f32 %s267_s6 }
  0x8c   : > { %v4724_v15 = vmax.f32 %v460_v39, %v461_v57  ;;  %v432_v32 = vsel %vm4534_vm6, %v4676_v42, -3.4028235e+38  ;;  %v433_v46 = vsel %vm4517_vm5, %v4679_v43, -3.4028235e+38  ;;  %v434_v49 = vsel %vm4534_vm6, %v4682_v45, -3.4028235e+38  ;;  %s4201_s28 = scvt.f32.s32 %s4781_s25  ;;  %s4203_s22 = scvt.f32.s32 %s4800_s0 }
  0x8d   : > { %v435_v38 = vsel %vm4517_vm5, %v4703_v3, -3.4028235e+38  ;;  %v436_v39 = vsel %vm4534_vm6, %v4706_v4, -3.4028235e+38  ;;  %v4745_v56 = vmax.f32 %v467_v40, %v468_v63  ;;  %v4747_v57 = vmax.f32 %v474_v41, %v475_v2  ;;  %p256_p0 = scmp.gt.s32.totalorder %s4713_s7, 0  ;;  %s9221_s19 = smov (!%p4011_p12, %s4649_s19), 16 }
  0x8e   : > { %v442_v0 = vrot.slane %v4708_v5, 1  ;;  %v4753_v61 = vmax.f32 %v481_v50, %v482_v7  ;;  %v4755_v3 = vmax.f32 %v488_v51, %v489_v33  ;;  %v456_v40 = vrot.slane %v4722_v62, 1  ;;  %p263_p1 = scmp.gt.s32.totalorder %s4737_s10, 0  ;;  %s9223_s4 = smov (!%p4016_p13, %s4700_s4), 16 }
  0x8f   : > { %v8511_v63 = vsel %vm4534_vm6, %v4605_v47, -3.4028235e+38  ;;  %v8512_v2 = vsel %vm4517_vm5, %v4595_v44, -3.4028235e+38  ;;  %v8513_v51 = vsel %vm4534_vm6, %v4618_v53, -3.4028235e+38  ;;  %v521_v27 = vmax.f32 %v429_v59, %v430_v34  ;;  %s4811_s26 = sadd.s32 %s4201_s28, %s4395_s17  ;;  %p5005_p12 = scmp.le.s32.totalorder %s9215_s18, %s9213_s30 }
  0x90   : > { %v493_v50 = vmax.f32 %v8512_v2, %v8511_v63  ;;  %v8514_v7 = vsel %vm4517_vm5, %v4608_v48, -3.4028235e+38  ;;  %v8515_v41 = vsel %vm4517_vm5, %v4621_v54, -3.4028235e+38  ;;  %v514_v2 = vmax.f32 %v427_v55, %v428_v58  ;;  %s4795_s11 = scalar_select %p256_p0, %s4713_s7, 0 }
  0x91   : > { %v500_v33 = vmax.f32 %v8514_v7, %v8513_v51  ;;  %v507_v63 = vmax.f32 %v8515_v41, %v426_v52  ;;  %v528_v60 = vmax.f32 %v431_v1, %v432_v32  ;;  %v535_v4 = vmax.f32 %v433_v46, %v434_v49  ;;  %s4805_s15 = scalar_select %p263_p1, %s4737_s10, 0 }
  0x92   : > { %v494_v51 = vrot.slane %v493_v50, 4  ;;  %v542_v45 = vmax.f32 %v435_v38, %v436_v39  ;;  %v515_v43 = vrot.slane %v514_v2, 4  ;;  %v522_v42 = vrot.slane %v521_v27, 4  ;;  %s282_s20 = smul.f32 7.0, %s4403_s27  ;;  %p4021_p2 = scmp.lt.s32.totalorder %s4713_s7, 16 }
  0x93   : > { %v501_v7 = vrot.slane %v500_v33, 4  ;;  %v508_v23 = vrot.slane %v507_v63, 4  ;;  %v529_v52 = vrot.slane %v528_v60, 4  ;;  %v536_v58 = vrot.slane %v535_v4, 4  ;;  %p4026_p3 = scmp.lt.s32.totalorder %s4737_s10, 16  ;;  %p271_p4 = scmp.gt.s32.totalorder %s4811_s26, 0 }
  0x94   : > { %v495_v1 = vmax.f32 %v493_v50, %v494_v51  ;;  %v543_v59 = vrot.slane %v542_v45, 4  ;;  %v516_v32 = vmax.f32 %v514_v2, %v515_v43  ;;  %v523_v46 = vmax.f32 %v521_v27, %v522_v42  ;;  %s9225_s11 = smov (!%p4021_p2, %s4795_s11), 16  ;;  %s4819_s27 = sceil.f32 %s282_s20 }
  0x95   : > { %v502_v55 = vmax.f32 %v500_v33, %v501_v7  ;;  %v509_v34 = vmax.f32 %v507_v63, %v508_v23  ;;  %v530_v49 = vmax.f32 %v528_v60, %v529_v52  ;;  %v537_v41 = vmax.f32 %v535_v4, %v536_v58  ;;  %s4824_s7 = sadd.s32 %s4203_s22, %s4395_s17  ;;  %s9227_s15 = smov (!%p4026_p3, %s4805_s15), 16 }
  0x96   : > { %v496_v38 = vrot.slane %v495_v1, 2  ;;  %v544_v37 = vmax.f32 %v542_v45, %v543_v59  ;;  %v517_v33 = vrot.slane %v516_v32, 2  ;;  %v524_v51 = vrot.slane %v523_v46, 2  ;;  %s4205_s6 = scvt.f32.s32 %s4819_s27  ;;  %p278_p5 = scmp.gt.s32.totalorder %s4824_s7, 0 }
  0x97   : > { %v503_v39 = vrot.slane %v502_v55, 2  ;;  %v510_v50 = vrot.slane %v509_v34, 2  ;;  %v531_v7 = vrot.slane %v530_v49, 2  ;;  %v470_v43 = vrot.slane %v4745_v56, 1  ;;  %s4843_s10 = scalar_select %p271_p4, %s4811_s26, 0 }
  0x98   : > { %v497_v60 = vmax.f32 %v495_v1, %v496_v38  ;;  %v538_v63 = vrot.slane %v537_v41, 2  ;;  %v477_v45 = vrot.slane %v4747_v57, 1  ;;  %v518_v2 = vmax.f32 %v516_v32, %v517_v33  ;;  %s925_s25 = smul.f32 2.0, %s4423_s3  ;;  %s4850_s28 = sadd.s32 %s4205_s6, %s4395_s17 }
  0x99   : > { %v504_v42 = vmax.f32 %v502_v55, %v503_v39  ;;  %v511_v4 = vmax.f32 %v509_v34, %v510_v50  ;;  %v525_v27 = vmax.f32 %v523_v46, %v524_v51  ;;  %v443_v23 = vmax.f32 %v4708_v5, %v442_v0  ;;  %p4031_p6 = scmp.lt.s32.totalorder %s4811_s26, 16  ;;  %s918_s17 = sfloor.f32 %s4423_s3 }
  0x9a   : > { %v498_v52 = vrot.slane %v497_v60, 1  ;;  %v532_v59 = vmax.f32 %v530_v49, %v531_v7  ;;  %v8516_v1 = vrot.slane %v4710_v6, 1  ;;  %v457_v34 = vmax.f32 %v4722_v62, %v456_v40  ;;  %s4862_s0 = scalar_select %p278_p5, %s4824_s7, 0 }
  0x9b   : > { %v505_v58 = vrot.slane %v504_v42, 1  ;;  %v512_v32 = vrot.slane %v511_v4, 1  ;;  %v545_v46 = vrot.slane %v544_v37, 2  ;;  %v519_v38 = vrot.slane %v518_v2, 1  ;;  %p286_p7 = scmp.gt.s32.totalorder %s4850_s28, 0  ;;  %s4872_s20 = sceil.f32 %s925_s25 }
  0x9c   : > { %v450_v55 = vmax.f32 %v4710_v6, %v8516_v1  ;;  %v499_v0 = vmax.f32 %v497_v60, %v498_v52  ;;  %v539_v49 = vmax.f32 %v537_v41, %v538_v63  ;;  %v8517_v39 = vrot.slane %v4724_v15, 1  ;;  %s4211_s22 = scvt.f32.s32 %s918_s17  ;;  %s9229_s10 = smov (!%p4031_p6, %s4843_s10), 16 }
  0x9d   : > { %v506_v5 = vmax.f32 %v504_v42, %v505_v58  ;;  %v484_v33 = vrot.slane %v4753_v61, 1  ;;  %v513_v6 = vmax.f32 %v511_v4, %v512_v32  ;;  %v526_v62 = vrot.slane %v525_v27, 1  ;;  %p4036_p8 = scmp.lt.s32.totalorder %s4824_s7, 16  ;;  %s4213_s26 = scvt.f32.s32 %s4872_s20 }
  0x9e   : > { %v464_v50 = vmax.f32 %v4724_v15, %v8517_v39  ;;  %v471_v40 = vmax.f32 %v4745_v56, %v470_v43  ;;  %v533_v51 = vrot.slane %v532_v59, 1  ;;  %v546_v41 = vmax.f32 %v544_v37, %v545_v46  ;;  %s287_s27 = scalar_select %p286_p7, %s4850_s28, 0 }
  0x9f   : > { %v571_v7 = vsel %vm8370_vm7, %v450_v55, %v443_v23  ;;  %v520_v15 = vmax.f32 %v518_v2, %v519_v38  ;;  %v540_v60 = vrot.slane %v539_v49, 1  ;;  %v584_v43 = vsel %vm8370_vm7, %v506_v5, %v499_v0  ;;  %s4924_s6 = sadd.s32 %s4211_s22, %s4398_s24  ;;  %s9231_s0 = smov (!%p4036_p8, %s4862_s0), 16 }
  0xa0   : > { %v573_v56 = vsel %vm8369_vm8, %v457_v34, %v571_v7  ;;  %v527_v42 = vmax.f32 %v525_v27, %v526_v62  ;;  %v585_v63 = vsel %vm8369_vm8, %v513_v6, %v584_v43  ;;  %v478_v4 = vmax.f32 %v4747_v57, %v477_v45  ;;  %p4041_p9 = scmp.lt.s32.totalorder %s4850_s28, 16  ;;  %s4957_s7 = sadd.s32 %s4213_s26, %s4398_s24 }
  0xa1   : > { %v575_v37 = vsel %vm8368_vm9, %v464_v50, %v573_v56  ;;  %v534_v2 = vmax.f32 %v532_v59, %v533_v51  ;;  %v586_v52 = vsel %vm8368_vm9, %v520_v15, %v585_v63  ;;  %v290_v27 = vstv %s9201_s16  ;;  %p921_p10 = scmp.gt.s32.totalorder %s4924_s6, 0  ;;  %p929_p11 = scmp.gt.s32.totalorder %s4957_s7, 0 }
  0xa2   : > { %v577_v23 = vsel %vm8367_vm10, %v471_v40, %v575_v37  ;;  %v491_v58 = vrot.slane %v4755_v3, 1  ;;  %v587_v1 = vsel %vm8367_vm10, %v527_v42, %v586_v52  ;;  %v547_v57 = vrot.slane %v546_v41, 1  ;;  %s9233_s27 = smov (!%p4041_p9, %s287_s27), 16  ;;  %p5011_p13 = scmp.le.s32.totalorder %s9199_s12, %s9201_s16 }
  0xa3   : > { %v579_v45 = vsel %vm8365_vm11, %v478_v4, %v577_v23  ;;  %v588_v59 = vsel %vm8365_vm11, %v534_v2, %v587_v1  ;;  %v293_v55 = vstv %s9199_s12  ;;  %v301_v34 = vstv %s9205_s8  ;;  %s922_s18 = scalar_select %p921_p10, %s4924_s6, 0 }
  0xa4   : > { %v485_v32 = vmax.f32 %v4753_v61, %v484_v33  ;;  %v541_v46 = vmax.f32 %v539_v49, %v540_v60  ;;  %vm4883_vm13 = vcmp.ge.s32.totalorder %v4453_v8, %v290_v27  ;;  %vm4888_vm14 = vcmp.ge.s32.totalorder %v4458_v9, %v290_v27  ;;  %p5037_p0 = scmp.le.s32.totalorder %s9205_s8, %s9203_s23  ;;  %p4056_p1 = scmp.lt.s32.totalorder %s4924_s6, 16 }
  0xa5   : > { %v298_v38 = vstv %s9203_s23  ;;  %v306_v39 = vstv %s9207_s9  ;;  %v309_v61 = vstv %s9217_s21  ;;  %vm294_vm0 = vcmp.lt.s32.totalorder %v4453_v8, %v293_v55  ;;  %s930_s16 = scalar_select %p929_p11, %s4957_s7, 0 }
  0xa6   : > { %v581_v49 = vsel %vm8364_vm12, %v485_v32, %v579_v45  ;;  %v589_v50 = vsel %vm8364_vm12, %v541_v46, %v588_v59  ;;  %vm4904_vm1 = vcmp.lt.s32.totalorder %v4453_v8, %v301_v34  ;;  %v492_v6 = vmax.f32 %v4755_v3, %v491_v58  ;;  %vm4912_vm3 = vmand %vm4883_vm13, %vm294_vm0  ;;  %p603_p2 = por %p5011_p13, %p5005_p12  ;;  %p4061_p3 = scmp.lt.s32.totalorder %s4957_s7, 16 }
  0xa7   : > { %v548_v62 = vmax.f32 %v546_v41, %v547_v57  ;;  %vm295_vm2 = vcmp.lt.s32.totalorder %v4458_v9, %v293_v55  ;;  %vm299_vm4 = vcmp.ge.s32.totalorder %v4453_v8, %v298_v38  ;;  %vm4918_vm5 = vcmp.lt.s32.totalorder %v4458_v9, %v301_v34  ;;  %s9235_s18 = smov (!%p4056_p1, %s922_s18), 16  ;;  %p650_p4 = por %p5037_p0, %p5005_p12 }
  0xa8   : > { %v314_v7 = vstv %s9219_s5  ;;  %vm4933_vm6 = vmand %vm4888_vm14, %vm295_vm2  ;;  %v8528_v3 = vmov 0  ;;  %vm307_vm13 = vcmp.ge.s32.totalorder %v4453_v8, %v306_v39  ;;  %vm310_vm0 = vcmp.lt.s32.totalorder %v4453_v8, %v309_v61  ;;  %s9237_s16 = smov (!%p4061_p3, %s930_s16), 16  ;;  %p5359_p5 = scmp.le.s32.totalorder %s9217_s21, %s9207_s9 }
  0xa9   : > { %v8529_v3 = vsel %vm4933_vm6, 4294967295, %v8528_v3  ;;  %v4940_v41 = vsel %vm8366_vm15, %v492_v6, %v581_v49  ;;  %v4943_v15 = vsel %vm8366_vm15, %v548_v62, %v589_v50  ;;  %vm300_vm12 = vcmp.ge.s32.totalorder %v4458_v9, %v298_v38  ;;  %vm4949_vm14 = vmand %vm299_vm4, %vm4904_vm1  ;;  %s5159_s23 = scalar_select %p603_p2, 1, 0 }
  0xaa   : > { %vm308_vm2 = vcmp.ge.s32.totalorder %v4458_v9, %v306_v39  ;;  %vm311_vm11 = vcmp.lt.s32.totalorder %v4458_v9, %v309_v61  ;;  %v317_v56 = vstv %s9221_s19  ;;  %vm4961_vm15 = vmand %vm300_vm12, %vm4918_vm5  ;;  %v8532_v43 = vmov 0  ;;  %s5183_s8 = scalar_select %p650_p4, 1, 0 }
  0xab   : > { %v8533_v43 = vsel %vm4961_vm15, 4294967295, %v8532_v43  ;;  %vm4968_vm1 = vmand %vm307_vm13, %vm310_vm0  ;;  %v8534_v42 = vmov 0  ;;  %vm4973_vm4 = vcmp.ge.s32.totalorder %v4453_v8, %v314_v7  ;;  %vm4978_vm12 = vcmp.ge.s32.totalorder %v4458_v9, %v314_v7  ;;  %p5365_p6 = scmp.le.s32.totalorder %s9221_s19, %s9219_s5  ;;  %p5371_p7 = scmp.le.s32.totalorder %s9225_s11, %s9223_s4 }
  0xac   : > { %v8535_v42 = vsel %vm4968_vm1, 4294967295, %v8534_v42  ;;  %v593_v4 = vsel %vm4912_vm3, %v4940_v41, -3.4028235e+38  ;;  %v594_v2 = vsel %vm4933_vm6, %v4943_v15, -3.4028235e+38  ;;  %vm4988_vm5 = vmand %vm308_vm2, %vm311_vm11  ;;  %v8540_v23 = vmov 0  ;;  %p5377_p8 = scmp.le.s32.totalorder %s9229_s10, %s9227_s15  ;;  %p5383_p9 = scmp.le.s32.totalorder %s9233_s27, %s9231_s0 }
  0xad   : > { %v8541_v23 = vsel %vm4988_vm5, 4294967295, %v8540_v23  ;;  %vm318_vm13 = vcmp.lt.s32.totalorder %v4453_v8, %v317_v56  ;;  %v322_v52 = vstv %s9223_s4  ;;  %v640_v27 = vsel %vm4949_vm14, %v4940_v41, -3.4028235e+38  ;;  %p697_p10 = por %p5359_p5, %p5005_p12  ;;  %s5393_s5 = sfloor.f32 %s925_s25 }
  0xae   : > { %v641_v58 = vsel %vm4961_vm15, %v4943_v15, -3.4028235e+38  ;;  %vm319_vm11 = vcmp.lt.s32.totalorder %v4458_v9, %v317_v56  ;;  %v325_v1 = vstv %s9225_s11  ;;  %v687_v57 = vsel %vm4968_vm1, %v4940_v41, -3.4028235e+38  ;;  %vm5026_vm0 = vmand %vm4973_vm4, %vm318_vm13  ;;  %p744_p11 = por %p5365_p6, %p5005_p12  ;;  %p791_p1 = por %p5371_p7, %p5005_p12 }
  0xaf   : > { %v688_v45 = vsel %vm4988_vm5, %v4943_v15, -3.4028235e+38  ;;  %v595_v59 = vmax.f32 %v593_v4, %v594_v2  ;;  %v8544_v55 = vmov 0  ;;  %vm5031_vm2 = vcmp.ge.s32.totalorder %v4453_v8, %v322_v52  ;;  %vm5044_vm4 = vmand %vm4978_vm12, %vm319_vm11  ;;  %p838_p2 = por %p5377_p8, %p5005_p12  ;;  %p885_p3 = por %p5383_p9, %p5005_p12 }
  0xb0   : > { %v8545_v55 = vsel %vm5026_vm0, 4294967295, %v8544_v55  ;;  %v642_v32 = vmax.f32 %v640_v27, %v641_v58  ;;  %v8549_v46 = vmov 0  ;;  %vm5049_vm13 = vcmp.lt.s32.totalorder %v4453_v8, %v325_v1  ;;  %s4215_s19 = scvt.f32.s32 %s5393_s5  ;;  %s1423_s4 = smul.f32 3.0, %s4423_s3 }
  0xb1   : > { %v8550_v46 = vsel %vm5044_vm4, 4294967295, %v8549_v46  ;;  %v330_v5 = vstv %s9227_s15  ;;  %v333_v38 = vstv %s9229_s10  ;;  %v689_v39 = vmax.f32 %v687_v57, %v688_v45  ;;  %vm5092_vm11 = vmand %vm5031_vm2, %vm5049_vm13  ;;  %s5423_s11 = scalar_select %p697_p10, 1, 0 }
  0xb2   : > { %vm5059_vm10 = vcmp.ge.s32.totalorder %v4458_v9, %v322_v52  ;;  %vm5064_vm12 = vcmp.lt.s32.totalorder %v4458_v9, %v325_v1  ;;  %v734_v50 = vsel %vm5026_vm0, %v4940_v41, -3.4028235e+38  ;;  %v735_v33 = vsel %vm5044_vm4, %v4943_v15, -3.4028235e+38  ;;  %s5434_s15 = scalar_select %p744_p11, 1, 0 }
  0xb3   : > { %v338_v6 = vstv %s9231_s0  ;;  %v341_v62 = vstv %s9233_s27  ;;  %v596_v51 = vrot.slane %v595_v59, 4  ;;  %v5086_v7 = vadd.s32 16, %v4453_v8  ;;  %vm5106_vm7 = vmand %vm5059_vm10, %vm5064_vm12  ;;  %s5443_s10 = scalar_select %p791_p1, 1, 0 }
  0xb4   : > { %v8558_v56 = vmov 0  ;;  %vm331_vm9 = vcmp.ge.s32.totalorder %v4453_v8, %v330_v5  ;;  %vm334_vm8 = vcmp.lt.s32.totalorder %v4453_v8, %v333_v38  ;;  %v643_v37 = vrot.slane %v642_v32, 4  ;;  %s5456_s25 = sadd.s32 %s4215_s19, %s4398_s24  ;;  %s5460_s0 = sceil.f32 %s1423_s4 }
  0xb5   : > { %8557 = vst [vmem:[#allocation13_spill] sm:$0xff] %v5086_v7  ;;  %v8559_v56 = vsel %vm5092_vm11, 4294967295, %v8558_v56  ;;  %v8561_v63 = vmov 0  ;;  %vm5111_vm2 = vcmp.ge.s32.totalorder %v4458_v9, %v330_v5  ;;  %vm5116_vm13 = vcmp.lt.s32.totalorder %v4458_v9, %v333_v38  ;;  %vm5140_vm4 = vmand %vm331_vm9, %vm334_vm8  ;;  %s5470_s26 = scalar_select %p838_p2, 1, 0 }
  0xb6   : > { %8560 = vst [vmem:[#allocation14_spill] sm:$0xff] %v8559_v56  ;;  %v8562_v63 = vsel %vm5106_vm7, 4294967295, %v8561_v63  ;;  %v690_v52 = vrot.slane %v689_v39, 4  ;;  %v736_v27 = vmax.f32 %v734_v50, %v735_v33  ;;  %vm5125_vm10 = vcmp.ge.s32.totalorder %v4453_v8, %v338_v6  ;;  %vm5172_vm8 = vmand %vm5111_vm2, %vm5116_vm13  ;;  %s5482_s27 = scalar_select %p885_p3, 1, 0 }
  0xb7   : > { %8563 = vst [vmem:[#allocation15_spill] sm:$0xff] %v8562_v63  ;;  %vm5130_vm12 = vcmp.lt.s32.totalorder %v4453_v8, %v341_v62  ;;  %v781_v57 = vsel %vm5092_vm11, %v4940_v41, -3.4028235e+38  ;;  %v782_v45 = vsel %vm5106_vm7, %v4943_v15, -3.4028235e+38  ;;  %v8572_v34 = vmov 0  ;;  %s4217_s6 = scvt.f32.s32 %s5460_s0  ;;  %p5576_p10 = scmp.le.s32.totalorder %s9237_s16, %s9235_s18 }
  0xb8   : > { %v8573_v34 = vsel %vm5140_vm4, 4294967295, %v8572_v34  ;;  %vm5145_vm0 = vcmp.ge.s32.totalorder %v4458_v9, %v338_v6  ;;  %vm5150_vm5 = vcmp.lt.s32.totalorder %v4458_v9, %v341_v62  ;;  %v597_v38 = vmax.f32 %v595_v59, %v596_v51  ;;  %vm5192_vm9 = vmand %vm5125_vm10, %vm5130_vm12  ;;  %p1419_p12 = scmp.gt.s32.totalorder %s5456_s25, 0  ;;  %p4066_p11 = scmp.lt.s32.totalorder %s5456_s25, 16 }
  0xb9   : > { %8574 = vst [vmem:[#allocation16_spill] sm:$0xff] %v8573_v34  ;;  %v933_v61 = vstv %s9235_s18  ;;  %v5163_v49 = vadd.s32 24, %v4453_v8  ;;  %v5166_v50 = vadd.s32 32, %v4453_v8  ;;  %v8581_v33 = vmov 0  ;;  %vm5203_vm2 = vmand %vm5145_vm0, %vm5150_vm5  ;;  %s5532_s7 = sadd.s32 %s4217_s6, %s4398_s24  ;;  %p1131_p1 = por %p5576_p10, %p5011_p13 }
  0xba   : > { %v8582_v33 = vsel %vm5172_vm8, 4294967295, %v8581_v33  ;;  %v5176_v59 = vmax.f32 %v642_v32, %v643_v37  ;;  %v828_v6 = vsel %vm5140_vm4, %v4940_v41, -3.4028235e+38  ;;  %v8584_v62 = vmov 0  ;;  %s5542_s28 = scalar_select %p1419_p12, %s5456_s25, 0 }
  0xbb   : > { %8579 = vst [vmem:[#allocation17_spill] sm:$0xff] %v5163_v49  ;;  %v8585_v62 = vsel %vm5192_vm9, 4294967295, %v8584_v62  ;;  %v5196_v32 = vmax.f32 %v689_v39, %v690_v52  ;;  %v737_v51 = vrot.slane %v736_v27, 4  ;;  %v783_v37 = vmax.f32 %v781_v57, %v782_v45  ;;  %p1427_p4 = scmp.gt.s32.totalorder %s5532_s7, 0  ;;  %p1173_p2 = por %p5576_p10, %p5037_p0 }
  0xbc   : > { %8580 = vst [vmem:[#allocation18_spill] sm:$0xff] %v5166_v50  ;;  %v936_v4 = vstv %s9237_s16  ;;  %v8587_v2 = vmov 0  ;;  %v829_v58 = vsel %vm5172_vm8, %v4943_v15, -3.4028235e+38  ;;  %vm934_vm13 = vcmp.ge.s32.totalorder %v4453_v8, %v933_v61  ;;  %v8595_v50 = vld [vmem:[#allocation7_spill] sm:$0xff]  ;;  %s9239_s28 = smov (!%p4066_p11, %s5542_s28), 16  ;;  %p1215_p12 = por %p5576_p10, %p5359_p5 }
  0xbd   : > { %8583 = vst [vmem:[#allocation19_spill] sm:$0xff] %v8582_v33  ;;  %v8588_v2 = vsel %vm5203_vm2, 4294967295, %v8587_v2  ;;  %vm937_vm10 = vcmp.lt.s32.totalorder %v4453_v8, %v936_v4  ;;  %vm938_vm12 = vcmp.lt.s32.totalorder %v4458_v9, %v936_v4  ;;  %v598_v39 = vrot.slane %v597_v38, 2  ;;  %s1428_s18 = scalar_select %p1427_p4, %s5532_s7, 0 }
  0xbe   : > { %8586 = vst [vmem:[#allocation20_spill] sm:$0xff] %v8585_v62  ;;  %v875_v52 = vsel %vm5192_vm9, %v4940_v41, -3.4028235e+38  ;;  %v876_v1 = vsel %vm5203_vm2, %v4943_v15, -3.4028235e+38  ;;  %vm935_vm5 = vcmp.ge.s32.totalorder %v4458_v9, %v933_v61  ;;  %vm5220_vm0 = vmand %vm934_vm13, %vm937_vm10  ;;  %v5225_v45 = vadd.s32 40, %v4453_v8  ;;  %p1257_p4 = por %p5576_p10, %p5365_p6  ;;  %p1299_p11 = por %p5576_p10, %p5371_p7 }
  0xbf   : > { %8589 = vst [vmem:[#allocation21_spill] sm:$0xff] %v8588_v2  ;;  %vm5229_vm8 = vmand %vm935_vm5, %vm938_vm12  ;;  %v945_v41 = vsel %vm5220_vm0, %v4465_v11, -3.4028235e+38  ;;  %v5236_v15 = vmax.f32 %v828_v6, %v829_v58  ;;  %v947_v2 = vsel %vm5220_vm0, %v4468_v12, -3.4028235e+38  ;;  %v5249_v33 = vmax.f32 %v875_v52, %v876_v1  ;;  %p4071_p3 = scmp.lt.s32.totalorder %s5532_s7, 16 }
  0xc0   : > { %8592 = vst [vmem:[#allocation22_spill] sm:$0xff] %v5225_v45  ;;  %v946_v61 = vsel %vm5229_vm8, %v4483_v16, -3.4028235e+38  ;;  %v948_v5 = vsel %vm5229_vm8, %v4486_v17, -3.4028235e+38  ;;  %v5251_v6 = vmax.f32 %v597_v38, %v598_v39  ;;  %v5253_v58 = vmax.f32 %v736_v27, %v737_v51 }
  0xc1   : > { %v977_v11 = vmax.f32 %v945_v41, %v946_v61  ;;  %v784_v16 = vrot.slane %v783_v37, 4  ;;  %v949_v12 = vsel %vm5220_vm0, %v4489_v18, -3.4028235e+38  ;;  %v950_v17 = vsel %vm5229_vm8, %v4492_v19, -3.4028235e+38  ;;  %s9241_s18 = smov (!%p4071_p3, %s1428_s18), 16 }
  0xc2   : > { %v951_v62 = vsel %vm5220_vm0, %v4501_v20, -3.4028235e+38  ;;  %v952_v38 = vsel %vm5229_vm8, %v4504_v21, -3.4028235e+38  ;;  %v984_v39 = vmax.f32 %v947_v2, %v948_v5  ;;  %v953_v51 = vsel %vm5220_vm0, %v4507_v22, -3.4028235e+38 }
  0xc3   : > { %v954_v18 = vsel %vm5229_vm8, %v4522_v24, -3.4028235e+38  ;;  %v978_v19 = vrot.slane %v977_v11, 4  ;;  %v955_v20 = vsel %vm5220_vm0, %v4525_v25, -3.4028235e+38  ;;  %v5281_v1 = vmax.f32 %v783_v37, %v784_v16 }
  0xc4   : > { %v956_v21 = vsel %vm5229_vm8, %v4528_v26, -3.4028235e+38  ;;  %v985_v2 = vrot.slane %v984_v39, 4  ;;  %v957_v22 = vsel %vm5220_vm0, %v4539_v28, -3.4028235e+38  ;;  %v991_v61 = vmax.f32 %v949_v12, %v950_v17 }
  0xc5   : > { %v958_v24 = vsel %vm5229_vm8, %v4542_v29, -3.4028235e+38  ;;  %v959_v5 = vsel %vm5220_vm0, %v4546_v30, -3.4028235e+38  ;;  %v960_v25 = vsel %vm5229_vm8, %v4549_v31, -3.4028235e+38  ;;  %v979_v37 = vmax.f32 %v977_v11, %v978_v19 }
  0xc6   : > { %v961_v26 = vsel %vm5220_vm0, %v4595_v44, -3.4028235e+38  ;;  %v986_v41 = vmax.f32 %v984_v39, %v985_v2  ;;  %v962_v28 = vsel %vm5229_vm8, %v4605_v47, -3.4028235e+38  ;;  %v963_v29 = vsel %vm5220_vm0, %v4608_v48, -3.4028235e+38 }
  0xc7   : > { %v964_v30 = vsel %vm5229_vm8, %v4618_v53, -3.4028235e+38  ;;  %v965_v31 = vsel %vm5220_vm0, %v4621_v54, -3.4028235e+38  ;;  %v966_v44 = vsel %vm5229_vm8, %v4652_v10, -3.4028235e+38  ;;  %v998_v11 = vmax.f32 %v951_v62, %v952_v38 }
  0xc8   : > { %v967_v47 = vsel %vm5220_vm0, %v4655_v13, -3.4028235e+38  ;;  %v968_v48 = vsel %vm5229_vm8, %v4658_v14, -3.4028235e+38  ;;  %v969_v53 = vsel %vm5220_vm0, %v4666_v35, -3.4028235e+38  ;;  %v1005_v16 = vmax.f32 %v953_v51, %v954_v18 }
  0xc9   : > { %v970_v54 = vsel %vm5229_vm8, %v4669_v36, -3.4028235e+38  ;;  %v980_v12 = vrot.slane %v979_v37, 2  ;;  %v987_v10 = vrot.slane %v986_v41, 2  ;;  %v992_v17 = vrot.slane %v991_v61, 4  ;;  %v8596_v51 = vld [vmem:[#allocation8_spill] sm:$0xff] }
  0xca   : > { %v999_v39 = vrot.slane %v998_v11, 4  ;;  %v1006_v19 = vrot.slane %v1005_v16, 4  ;;  %v1012_v13 = vmax.f32 %v955_v20, %v956_v21  ;;  %v1019_v62 = vmax.f32 %v957_v22, %v958_v24  ;;  %s5656_s16 = scalar_select %p1131_p1, 1, 0 }
  0xcb   : > { %v1026_v38 = vmax.f32 %v959_v5, %v960_v25  ;;  %v981_v2 = vmax.f32 %v979_v37, %v980_v12  ;;  %v988_v52 = vmax.f32 %v986_v41, %v987_v10  ;;  %v993_v14 = vmax.f32 %v991_v61, %v992_v17  ;;  %v8597_v10 = vld [vmem:[#allocation9_spill] sm:$0xff]  ;;  %s5674_s5 = scalar_select %p1215_p12, 1, 0 }
  0xcc   : > { %v1000_v0 = vmax.f32 %v998_v11, %v999_v39  ;;  %v1007_v27 = vmax.f32 %v1005_v16, %v1006_v19  ;;  %v1013_v45 = vrot.slane %v1012_v13, 4  ;;  %v1020_v35 = vrot.slane %v1019_v62, 4  ;;  %v8598_v39 = vld [vmem:[#allocation10_spill] sm:$0xff]  ;;  %s5701_s19 = scalar_select %p1257_p4, 1, 0 }
  0xcd   : > { %v1027_v34 = vrot.slane %v1026_v38, 4  ;;  %v971_v36 = vsel %vm5220_vm0, %v8595_v50, -3.4028235e+38  ;;  %v972_v18 = vsel %vm5229_vm8, %v8596_v51, -3.4028235e+38  ;;  %v994_v49 = vrot.slane %v993_v14, 2  ;;  %p1341_p1 = por %p5576_p10, %p5377_p8 }
  0xce   : > { %v1001_v20 = vrot.slane %v1000_v0, 2  ;;  %v1008_v21 = vrot.slane %v1007_v27, 2  ;;  %v1014_v22 = vmax.f32 %v1012_v13, %v1013_v45  ;;  %v1021_v24 = vmax.f32 %v1019_v62, %v1020_v35  ;;  %v8599_v13 = vld [vmem:[#allocation11_spill] sm:$0xff] }
  0xcf   : > { %v1028_v5 = vmax.f32 %v1026_v38, %v1027_v34  ;;  %v982_v25 = vrot.slane %v981_v2, 1  ;;  %v989_v37 = vrot.slane %v988_v52, 1  ;;  %v995_v41 = vmax.f32 %v993_v14, %v994_v49  ;;  %v8600_v38 = vld [vmem:[#allocation12_spill] sm:$0xff]  ;;  %s6038_s6 = scalar_select %p1341_p1, 1, 0 }
  0xd0   : > { %v5331_v61 = vmax.f32 %v1000_v0, %v1001_v20  ;;  %v5333_v11 = vmax.f32 %v1007_v27, %v1008_v21  ;;  %v1015_v16 = vrot.slane %v1014_v22, 2  ;;  %v1022_v12 = vrot.slane %v1021_v24, 2 }
  0xd1   : > { %v1029_v50 = vrot.slane %v1028_v5, 2  ;;  %v973_v17 = vsel %vm5220_vm0, %v8597_v10, -3.4028235e+38  ;;  %v974_v45 = vsel %vm5229_vm8, %v8598_v39, -3.4028235e+38  ;;  %v1033_v19 = vmax.f32 %v961_v26, %v962_v28 }
  0xd2   : > { %v1040_v34 = vmax.f32 %v963_v29, %v964_v30  ;;  %v975_v49 = vsel %vm5220_vm0, %v8599_v13, -3.4028235e+38  ;;  %v996_v0 = vrot.slane %v995_v41, 1  ;;  %v5344_v27 = vmax.f32 %v1014_v22, %v1015_v16 }
  0xd3   : > { %v5346_v62 = vmax.f32 %v1021_v24, %v1022_v12  ;;  %v976_v14 = vsel %vm5229_vm8, %v8600_v38, -3.4028235e+38  ;;  %v983_v35 = vmax.f32 %v981_v2, %v982_v25  ;;  %v1034_v51 = vrot.slane %v1033_v19, 4 }
  0xd4   : > { %v1041_v20 = vrot.slane %v1040_v34, 4  ;;  %v990_v21 = vmax.f32 %v988_v52, %v989_v37  ;;  %v1003_v26 = vrot.slane %v5331_v61, 1  ;;  %v1010_v28 = vrot.slane %v5333_v11, 1 }
  0xd5   : > { %v5353_v29 = vmax.f32 %v1028_v5, %v1029_v50  ;;  %v1035_v57 = vmax.f32 %v1033_v19, %v1034_v51  ;;  %v1047_v22 = vmax.f32 %v965_v31, %v966_v44  ;;  %v1054_v16 = vmax.f32 %v967_v47, %v968_v48 }
  0xd6   : > { %v1042_v30 = vmax.f32 %v1040_v34, %v1041_v20  ;;  %v997_v24 = vmax.f32 %v995_v41, %v996_v0  ;;  %v1017_v4 = vrot.slane %v5344_v27, 1  ;;  %v1024_v2 = vrot.slane %v5346_v62, 1 }
  0xd7   : > { %v1061_v25 = vmax.f32 %v969_v53, %v970_v54  ;;  %v1036_v12 = vrot.slane %v1035_v57, 2  ;;  %v1048_v37 = vrot.slane %v1047_v22, 4  ;;  %v1055_v5 = vrot.slane %v1054_v16, 4 }
  0xd8   : > { %v1043_v52 = vrot.slane %v1042_v30, 2  ;;  %v1068_v10 = vmax.f32 %v971_v36, %v972_v18  ;;  %v1075_v31 = vmax.f32 %v973_v17, %v974_v45  ;;  %v1082_v44 = vmax.f32 %v975_v49, %v976_v14 }
  0xd9   : > { %v1062_v50 = vrot.slane %v1061_v25, 4  ;;  %v1037_v47 = vmax.f32 %v1035_v57, %v1036_v12  ;;  %v1049_v41 = vmax.f32 %v1047_v22, %v1048_v37  ;;  %v1056_v53 = vmax.f32 %v1054_v16, %v1055_v5 }
  0xda   : > { %v1044_v48 = vmax.f32 %v1042_v30, %v1043_v52  ;;  %v1069_v39 = vrot.slane %v1068_v10, 4  ;;  %v1076_v19 = vrot.slane %v1075_v31, 4  ;;  %v1083_v34 = vrot.slane %v1082_v44, 4 }
  0xdb   : > { %v1063_v54 = vmax.f32 %v1061_v25, %v1062_v50  ;;  %v1038_v36 = vrot.slane %v1037_v47, 1  ;;  %v1050_v17 = vrot.slane %v1049_v41, 2  ;;  %v1057_v45 = vrot.slane %v1056_v53, 2 }
  0xdc   : > { %v1045_v18 = vrot.slane %v1044_v48, 1  ;;  %v1070_v49 = vmax.f32 %v1068_v10, %v1069_v39  ;;  %v1077_v0 = vmax.f32 %v1075_v31, %v1076_v19  ;;  %v1084_v38 = vmax.f32 %v1082_v44, %v1083_v34 }
  0xdd   : > { %v1064_v13 = vrot.slane %v1063_v54, 2  ;;  %v1039_v14 = vmax.f32 %v1037_v47, %v1038_v36  ;;  %v1051_v20 = vmax.f32 %v1049_v41, %v1050_v17  ;;  %v1058_v57 = vmax.f32 %v1056_v53, %v1057_v45 }
  0xde   : > { %v1046_v51 = vmax.f32 %v1044_v48, %v1045_v18  ;;  %v1071_v22 = vrot.slane %v1070_v49, 2  ;;  %v1078_v16 = vrot.slane %v1077_v0, 2  ;;  %v1085_v25 = vrot.slane %v1084_v38, 2 }
  0xdf   : > { %v1065_v30 = vmax.f32 %v1063_v54, %v1064_v13  ;;  %v1052_v12 = vrot.slane %v1051_v20, 1  ;;  %v1059_v52 = vrot.slane %v1058_v57, 1  ;;  %vm8606_vm8 = vcmask 1041409  }
  0xe0   : > { %v1106_v37 = vsel %vm8606_vm8, %v990_v21, %v983_v35  ;;  %vm8607_vm13 = vmmov %vm8606_vm8  ;;  %v1072_v10 = vmax.f32 %v1070_v49, %v1071_v22  ;;  %v1079_v31 = vmax.f32 %v1077_v0, %v1078_v16  ;;  %v1086_v44 = vmax.f32 %v1084_v38, %v1085_v25 }
  0xe1   : > { %v1113_v5 = vsel %vm8607_vm13, %v1046_v51, %v1039_v14  ;;  %v1066_v50 = vrot.slane %v1065_v30, 1  ;;  %v1004_v47 = vmax.f32 %v5331_v61, %v1003_v26  ;;  %v1031_v35 = vrot.slane %v5353_v29, 1 }
  0xe2   : > { %v1053_v21 = vmax.f32 %v1051_v20, %v1052_v12  ;;  %vm8608_vm10 = vcmask 1042434   ;;  %v1011_v41 = vmax.f32 %v5333_v11, %v1010_v28  ;;  %v1018_v61 = vmax.f32 %v5344_v27, %v1017_v4 }
  0xe3   : > { %v1107_v48 = vsel %vm8608_vm10, %v997_v24, %v1106_v37  ;;  %v1073_v26 = vrot.slane %v1072_v10, 1  ;;  %v1080_v53 = vrot.slane %v1079_v31, 1  ;;  %v1060_v24 = vmax.f32 %v1058_v57, %v1059_v52  ;;  %vm8610_vm5 = vmmov %vm8608_vm10 }
  0xe4   : > { %v1087_v54 = vrot.slane %v1086_v44, 1  ;;  %vm8609_vm12 = vcmask 1043459   ;;  %v1114_v19 = vsel %vm8610_vm5, %v1053_v21, %v1113_v5  ;;  %v8611_v11 = vrot.slane %v5236_v15, 4 }
  0xe5   : > { %v1108_v39 = vsel %vm8609_vm12, %v1004_v47, %v1107_v48  ;;  %v1025_v28 = vmax.f32 %v5346_v62, %v1024_v2  ;;  %v1067_v4 = vmax.f32 %v1065_v30, %v1066_v50  ;;  %vm8612_vm0 = vcmask 1044484   ;;  %vm8614_vm13 = vmmov %vm8609_vm12  ;;  %v8648_v48 = vld [vmem:[#allocation22_spill] sm:$0xff] }
  0xe6   : > { %v832_v27 = vmax.f32 %v5236_v15, %v8611_v11  ;;  %v1109_v34 = vsel %vm8612_vm0, %v1011_v41, %v1108_v39  ;;  %v1032_v36 = vmax.f32 %v5353_v29, %v1031_v35  ;;  %v1074_v18 = vmax.f32 %v1072_v10, %v1073_v26  ;;  %vm8617_vm12 = vmmov %vm8612_vm0 }
  0xe7   : > { %vm8613_vm8 = vcmask 1045509   ;;  %v1115_v45 = vsel %vm8614_vm13, %v1060_v24, %v1114_v19  ;;  %v8615_v15 = vrot.slane %v5176_v59, 2  ;;  %v1081_v29 = vmax.f32 %v1079_v31, %v1080_v53 }
  0xe8   : > { %v1110_v17 = vsel %vm8613_vm8, %v1018_v61, %v1109_v34  ;;  %vm8616_vm10 = vcmask 1046534   ;;  %v1116_v13 = vsel %vm8617_vm12, %v1067_v4, %v1115_v45  ;;  %v8618_v49 = vrot.slane %v5249_v33, 4  ;;  %vm8620_vm0 = vmmov %vm8613_vm8 }
  0xe9   : > { %v646_v62 = vmax.f32 %v5176_v59, %v8615_v15  ;;  %v1111_v2 = vsel %vm8616_vm10, %v1025_v28, %v1110_v17  ;;  %v1088_v59 = vmax.f32 %v1086_v44, %v1087_v54  ;;  %vm8619_vm5 = vcmask 1047559   ;;  %vm8622_vm8 = vmmov %vm8616_vm10 }
  0xea   : > { %v879_v0 = vmax.f32 %v5249_v33, %v8618_v49  ;;  %v5485_v38 = vsel %vm8619_vm5, %v1032_v36, %v1111_v2  ;;  %v1117_v14 = vsel %vm8620_vm0, %v1074_v18, %v1116_v13  ;;  %v8621_v51 = vrot.slane %v5196_v32, 2  ;;  %vm8623_vm13 = vmmov %vm8619_vm5 }
  0xeb   : > { %v699_v57 = vstv %s5423_s11  ;;  %v739_v30 = vrot.slane %v5253_v58, 2  ;;  %v1118_v33 = vsel %vm8622_vm8, %v1081_v29, %v1117_v14  ;;  %v786_v22 = vrot.slane %v5281_v1, 2  ;;  %s1921_s11 = smul.f32 4.0, %s4423_s3 }
  0xec   : > { %v693_v20 = vmax.f32 %v5196_v32, %v8621_v51  ;;  %v833_v16 = vrot.slane %v832_v27, 2  ;;  %v5497_v25 = vsel %vm8623_vm13, %v1088_v59, %v1118_v33  ;;  %v1122_v32 = vsel %vm4912_vm3, %v5485_v38, -3.4028235e+38  ;;  %v5807_v33 = vld [vmem:[%s4448_s29 + $0x58] sm:$0xff] }
  0xed   : > { %v1123_v12 = vsel %vm4933_vm6, %v5497_v25, -3.4028235e+38  ;;  %v1164_v52 = vsel %vm4949_vm14, %v5485_v38, -3.4028235e+38  ;;  %v1165_v37 = vsel %vm4961_vm15, %v5497_v25, -3.4028235e+38  ;;  %v8624_v50 = vstv %s5159_s23 }
  0xee   : > { %v600_v5 = vrot.slane %v5251_v6, 1  ;;  %vm5515_vm10 = vcmp.eq.s32.totalorder %v8624_v50, 1  ;;  %v647_v31 = vrot.slane %v646_v62, 1  ;;  %v880_v44 = vrot.slane %v879_v0, 2  ;;  %8679 = vst [vmem:[#allocation34_spill] sm:$0xff] %v5807_v33 }
  0xef   : > { %v8627_v47 = vstv %s5183_s8  ;;  %v694_v21 = vrot.slane %v693_v20, 1  ;;  %vm5526_vm0 = vcmp.eq.s32.totalorder %v699_v57, 1  ;;  %v746_v41 = vstv %s5434_s15  ;;  %s5667_s8 = scalar_select %p1173_p2, 1, 0 }
  0xf0   : > { %vm5522_vm5 = vcmp.eq.s32.totalorder %v8627_v47, 1  ;;  %v793_v61 = vstv %s5443_s10  ;;  %v840_v26 = vstv %s5470_s26  ;;  %v1124_v53 = vmax.f32 %v1122_v32, %v1123_v12  ;;  %s5983_s15 = sfloor.f32 %s1423_s4  ;;  %s5988_s4 = sceil.f32 %s1921_s11 }
  0xf1   : > { %v1166_v24 = vmax.f32 %v1164_v52, %v1165_v37  ;;  %v740_v54 = vmax.f32 %v5253_v58, %v739_v30  ;;  %v787_v39 = vmax.f32 %v5281_v1, %v786_v22  ;;  %v834_v19 = vmax.f32 %v832_v27, %v833_v16  ;;  %v8643_v30 = vld [vmem:[#allocation18_spill] sm:$0xff]  ;;  %s4219_s10 = scvt.f32.s32 %s5983_s15  ;;  %s4221_s25 = scvt.f32.s32 %s5988_s4 }
  0xf2   : > { %v887_v11 = vstv %s5482_s27  ;;  %v601_v28 = vmax.f32 %v5251_v6, %v600_v5  ;;  %v648_v4 = vmax.f32 %v646_v62, %v647_v31  ;;  %v881_v34 = vmax.f32 %v879_v0, %v880_v44  ;;  %p1383_p2 = por %p5576_p10, %p5383_p9  ;;  %p6072_p10 = scmp.le.s32.totalorder %s9241_s18, %s9239_s28 }
  0xf3   : > { %v1206_v58 = vsel %vm4968_vm1, %v5485_v38, -3.4028235e+38  ;;  %v695_v1 = vmax.f32 %v693_v20, %v694_v21  ;;  %vm8632_vm12 = vnez %v8541_v23  ;;  %vm8633_vm15 = vnez %v8545_v55  ;;  %v8640_v20 = vld [vmem:[#allocation17_spill] sm:$0xff]  ;;  %s6006_s0 = sadd.s32 %s4219_s10, %s4398_s24  ;;  %s6031_s27 = sadd.s32 %s4221_s25, %s4398_s24 }
  0xf4   : > { %v1207_v27 = vsel %vm8632_vm12, %v5497_v25, -3.4028235e+38  ;;  %v1248_v6 = vsel %vm8633_vm15, %v5485_v38, -3.4028235e+38  ;;  %vm8634_vm13 = vnez %v8550_v46  ;;  %vm5560_vm8 = vcmp.eq.s32.totalorder %v746_v41, 1  ;;  %p1917_p3 = scmp.gt.s32.totalorder %s6006_s0, 0  ;;  %p1629_p4 = por %p6072_p10, %p5011_p13 }
  0xf5   : > { %v1249_v36 = vsel %vm8634_vm13, %v5497_v25, -3.4028235e+38  ;;  %v1125_v17 = vrot.slane %v1124_v53, 4  ;;  %v1167_v45 = vrot.slane %v1166_v24, 4  ;;  %v1290_v15 = vsel %vm5092_vm11, %v5485_v38, -3.4028235e+38  ;;  %p1671_p1 = por %p6072_p10, %p5037_p0 }
  0xf6   : > { %v1291_v62 = vsel %vm5106_vm7, %v5497_v25, -3.4028235e+38  ;;  %v741_v29 = vrot.slane %v740_v54, 1  ;;  %v788_v2 = vrot.slane %v787_v39, 1  ;;  %vm5570_vm15 = vcmp.eq.s32.totalorder %v793_v61, 1  ;;  %v8649_v61 = vld [vmem:[#allocation19_spill] sm:$0xff] }
  0xf7   : > { %v835_v49 = vrot.slane %v834_v19, 1  ;;  %v607_v0 = vsel %vm5515_vm10, 0.0, %v601_v28  ;;  %vm751_vm7 = vcmp.eq.s32.totalorder %v5086_v7, 21  ;;  %v882_v59 = vrot.slane %v881_v34, 1  ;;  %s6021_s26 = scalar_select %p1299_p11, 1, 0 }
  0xf8   : > { %v1208_v14 = vmax.f32 %v1206_v58, %v1207_v27  ;;  %v1250_v51 = vmax.f32 %v1248_v6, %v1249_v36  ;;  %vm799_vm11 = vcmp.eq.s32.totalorder %v8640_v20, 28  ;;  %vm5585_vm13 = vcmp.eq.s32.totalorder %v840_v26, 1  ;;  %s6048_s7 = scalar_select %p1383_p2, 1, 0 }
  0xf9   : > { %vm847_vm12 = vcmp.eq.s32.totalorder %v8643_v30, 35  ;;  %vm5590_vm1 = vcmp.eq.s32.totalorder %v887_v11, 1  ;;  %v1292_v22 = vmax.f32 %v1290_v15, %v1291_v62  ;;  %v654_v16 = vsel %vm5522_vm5, 0.0, %v648_v4  ;;  %p1925_p12 = scmp.gt.s32.totalorder %s6031_s27, 0  ;;  %p4076_p11 = scmp.lt.s32.totalorder %s6006_s0, 16 }
  0xfa   : > { %v701_v32 = vsel %vm5526_vm0, 0.0, %v695_v1  ;;  %v1126_v12 = vmax.f32 %v1124_v53, %v1125_v17  ;;  %v1168_v52 = vmax.f32 %v1166_v24, %v1167_v45  ;;  %vm8646_vm10 = vcmp.eq.s32.totalorder %v4453_v8, 0  ;;  %p4081_p2 = scmp.lt.s32.totalorder %s6031_s27, 16  ;;  %s2419_s25 = smul.f32 5.0, %s4423_s3 }
  0xfb   : > { %v629_v37 = vsel %vm8646_vm10, %v607_v0, 0.0  ;;  %v742_v5 = vmax.f32 %v740_v54, %v741_v29  ;;  %v789_v50 = vmax.f32 %v787_v39, %v788_v2  ;;  %v836_v10 = vmax.f32 %v834_v19, %v835_v49 }
  0xfc   : > { %v883_v31 = vmax.f32 %v881_v34, %v882_v59  ;;  %v1209_v44 = vrot.slane %v1208_v14, 4  ;;  %v1251_v47 = vrot.slane %v1250_v51, 4  ;;  %v1332_v21 = vsel %vm5140_vm4, %v5485_v38, -3.4028235e+38  ;;  %v5819_v59 = vld [vmem:[%s4448_s29 + $0x68] sm:$0xff] }
  0xfd   : > { %v1293_v41 = vrot.slane %v1292_v22, 4  ;;  %vm8650_vm0 = vnez %v8649_v61  ;;  %v1374_v24 = vsel %vm5192_vm9, %v5485_v38, -3.4028235e+38  ;;  %v1127_v54 = vrot.slane %v1126_v12, 2  ;;  %8681 = vst [vmem:[#allocation36_spill] sm:$0xff] %v5819_v59  ;;  %v5880_v61 = vld [vmem:[%s4448_s29 + $0xb8] sm:$0xff] }
  0xfe   : > { %v1333_v26 = vsel %vm8650_vm0, %v5497_v25, -3.4028235e+38  ;;  %v1169_v39 = vrot.slane %v1168_v52, 2  ;;  %v1375_v11 = vsel %vm5203_vm2, %v5497_v25, -3.4028235e+38  ;;  %v1431_v28 = vstv %s9239_s28  ;;  %8691 = vst [vmem:[#allocation46_spill] sm:$0xff] %v5880_v61 }
  0xff   : > { %vm8653_vm10 = vcmp.eq.s32.totalorder %v4453_v8, 7  ;;  %vm8655_vm5 = vcmp.eq.s32.totalorder %v4458_v9, 14  ;;  %v748_v38 = vsel %vm5560_vm8, 0.0, %v742_v5  ;;  %v795_v58 = vsel %vm5570_vm15, 0.0, %v789_v50  ;;  %s6097_s28 = scalar_select %p1917_p3, %s6006_s0, 0 }
 0x100   : > { %v5641_v4 = vsel %vm8653_vm10, %v654_v16, %v629_v37  ;;  %v5645_v34 = vsel %vm8655_vm5, %v701_v32, 0.0  ;;  %v842_v25 = vsel %vm5585_vm13, 0.0, %v836_v10  ;;  %v889_v1 = vsel %vm5590_vm1, 0.0, %v883_v31  ;;  %v5735_v10 = vld [vmem:[%s4448_s29] sm:$0xff]  ;;  %p1713_p3 = por %p6072_p10, %p5359_p5 }
 0x101   : > { %8654 = vst [vmem:[#allocation7_spill] sm:$0xff] %v5641_v4  ;;  %v1210_v27 = vmax.f32 %v1208_v14, %v1209_v44  ;;  %v1252_v6 = vmax.f32 %v1250_v51, %v1251_v47  ;;  %v5676_v36 = vmax.f32 %v1292_v22, %v1293_v41  ;;  %v1334_v18 = vmax.f32 %v1332_v21, %v1333_v26  ;;  %v5741_v44 = vld [vmem:[%s4448_s29 + $0x10] sm:$0xff]  ;;  %v5747_v21 = vld [vmem:[%s4448_s29 + $0x20] sm:$0xff]  ;;  %s9243_s28 = smov (!%p4076_p11, %s6097_s28), 16  ;;  %p1839_p11 = por %p6072_p10, %p5377_p8 }
 0x102   : > { %8656 = vst [vmem:[#allocation8_spill] sm:$0xff] %v5645_v34  ;;  %v5678_v17 = vmax.f32 %v1374_v24, %v1375_v11  ;;  %vm1432_vm15 = vcmp.ge.s32.totalorder %v4453_v8, %v1431_v28  ;;  %v5681_v45 = vmax.f32 %v1126_v12, %v1127_v54  ;;  %v5683_v15 = vmax.f32 %v1168_v52, %v1169_v39  ;;  %v5755_v24 = vld [vmem:[%s4448_s29 + $0x8] sm:$0xff]  ;;  %v5761_v39 = vld [vmem:[%s4448_s29 + $0x18] sm:$0xff]  ;;  %v5801_v12 = vld [vmem:[%s4448_s29 + $0x50] sm:$0xff] }
 0x103   : > { %vm5686_vm1 = vcmp.ge.s32.totalorder %v4458_v9, %v1431_v28  ;;  %v1434_v29 = vstv %s9241_s18  ;;  %v5693_v2 = vsel %vm751_vm7, %v748_v38, 0.0  ;;  %v5707_v49 = vsel %vm799_vm11, %v795_v58, 0.0  ;;  %8668 = vst [vmem:[#allocation23_spill] sm:$0xff] %v5735_v10  ;;  %v5767_v28 = vld [vmem:[%s4448_s29 + $0x28] sm:$0xff]  ;;  %s1926_s18 = scalar_select %p1925_p12, %s6031_s27, 0 }
 0x104   : > { %8659 = vst [vmem:[#allocation9_spill] sm:$0xff] %v5693_v2  ;;  %vm1435_vm8 = vcmp.lt.s32.totalorder %v4453_v8, %v1434_v29  ;;  %vm1436_vm13 = vcmp.lt.s32.totalorder %v4458_v9, %v1434_v29  ;;  %v5711_v0 = vsel %vm847_vm12, %v842_v25, 0.0  ;;  %v1211_v14 = vrot.slane %v1210_v27, 2  ;;  %v5775_v25 = vld [vmem:[%s4448_s29 + $0x30] sm:$0xff]  ;;  %v5787_v29 = vld [vmem:[%s4448_s29 + $0x40] sm:$0xff]  ;;  %p1755_p12 = por %p6072_p10, %p5365_p6  ;;  %s6515_s27 = sfloor.f32 %s1921_s11 }
 0x105   : > { %8660 = vst [vmem:[#allocation10_spill] sm:$0xff] %v5707_v49  ;;  %vm5714_vm7 = vmand %vm1432_vm15, %vm1435_vm8  ;;  %vm8664_vm5 = vcmp.eq.s32.totalorder %v8648_v48, 42  ;;  %v1253_v22 = vrot.slane %v1252_v6, 2  ;;  %v1335_v16 = vrot.slane %v1334_v18, 4  ;;  %vm8707_vm12 = vcmask 1041409   ;;  %s9245_s18 = smov (!%p4081_p2, %s1926_s18), 16  ;;  %p1881_p2 = por %p6072_p10, %p5383_p9 }
 0x106   : > { %8661 = vst [vmem:[#allocation11_spill] sm:$0xff] %v5711_v0  ;;  %v5720_v57 = vsel %vm8664_vm5, %v889_v1, 0.0  ;;  %vm5725_vm11 = vmand %vm5686_vm1, %vm1436_vm13  ;;  %v1443_v31 = vsel %vm5714_vm7, %v5735_v10, -3.4028235e+38  ;;  %v1445_v47 = vsel %vm5714_vm7, %v5741_v44, -3.4028235e+38  ;;  %v5752_v26 = vmax.f32 %v1210_v27, %v1211_v14  ;;  %s4223_s11 = scvt.f32.s32 %s6515_s27 }
 0x107   : > { %8665 = vst [vmem:[#allocation12_spill] sm:$0xff] %v5720_v57  ;;  %v1447_v41 = vsel %vm5714_vm7, %v5747_v21, -3.4028235e+38  ;;  %v1444_v54 = vsel %vm5725_vm11, %v5755_v24, -3.4028235e+38  ;;  %v5772_v58 = vmax.f32 %v1252_v6, %v1253_v22  ;;  %v5781_v27 = vld [vmem:[%s4448_s29 + $0x38] sm:$0xff]  ;;  %v5792_v14 = vmax.f32 %v1334_v18, %v1335_v16  ;;  %vm8708_vm10 = vmmov %vm8707_vm12 }
 0x108   : > { %8669 = vst [vmem:[#allocation24_spill] sm:$0xff] %v5741_v44  ;;  %v1446_v11 = vsel %vm5725_vm11, %v5761_v39, -3.4028235e+38  ;;  %v1448_v38 = vsel %vm5725_vm11, %v5767_v28, -3.4028235e+38  ;;  %v5795_v22 = vld [vmem:[%s4448_s29 + $0x48] sm:$0xff]  ;;  %v1475_v5 = vmax.f32 %v1443_v31, %v1444_v54 }
 0x109   : > { %8670 = vst [vmem:[#allocation25_spill] sm:$0xff] %v5747_v21  ;;  %v1449_v1 = vsel %vm5714_vm7, %v5775_v25, -3.4028235e+38  ;;  %v1450_v62 = vsel %vm5725_vm11, %v5781_v27, -3.4028235e+38  ;;  %v5813_v16 = vld [vmem:[%s4448_s29 + $0x60] sm:$0xff] }
 0x10a   : > { %8671 = vst [vmem:[#allocation26_spill] sm:$0xff] %v5755_v24  ;;  %v1451_v6 = vsel %vm5714_vm7, %v5787_v29, -3.4028235e+38  ;;  %v1452_v52 = vsel %vm5725_vm11, %v5795_v22, -3.4028235e+38  ;;  %vm8709_vm15 = vcmask 1042434  }
 0x10b   : > { %8672 = vst [vmem:[#allocation27_spill] sm:$0xff] %v5761_v39  ;;  %v1453_v50 = vsel %vm5714_vm7, %v5801_v12, -3.4028235e+38  ;;  %v1454_v18 = vsel %vm5725_vm11, %v5807_v33, -3.4028235e+38  ;;  %vm8710_vm1 = vmmov %vm8709_vm15  ;;  %vm8711_vm8 = vcmask 1043459  }
 0x10c   : > { %8673 = vst [vmem:[#allocation28_spill] sm:$0xff] %v5767_v28  ;;  %v1455_v37 = vsel %vm5714_vm7, %v5813_v16, -3.4028235e+38  ;;  %v1456_v13 = vsel %vm5725_vm11, %v5819_v59, -3.4028235e+38  ;;  %v1496_v59 = vmax.f32 %v1449_v1, %v1450_v62  ;;  %v5856_v1 = vld [vmem:[%s4448_s29 + $0x98] sm:$0xff]  ;;  %vm8712_vm13 = vmmov %vm8711_vm8 }
 0x10d   : > { %8674 = vst [vmem:[#allocation29_spill] sm:$0xff] %v5775_v25  ;;  %v5844_v25 = vld [vmem:[%s4448_s29 + $0x88] sm:$0xff]  ;;  %s6299_s10 = scalar_select %p1839_p11, 1, 0 }
 0x10e   : > { %8675 = vst [vmem:[#allocation30_spill] sm:$0xff] %v5781_v27  ;;  %v1489_v27 = vmax.f32 %v1447_v41, %v1448_v38  ;;  %v5850_v41 = vld [vmem:[%s4448_s29 + $0x90] sm:$0xff]  ;;  %v1497_v28 = vrot.slane %v1496_v59, 4  ;;  %s6494_s0 = scalar_select %p1881_p2, 1, 0 }
 0x10f   : > { %8676 = vst [vmem:[#allocation31_spill] sm:$0xff] %v5787_v29  ;;  %v5831_v29 = vld [vmem:[%s4448_s29 + $0x78] sm:$0xff]  ;;  %v5874_v38 = vld [vmem:[%s4448_s29 + $0xb0] sm:$0xff]  ;;  %s2917_s27 = smul.f32 6.0, %s4423_s3 }
 0x110   : > { %8677 = vst [vmem:[#allocation32_spill] sm:$0xff] %v5795_v22  ;;  %v5825_v22 = vld [vmem:[%s4448_s29 + $0x70] sm:$0xff]  ;;  %v1465_v54 = vsel %vm5714_vm7, %v5874_v38, -3.4028235e+38  ;;  %v1498_v10 = vmax.f32 %v1496_v59, %v1497_v28 }
 0x111   : > { %8678 = vst [vmem:[#allocation33_spill] sm:$0xff] %v5801_v12  ;;  %v1482_v12 = vmax.f32 %v1445_v47, %v1446_v11  ;;  %v1457_v33 = vsel %vm5714_vm7, %v5825_v22, -3.4028235e+38  ;;  %v5838_v47 = vld [vmem:[%s4448_s29 + $0x80] sm:$0xff]  ;;  %v1503_v11 = vmax.f32 %v1451_v6, %v1452_v52  ;;  %v1517_v52 = vmax.f32 %v1455_v37, %v1456_v13 }
 0x112   : > { %8680 = vst [vmem:[#allocation35_spill] sm:$0xff] %v5813_v16  ;;  %v1458_v16 = vsel %vm5725_vm11, %v5831_v29, -3.4028235e+38  ;;  %v1476_v13 = vrot.slane %v1475_v5, 4  ;;  %v1499_v2 = vrot.slane %v1498_v10, 2 }
 0x113   : > { %8682 = vst [vmem:[#allocation37_spill] sm:$0xff] %v5825_v22  ;;  %v1510_v22 = vmax.f32 %v1453_v50, %v1454_v18  ;;  %v5862_v50 = vld [vmem:[%s4448_s29 + $0xa0] sm:$0xff]  ;;  %v5868_v18 = vld [vmem:[%s4448_s29 + $0xa8] sm:$0xff]  ;;  %v1524_v62 = vmax.f32 %v1457_v33, %v1458_v16  ;;  %v1483_v37 = vrot.slane %v1482_v12, 4  ;;  %v1504_v21 = vrot.slane %v1503_v11, 4 }
 0x114   : > { %8683 = vst [vmem:[#allocation38_spill] sm:$0xff] %v5831_v29  ;;  %v1490_v29 = vrot.slane %v1489_v27, 4  ;;  %v1518_v39 = vrot.slane %v1517_v52, 4  ;;  %v1477_v24 = vmax.f32 %v1475_v5, %v1476_v13  ;;  %v1466_v5 = vsel %vm5725_vm11, %v5880_v61, -3.4028235e+38 }
 0x115   : > { %8684 = vst [vmem:[#allocation39_spill] sm:$0xff] %v5838_v47  ;;  %v1511_v6 = vrot.slane %v1510_v22, 4  ;;  %v1525_v44 = vrot.slane %v1524_v62, 4  ;;  %v1484_v57 = vmax.f32 %v1482_v12, %v1483_v37  ;;  %v1505_v0 = vmax.f32 %v1503_v11, %v1504_v21  ;;  %v5886_v12 = vld [vmem:[%s4448_s29 + $0xc0] sm:$0xff] }
 0x116   : > { %8685 = vst [vmem:[#allocation40_spill] sm:$0xff] %v5844_v25  ;;  %v1491_v31 = vmax.f32 %v1489_v27, %v1490_v29  ;;  %v1519_v53 = vmax.f32 %v1517_v52, %v1518_v39  ;;  %v1478_v33 = vrot.slane %v1477_v24, 2  ;;  %v1467_v59 = vsel %vm5714_vm7, %v5886_v12, -3.4028235e+38  ;;  %v5914_v37 = vld [vmem:[%s4448_s29 + $0xe0] sm:$0xff] }
 0x117   : > { %8686 = vst [vmem:[#allocation41_spill] sm:$0xff] %v5850_v41  ;;  %v1512_v19 = vmax.f32 %v1510_v22, %v1511_v6  ;;  %v1485_v16 = vrot.slane %v1484_v57, 2  ;;  %v5892_v22 = vld [vmem:[%s4448_s29 + $0xc8] sm:$0xff] }
 0x118   : > { %8687 = vst [vmem:[#allocation42_spill] sm:$0xff] %v5856_v1  ;;  %v1492_v49 = vrot.slane %v1491_v31, 2  ;;  %v1479_v39 = vmax.f32 %v1477_v24, %v1478_v33  ;;  %v1520_v27 = vrot.slane %v1519_v53, 2  ;;  %v1468_v11 = vsel %vm5725_vm11, %v5892_v22, -3.4028235e+38  ;;  %v5908_v24 = vld [vmem:[%s4448_s29 + $0xd8] sm:$0xff] }
 0x119   : > { %8688 = vst [vmem:[#allocation43_spill] sm:$0xff] %v5862_v50  ;;  %v1513_v21 = vrot.slane %v1512_v19, 2  ;;  %v1486_v28 = vmax.f32 %v1484_v57, %v1485_v16  ;;  %v5905_v57 = vmax.f32 %v1498_v10, %v1499_v2  ;;  %v1470_v13 = vsel %vm5725_vm11, %v5908_v24, -3.4028235e+38  ;;  %v5925_v2 = vld [vmem:[%s4448_s29 + $0xe8] sm:$0xff] }
 0x11a   : > { %8689 = vst [vmem:[#allocation44_spill] sm:$0xff] %v5868_v18  ;;  %v5903_v6 = vmax.f32 %v1491_v31, %v1492_v49  ;;  %v1471_v33 = vsel %vm5714_vm7, %v5914_v37, -3.4028235e+38  ;;  %v1480_v16 = vrot.slane %v1479_v39, 1  ;;  %v1472_v10 = vsel %vm5725_vm11, %v5925_v2, -3.4028235e+38 }
 0x11b   : > { %8690 = vst [vmem:[#allocation45_spill] sm:$0xff] %v5874_v38  ;;  %v1526_v38 = vmax.f32 %v1524_v62, %v1525_v44  ;;  %v1506_v44 = vrot.slane %v1505_v0, 2  ;;  %v5898_v62 = vld [vmem:[%s4448_s29 + $0xd0] sm:$0xff]  ;;  %v5946_v61 = vmax.f32 %v1519_v53, %v1520_v27  ;;  %v1501_v4 = vrot.slane %v5905_v57, 1 }
 0x11c   : > { %8692 = vst [vmem:[#allocation47_spill] sm:$0xff] %v5886_v12  ;;  %v1469_v52 = vsel %vm5714_vm7, %v5898_v62, -3.4028235e+38  ;;  %v5931_v31 = vld [vmem:[%s4448_s29 + $0xf0] sm:$0xff]  ;;  %v1552_v27 = vmax.f32 %v1465_v54, %v1466_v5 }
 0x11d   : > { %v1527_v29 = vrot.slane %v1526_v38, 2  ;;  %8693 = vst [vmem:[#allocation48_spill] sm:$0xff] %v5892_v22  ;;  %v1487_v22 = vrot.slane %v1486_v28, 1 }
 0x11e   : > { %8694 = vst [vmem:[#allocation49_spill] sm:$0xff] %v5898_v62  ;;  %v8697_v62 = vrot.slane %v5678_v17, 4 }
 0x11f   : > { %8695 = vst [vmem:[#allocation50_spill] sm:$0xff] %v5908_v24  ;;  %v1473_v24 = vsel %vm5714_vm7, %v5931_v31, -3.4028235e+38  ;;  %v5948_v35 = vmax.f32 %v1526_v38, %v1527_v29  ;;  %v5952_v34 = vmax.f32 %v1486_v28, %v1487_v22  ;;  %v8704_v38 = vsel %vm5714_vm7, %v5850_v41, -3.4028235e+38 }
 0x120   : > { %8696 = vst [vmem:[#allocation51_spill] sm:$0xff] %v5914_v37  ;;  %v5922_v49 = vmax.f32 %v5678_v17, %v8697_v62  ;;  %v5937_v37 = vld [vmem:[%s4448_s29 + $0xf8] sm:$0xff]  ;;  %v5942_v17 = vmax.f32 %v1505_v0, %v1506_v44  ;;  %v5944_v62 = vmax.f32 %v1512_v19, %v1513_v21  ;;  %v8702_v19 = vsel %vm5714_vm7, %v5838_v47, -3.4028235e+38 }
 0x121   : > { %8698 = vst [vmem:[#allocation52_spill] sm:$0xff] %v5925_v2  ;;  %v1474_v12 = vsel %vm5725_vm11, %v5937_v37, -3.4028235e+38  ;;  %v5950_v2 = vmax.f32 %v1479_v39, %v1480_v16  ;;  %v8703_v0 = vsel %vm5725_vm11, %v5856_v1, -3.4028235e+38  ;;  %v1559_v29 = vmax.f32 %v1467_v59, %v1468_v11 }
 0x122   : > { %8699 = vst [vmem:[#allocation53_spill] sm:$0xff] %v5931_v31  ;;  %v1494_v31 = vrot.slane %v5903_v6, 1  ;;  %v1538_v44 = vmax.f32 %v8704_v38, %v8703_v0  ;;  %v8705_v21 = vsel %vm5725_vm11, %v5868_v18, -3.4028235e+38  ;;  %v8706_v39 = vsel %vm5714_vm7, %v5862_v50, -3.4028235e+38 }
 0x123   : > { %8700 = vst [vmem:[#allocation54_spill] sm:$0xff] %v5937_v37  ;;  %v8701_v37 = vsel %vm5725_vm11, %v5844_v25, -3.4028235e+38  ;;  %v1545_v28 = vmax.f32 %v8706_v39, %v8705_v21  ;;  %v1566_v22 = vmax.f32 %v1469_v52, %v1470_v13  ;;  %v1580_v16 = vmax.f32 %v1473_v24, %v1474_v12 }
 0x124   : > { %v1531_v53 = vmax.f32 %v8702_v19, %v8701_v37  ;;  %v1573_v37 = vmax.f32 %v1471_v33, %v1472_v10  ;;  %v1539_v1 = vrot.slane %v1538_v44, 4  ;;  %v1553_v41 = vrot.slane %v1552_v27, 4 }
 0x125   : > { %v1546_v25 = vrot.slane %v1545_v28, 4  ;;  %v1560_v0 = vrot.slane %v1559_v29, 4  ;;  %v1567_v38 = vrot.slane %v1566_v22, 4  ;;  %v1581_v18 = vrot.slane %v1580_v16, 4 }
 0x126   : > { %v1532_v19 = vrot.slane %v1531_v53, 4  ;;  %v1574_v32 = vrot.slane %v1573_v37, 4  ;;  %v1540_v51 = vmax.f32 %v1538_v44, %v1539_v1  ;;  %v1554_v50 = vmax.f32 %v1552_v27, %v1553_v41 }
 0x127   : > { %v1547_v48 = vmax.f32 %v1545_v28, %v1546_v25  ;;  %v1561_v21 = vmax.f32 %v1559_v29, %v1560_v0  ;;  %v1568_v54 = vmax.f32 %v1566_v22, %v1567_v38  ;;  %v1582_v59 = vmax.f32 %v1580_v16, %v1581_v18 }
 0x128   : > { %v1533_v47 = vmax.f32 %v1531_v53, %v1532_v19  ;;  %v1575_v5 = vmax.f32 %v1573_v37, %v1574_v32  ;;  %v1541_v11 = vrot.slane %v1540_v51, 2  ;;  %v1555_v24 = vrot.slane %v1554_v50, 2 }
 0x129   : > { %v1548_v52 = vrot.slane %v1547_v48, 2  ;;  %v1562_v13 = vrot.slane %v1561_v21, 2  ;;  %v1569_v33 = vrot.slane %v1568_v54, 2  ;;  %v1583_v25 = vrot.slane %v1582_v59, 2 }
 0x12a   : > { %v1534_v12 = vrot.slane %v1533_v47, 2  ;;  %v1576_v10 = vrot.slane %v1575_v5, 2  ;;  %v1542_v1 = vmax.f32 %v1540_v51, %v1541_v11  ;;  %v1556_v18 = vmax.f32 %v1554_v50, %v1555_v24 }
 0x12b   : > { %v1549_v53 = vmax.f32 %v1547_v48, %v1548_v52  ;;  %v1563_v44 = vmax.f32 %v1561_v21, %v1562_v13  ;;  %v1570_v39 = vmax.f32 %v1568_v54, %v1569_v33  ;;  %v1584_v27 = vmax.f32 %v1582_v59, %v1583_v25 }
 0x12c   : > { %v1535_v41 = vmax.f32 %v1533_v47, %v1534_v12  ;;  %v1577_v28 = vmax.f32 %v1575_v5, %v1576_v10  ;;  %v1543_v22 = vrot.slane %v1542_v1, 1  ;;  %v1557_v16 = vrot.slane %v1556_v18, 1 }
 0x12d   : > { %v1550_v37 = vrot.slane %v1549_v53, 1  ;;  %v1495_v48 = vmax.f32 %v5903_v6, %v1494_v31  ;;  %v1508_v47 = vrot.slane %v5942_v17, 1  ;;  %v1515_v50 = vrot.slane %v5944_v62, 1 }
 0x12e   : > { %v1536_v29 = vrot.slane %v1535_v41, 1  ;;  %v1564_v19 = vrot.slane %v1563_v44, 1  ;;  %v1544_v38 = vmax.f32 %v1542_v1, %v1543_v22  ;;  %v1571_v51 = vrot.slane %v1570_v39, 1 }
 0x12f   : > { %v1551_v32 = vmax.f32 %v1549_v53, %v1550_v37  ;;  %v1502_v21 = vmax.f32 %v5905_v57, %v1501_v4  ;;  %v1522_v54 = vrot.slane %v5946_v61, 1  ;;  %v1529_v6 = vrot.slane %v5948_v35, 1 }
 0x130   : > { %v1537_v0 = vmax.f32 %v1535_v41, %v1536_v29  ;;  %v1578_v31 = vrot.slane %v1577_v28, 1  ;;  %v1558_v5 = vmax.f32 %v1556_v18, %v1557_v16  ;;  %v1585_v59 = vrot.slane %v1584_v27, 1 }
 0x131   : > { %v1604_v4 = vsel %vm8707_vm12, %v5952_v34, %v5950_v2  ;;  %v1509_v12 = vmax.f32 %v5942_v17, %v1508_v47  ;;  %v1565_v11 = vmax.f32 %v1563_v44, %v1564_v19  ;;  %v1516_v13 = vmax.f32 %v5944_v62, %v1515_v50 }
 0x132   : > { %v1611_v57 = vsel %vm8708_vm10, %v1544_v38, %v1537_v0  ;;  %v1605_v52 = vsel %vm8709_vm15, %v1495_v48, %v1604_v4  ;;  %v1572_v34 = vmax.f32 %v1570_v39, %v1571_v51  ;;  %v1523_v17 = vmax.f32 %v5946_v61, %v1522_v54 }
 0x133   : > { %v1612_v24 = vsel %vm8710_vm1, %v1551_v32, %v1611_v57  ;;  %v1606_v2 = vsel %vm8711_vm8, %v1502_v21, %v1605_v52  ;;  %v1579_v62 = vmax.f32 %v1577_v28, %v1578_v31  ;;  %vm8713_vm7 = vcmask 1044484  }
 0x134   : > { %v1613_v33 = vsel %vm8712_vm13, %v1558_v5, %v1612_v24  ;;  %v1607_v10 = vsel %vm8713_vm7, %v1509_v12, %v1606_v2  ;;  %vm8714_vm5 = vmmov %vm8713_vm7  ;;  %v1530_v41 = vmax.f32 %v5948_v35, %v1529_v6  ;;  %v1586_v1 = vmax.f32 %v1584_v27, %v1585_v59 }
 0x135   : > { %v1614_v25 = vsel %vm8714_vm5, %v1565_v11, %v1613_v33  ;;  %vm8715_vm11 = vcmask 1045509   ;;  %v8717_v61 = vstv %s5656_s16  ;;  %v8720_v39 = vstv %s5667_s8  ;;  %s6208_s16 = scalar_select %p1629_p4, 1, 0 }
 0x136   : > { %v1608_v53 = vsel %vm8715_vm11, %v1516_v13, %v1607_v10  ;;  %vm8716_vm12 = vmmov %vm8715_vm11  ;;  %vm6055_vm10 = vcmp.eq.s32.totalorder %v8717_v61, 1  ;;  %vm6062_vm1 = vcmp.eq.s32.totalorder %v8720_v39, 1  ;;  %v8723_v35 = vrot.slane %v5676_v36, 2  ;;  %s6220_s8 = scalar_select %p1671_p1, 1, 0 }
 0x137   : > { %v1615_v18 = vsel %vm8716_vm12, %v1572_v34, %v1614_v25  ;;  %v1337_v29 = vrot.slane %v5792_v14, 2  ;;  %vm8725_vm8 = vcmask 1046534   ;;  %v8727_v16 = vstv %s5674_s5  ;;  %p1797_p4 = por %p6072_p10, %p5371_p7  ;;  %p6467_p1 = scmp.le.s32.totalorder %s9245_s18, %s9243_s28 }
 0x138   : > { %v1296_v27 = vmax.f32 %v5676_v36, %v8723_v35  ;;  %v1609_v22 = vsel %vm8725_vm8, %v1523_v17, %v1608_v53  ;;  %vm8726_vm13 = vmmov %vm8725_vm8  ;;  %vm6082_vm5 = vcmp.eq.s32.totalorder %v8727_v16, 1  ;;  %v1255_v36 = vrot.slane %v5772_v58, 1  ;;  %s6250_s5 = scalar_select %p1713_p3, 1, 0 }
 0x139   : > { %v1616_v37 = vsel %vm8726_vm13, %v1579_v62, %v1615_v18  ;;  %v1379_v47 = vrot.slane %v5922_v49, 2  ;;  %vm8730_vm11 = vcmask 1047559   ;;  %v1301_v0 = vstv %s6021_s26  ;;  %s6289_s15 = scalar_select %p1797_p4, 1, 0 }
 0x13a   : > { %v6089_v50 = vsel %vm8730_vm11, %v1530_v41, %v1609_v22  ;;  %vm8731_vm12 = vmmov %vm8730_vm11  ;;  %v8732_v21 = vstv %s5701_s19  ;;  %vm8735_vm13 = vnez %v8533_v43  ;;  %vm8736_vm11 = vnez %v8535_v42  ;;  %s6262_s19 = scalar_select %p1755_p12, 1, 0 }
 0x13b   : > { %v6092_v19 = vsel %vm8731_vm12, %v1586_v1, %v1616_v37  ;;  %v1620_v38 = vsel %vm4912_vm3, %v6089_v50, -3.4028235e+38  ;;  %v1662_v51 = vsel %vm4949_vm14, %v6089_v50, -3.4028235e+38  ;;  %vm6111_vm8 = vcmp.eq.s32.totalorder %v8732_v21, 1  ;;  %v8752_v37 = vld [vmem:[#allocation7_spill] sm:$0xff]  ;;  %p2127_p3 = por %p6467_p1, %p5011_p13  ;;  %p2169_p10 = por %p6467_p1, %p5037_p0 }
 0x13c   : > { %v1621_v32 = vsel %vm4933_vm6, %v6092_v19, -3.4028235e+38  ;;  %v1663_v31 = vsel %vm8735_vm13, %v6092_v19, -3.4028235e+38  ;;  %v1704_v5 = vsel %vm8736_vm11, %v6089_v50, -3.4028235e+38  ;;  %vm8737_vm12 = vnez %v8541_v23  ;;  %p2211_p12 = por %p6467_p1, %p5359_p5  ;;  %p2253_p4 = por %p6467_p1, %p5365_p6 }
 0x13d   : > { %v1622_v6 = vmax.f32 %v1620_v38, %v1621_v32  ;;  %v1705_v59 = vsel %vm8737_vm12, %v6092_v19, -3.4028235e+38  ;;  %v1297_v4 = vrot.slane %v1296_v27, 1  ;;  %v1338_v57 = vmax.f32 %v5792_v14, %v1337_v29  ;;  %v8751_v29 = vld [vmem:[#allocation22_spill] sm:$0xff]  ;;  %s6508_s26 = scalar_select %p2127_p3, 1, 0 }
 0x13e   : > { %v1343_v12 = vstv %s6038_s6  ;;  %v1385_v11 = vstv %s6048_s7  ;;  %v8738_v52 = vrot.slane %v5681_v45, 1  ;;  %v8739_v13 = vrot.slane %v5683_v15, 1  ;;  %s6522_s6 = sceil.f32 %s2419_s25  ;;  %p2295_p3 = por %p6467_p1, %p5371_p7 }
 0x13f   : > { %v8740_v2 = vrot.slane %v5752_v26, 1  ;;  %v1380_v33 = vmax.f32 %v5922_v49, %v1379_v47  ;;  %vm8741_vm12 = vnez %v8545_v55  ;;  %vm8742_vm15 = vnez %v8550_v46  ;;  %s4225_s7 = scvt.f32.s32 %s6522_s6 }
 0x140   : > { %v1130_v24 = vmax.f32 %v5681_v45, %v8738_v52  ;;  %v1172_v34 = vmax.f32 %v5683_v15, %v8739_v13  ;;  %v1664_v45 = vmax.f32 %v1662_v51, %v1663_v31  ;;  %v1706_v15 = vmax.f32 %v1704_v5, %v1705_v59  ;;  %v8812_v31 = vld [vmem:[#allocation50_spill] sm:$0xff]  ;;  %s6580_s23 = scalar_select %p2169_p10, 1, 0 }
 0x141   : > { %v1214_v14 = vmax.f32 %v5752_v26, %v8740_v2  ;;  %v1746_v26 = vsel %vm8741_vm12, %v6089_v50, -3.4028235e+38  ;;  %v1747_v17 = vsel %vm8742_vm15, %v6092_v19, -3.4028235e+38  ;;  %v1256_v49 = vmax.f32 %v5772_v58, %v1255_v36 }
 0x142   : > { %vm6159_vm7 = vcmp.eq.s32.totalorder %v1301_v0, 1  ;;  %v1623_v10 = vrot.slane %v1622_v6, 4  ;;  %v1298_v25 = vmax.f32 %v1296_v27, %v1297_v4  ;;  %v1339_v41 = vrot.slane %v1338_v57, 1  ;;  %v8755_v0 = vld [vmem:[#allocation8_spill] sm:$0xff] }
 0x143   : > { %vm6169_vm6 = vcmp.eq.s32.totalorder %v1343_v12, 1  ;;  %vm8747_vm13 = vnez %v8559_v56  ;;  %vm8748_vm15 = vnez %v8562_v63  ;;  %v1135_v18 = vsel %vm6055_vm10, 0.0, %v1130_v24 }
 0x144   : > { %v1788_v58 = vsel %vm8747_vm13, %v6089_v50, -3.4028235e+38  ;;  %v1789_v53 = vsel %vm8748_vm15, %v6092_v19, -3.4028235e+38  ;;  %v1177_v61 = vsel %vm6062_vm1, 0.0, %v1172_v34  ;;  %vm6192_vm11 = vcmp.eq.s32.totalorder %v1385_v11, 1 }
 0x145   : > { %v1748_v35 = vmax.f32 %v1746_v26, %v1747_v17  ;;  %v1219_v44 = vsel %vm6082_vm5, 0.0, %v1214_v14  ;;  %v1381_v27 = vrot.slane %v1380_v33, 1  ;;  %v1665_v28 = vrot.slane %v1664_v45, 4  ;;  %v8765_v14 = vld [vmem:[#allocation9_spill] sm:$0xff]  ;;  %v8787_v34 = vld [vmem:[#allocation24_spill] sm:$0xff] }
 0x146   : > { %v1707_v22 = vrot.slane %v1706_v15, 4  ;;  %vm8753_vm1 = vcmp.eq.s32.totalorder %v4453_v8, 1  ;;  %v1624_v48 = vmax.f32 %v1622_v6, %v1623_v10  ;;  %v1790_v36 = vmax.f32 %v1788_v58, %v1789_v53 }
 0x147   : > { %v6213_v16 = vsel %vm8753_vm1, %v1135_v18, %v8752_v37  ;;  %v1929_v47 = vstv %s9243_s28  ;;  %vm8756_vm5 = vcmp.eq.s32.totalorder %v4458_v9, 8  ;;  %v1261_v32 = vsel %vm6111_vm8, 0.0, %v1256_v49  ;;  %s6601_s28 = sadd.s32 %s4223_s11, %s4398_s24 }
 0x148   : > { %8754 = vst [vmem:[#allocation7_spill] sm:$0xff] %v6213_v16  ;;  %v1200_v38 = vsel %vm8756_vm5, %v1177_v61, %v8755_v0  ;;  %v1303_v51 = vsel %vm6159_vm7, 0.0, %v1298_v25  ;;  %v1340_v21 = vmax.f32 %v1338_v57, %v1339_v41  ;;  %v1749_v6 = vrot.slane %v1748_v35, 4  ;;  %v8782_v0 = vld [vmem:[#allocation12_spill] sm:$0xff]  ;;  %p2415_p11 = scmp.gt.s32.totalorder %s6601_s28, 0  ;;  %p4086_p10 = scmp.lt.s32.totalorder %s6601_s28, 16 }
 0x149   : > { %v1830_v5 = vsel %vm5140_vm4, %v6089_v50, -3.4028235e+38  ;;  %v1831_v4 = vsel %vm8650_vm0, %v6092_v19, -3.4028235e+38  ;;  %v1932_v54 = vstv %s9245_s18  ;;  %v1382_v12 = vmax.f32 %v1380_v33, %v1381_v27  ;;  %v8802_v41 = vld [vmem:[#allocation40_spill] sm:$0xff]  ;;  %s6620_s18 = sadd.s32 %s4225_s7, %s4398_s24  ;;  %s7141_s7 = sceil.f32 %s2917_s27 }
 0x14a   : > { %v1666_v57 = vmax.f32 %v1664_v45, %v1665_v28  ;;  %v1708_v11 = vmax.f32 %v1706_v15, %v1707_v22  ;;  %vm6253_vm7 = vcmp.ge.s32.totalorder %v4453_v8, %v1929_v47  ;;  %v1625_v24 = vrot.slane %v1624_v48, 2  ;;  %v8768_v45 = vld [vmem:[#allocation10_spill] sm:$0xff]  ;;  %v8778_v28 = vld [vmem:[#allocation11_spill] sm:$0xff]  ;;  %p2423_p2 = scmp.gt.s32.totalorder %s6620_s18, 0 }
 0x14b   : > { %v1791_v13 = vrot.slane %v1790_v36, 4  ;;  %vm6265_vm8 = vcmp.ge.s32.totalorder %v4458_v9, %v1929_v47  ;;  %vm1933_vm1 = vcmp.lt.s32.totalorder %v4453_v8, %v1932_v54  ;;  %vm8763_vm5 = vcmp.eq.s32.totalorder %v4458_v9, 15 }
 0x14c   : > { %v6272_v2 = vsel %vm8763_vm5, %v1219_v44, %v1200_v38  ;;  %vm8766_vm10 = vcmp.eq.s32.totalorder %v5086_v7, 22  ;;  %vm8769_vm12 = vcmp.eq.s32.totalorder %v8640_v20, 29  ;;  %v1832_v26 = vmax.f32 %v1830_v5, %v1831_v4 }
 0x14d   : > { %8764 = vst [vmem:[#allocation8_spill] sm:$0xff] %v6272_v2  ;;  %v6277_v33 = vsel %vm8766_vm10, %v1261_v32, %v8765_v14  ;;  %v6282_v15 = vsel %vm8769_vm12, %v1303_v51, %v8768_v45  ;;  %v1345_v17 = vsel %vm6169_vm6, 0.0, %v1340_v21  ;;  %v1750_v62 = vmax.f32 %v1748_v35, %v1749_v6  ;;  %vm6304_vm10 = vmand %vm6253_vm7, %vm1933_vm1  ;;  %v8788_v45 = vld [vmem:[#allocation27_spill] sm:$0xff]  ;;  %v8800_v6 = vld [vmem:[#allocation38_spill] sm:$0xff] }
 0x14e   : > { %8767 = vst [vmem:[#allocation9_spill] sm:$0xff] %v6277_v33  ;;  %vm1934_vm12 = vcmp.lt.s32.totalorder %v4458_v9, %v1932_v54  ;;  %v1387_v25 = vsel %vm6192_vm11, 0.0, %v1382_v12  ;;  %v1872_v58 = vsel %vm5192_vm9, %v6089_v50, -3.4028235e+38  ;;  %v1873_v18 = vsel %vm5203_vm2, %v6092_v19, -3.4028235e+38 }
 0x14f   : > { %8770 = vst [vmem:[#allocation10_spill] sm:$0xff] %v6282_v15  ;;  %vm6319_vm6 = vmand %vm6265_vm8, %vm1934_vm12  ;;  %v6323_v39 = vmax.f32 %v1624_v48, %v1625_v24  ;;  %v1667_v35 = vrot.slane %v1666_v57, 2  ;;  %v1709_v44 = vrot.slane %v1708_v11, 2  ;;  %v6325_v27 = vmax.f32 %v1790_v36, %v1791_v13  ;;  %v8781_v19 = vld [vmem:[#allocation23_spill] sm:$0xff]  ;;  %v8785_v36 = vld [vmem:[#allocation26_spill] sm:$0xff] }
 0x150   : > { %vm8779_vm11 = vcmp.eq.s32.totalorder %v8643_v30, 36  ;;  %v1833_v37 = vrot.slane %v1832_v26, 4  ;;  %v1941_v47 = vsel %vm6304_vm10, %v8781_v19, -3.4028235e+38  ;;  %vm8783_vm7 = vcmp.eq.s32.totalorder %v8751_v29, 43  ;;  %v8793_v19 = vld [vmem:[#allocation31_spill] sm:$0xff] }
 0x151   : > { %8777 = vst [vmem:[#allocation55_spill] sm:$0xff] %v6323_v39  ;;  %v6330_v50 = vsel %vm8779_vm11, %v1345_v17, %v8778_v28  ;;  %v6339_v48 = vsel %vm8783_vm7, %v1387_v25, %v8782_v0  ;;  %v1751_v38 = vrot.slane %v1750_v62, 2  ;;  %v1942_v51 = vsel %vm6319_vm6, %v8785_v36, -3.4028235e+38  ;;  %v8789_v25 = vld [vmem:[#allocation25_spill] sm:$0xff]  ;;  %v8801_v32 = vld [vmem:[#allocation39_spill] sm:$0xff] }
 0x152   : > { %8780 = vst [vmem:[#allocation11_spill] sm:$0xff] %v6330_v50  ;;  %v6347_v5 = vmax.f32 %v1872_v58, %v1873_v18  ;;  %v1973_v4 = vmax.f32 %v1941_v47, %v1942_v51  ;;  %v6350_v12 = vmax.f32 %v1666_v57, %v1667_v35  ;;  %v6352_v52 = vmax.f32 %v1708_v11, %v1709_v44  ;;  %v8790_v11 = vld [vmem:[#allocation28_spill] sm:$0xff]  ;;  %v8792_v44 = vld [vmem:[#allocation30_spill] sm:$0xff]  ;;  %v8795_v36 = vld [vmem:[#allocation33_spill] sm:$0xff] }
 0x153   : > { %8784 = vst [vmem:[#allocation23_spill] sm:$0xff] %v6339_v48  ;;  %v6355_v13 = vmax.f32 %v1832_v26, %v1833_v37  ;;  %v1943_v14 = vsel %vm6304_vm10, %v8787_v34, -3.4028235e+38  ;;  %v1944_v17 = vsel %vm6319_vm6, %v8788_v45, -3.4028235e+38  ;;  %v6366_v57 = vmax.f32 %v1750_v62, %v1751_v38  ;;  %v8791_v26 = vld [vmem:[#allocation29_spill] sm:$0xff] }
 0x154   : > { %8786 = vst [vmem:[#allocation12_spill] sm:$0xff] %v6350_v12  ;;  %v1945_v58 = vsel %vm6304_vm10, %v8789_v25, -3.4028235e+38  ;;  %v1946_v18 = vsel %vm6319_vm6, %v8790_v11, -3.4028235e+38  ;;  %v8794_v62 = vld [vmem:[#allocation32_spill] sm:$0xff] }
 0x155   : > { %v1947_v35 = vsel %vm6304_vm10, %v8791_v26, -3.4028235e+38  ;;  %v1948_v28 = vsel %vm6319_vm6, %v8792_v44, -3.4028235e+38  ;;  %v1949_v47 = vsel %vm6304_vm10, %v8793_v19, -3.4028235e+38  ;;  %v1980_v26 = vmax.f32 %v1943_v14, %v1944_v17 }
 0x156   : > { %v1950_v0 = vsel %vm6319_vm6, %v8794_v62, -3.4028235e+38  ;;  %v1974_v38 = vrot.slane %v1973_v4, 4  ;;  %v1951_v51 = vsel %vm6304_vm10, %v8795_v36, -3.4028235e+38  ;;  %v8796_v34 = vld [vmem:[#allocation34_spill] sm:$0xff]  ;;  %v1987_v21 = vmax.f32 %v1945_v58, %v1946_v18 }
 0x157   : > { %v1952_v45 = vsel %vm6319_vm6, %v8796_v34, -3.4028235e+38  ;;  %v8797_v25 = vld [vmem:[#allocation35_spill] sm:$0xff]  ;;  %v8798_v44 = vld [vmem:[#allocation36_spill] sm:$0xff]  ;;  %v8799_v54 = vld [vmem:[#allocation37_spill] sm:$0xff]  ;;  %v2001_v18 = vmax.f32 %v1949_v47, %v1950_v0  ;;  %vm8818_vm8 = vcmask 1041409  }
 0x158   : > { %v1953_v11 = vsel %vm6304_vm10, %v8797_v25, -3.4028235e+38  ;;  %v1954_v19 = vsel %vm6319_vm6, %v8798_v44, -3.4028235e+38  ;;  %v1955_v62 = vsel %vm6304_vm10, %v8799_v54, -3.4028235e+38  ;;  %v1975_v17 = vmax.f32 %v1973_v4, %v1974_v38  ;;  %vm8822_vm12 = vmmov %vm8818_vm8 }
 0x159   : > { %v1956_v36 = vsel %vm6319_vm6, %v8800_v6, -3.4028235e+38  ;;  %v1957_v34 = vsel %vm6304_vm10, %v8801_v32, -3.4028235e+38  ;;  %v1958_v14 = vsel %vm6319_vm6, %v8802_v41, -3.4028235e+38  ;;  %v1994_v25 = vmax.f32 %v1947_v35, %v1948_v28 }
 0x15a   : > { %v8803_v44 = vld [vmem:[#allocation41_spill] sm:$0xff]  ;;  %v8804_v54 = vld [vmem:[#allocation42_spill] sm:$0xff]  ;;  %v8805_v6 = vld [vmem:[#allocation43_spill] sm:$0xff]  ;;  %v2008_v38 = vmax.f32 %v1951_v51, %v1952_v45  ;;  %v1976_v48 = vrot.slane %v1975_v17, 2  ;;  %v1988_v53 = vrot.slane %v1987_v21, 4  ;;  %v2002_v50 = vrot.slane %v2001_v18, 4 }
 0x15b   : > { %v1959_v49 = vsel %vm6304_vm10, %v8803_v44, -3.4028235e+38  ;;  %v1960_v24 = vsel %vm6319_vm6, %v8804_v54, -3.4028235e+38  ;;  %v1961_v58 = vsel %vm6304_vm10, %v8805_v6, -3.4028235e+38  ;;  %v2022_v45 = vmax.f32 %v1955_v62, %v1956_v36 }
 0x15c   : > { %v8806_v32 = vld [vmem:[#allocation44_spill] sm:$0xff]  ;;  %v8807_v41 = vld [vmem:[#allocation45_spill] sm:$0xff]  ;;  %v8808_v35 = vld [vmem:[#allocation46_spill] sm:$0xff]  ;;  %v1995_v1 = vrot.slane %v1994_v25, 4  ;;  %v1977_v15 = vmax.f32 %v1975_v17, %v1976_v48  ;;  %v2003_v29 = vmax.f32 %v2001_v18, %v2002_v50  ;;  %vm8819_vm1 = vcmask 1042434  }
 0x15d   : > { %v1962_v22 = vsel %vm6319_vm6, %v8806_v32, -3.4028235e+38  ;;  %v1963_v4 = vsel %vm6304_vm10, %v8807_v41, -3.4028235e+38  ;;  %v1964_v28 = vsel %vm6319_vm6, %v8808_v35, -3.4028235e+38  ;;  %v2015_v32 = vmax.f32 %v1953_v11, %v1954_v19 }
 0x15e   : > { %v8809_v44 = vld [vmem:[#allocation47_spill] sm:$0xff]  ;;  %v8810_v37 = vld [vmem:[#allocation48_spill] sm:$0xff]  ;;  %v8811_v0 = vld [vmem:[#allocation49_spill] sm:$0xff]  ;;  %v1981_v41 = vrot.slane %v1980_v26, 4  ;;  %v2009_v35 = vrot.slane %v2008_v38, 4  ;;  %v1996_v16 = vmax.f32 %v1994_v25, %v1995_v1  ;;  %v2023_v59 = vrot.slane %v2022_v45, 4 }
 0x15f   : > { %v1965_v54 = vsel %vm6304_vm10, %v8809_v44, -3.4028235e+38  ;;  %v1966_v47 = vsel %vm6319_vm6, %v8810_v37, -3.4028235e+38  ;;  %v1967_v6 = vsel %vm6304_vm10, %v8811_v0, -3.4028235e+38  ;;  %v1989_v44 = vmax.f32 %v1987_v21, %v1988_v53 }
 0x160   : > { %v2016_v51 = vrot.slane %v2015_v32, 4  ;;  %v1982_v2 = vmax.f32 %v1980_v26, %v1981_v41  ;;  %v2010_v33 = vmax.f32 %v2008_v38, %v2009_v35  ;;  %v1968_v11 = vsel %vm6319_vm6, %v8812_v31, -3.4028235e+38  ;;  %v8813_v31 = vld [vmem:[#allocation51_spill] sm:$0xff]  ;;  %v8814_v25 = vld [vmem:[#allocation52_spill] sm:$0xff] }
 0x161   : > { %v1990_v0 = vrot.slane %v1989_v44, 2  ;;  %v1997_v39 = vrot.slane %v1996_v16, 2  ;;  %v2004_v30 = vrot.slane %v2003_v29, 2  ;;  %v2024_v56 = vmax.f32 %v2022_v45, %v2023_v59 }
 0x162   : > { %v2017_v37 = vmax.f32 %v2015_v32, %v2016_v51  ;;  %v1983_v19 = vrot.slane %v1982_v2, 2  ;;  %v2011_v20 = vrot.slane %v2010_v33, 2  ;;  %v1978_v62 = vrot.slane %v1977_v15, 1 }
 0x163   : > { %v1991_v26 = vmax.f32 %v1989_v44, %v1990_v0  ;;  %v6438_v53 = vmax.f32 %v1996_v16, %v1997_v39  ;;  %v6440_v1 = vmax.f32 %v2003_v29, %v2004_v30  ;;  %v2025_v36 = vrot.slane %v2024_v56, 2  ;;  %v8815_v39 = vld [vmem:[#allocation53_spill] sm:$0xff]  ;;  %v8816_v30 = vld [vmem:[#allocation54_spill] sm:$0xff] }
 0x164   : > { %v2018_v63 = vrot.slane %v2017_v37, 2  ;;  %v1984_v48 = vmax.f32 %v1982_v2, %v1983_v19  ;;  %v6442_v50 = vmax.f32 %v2010_v33, %v2011_v20  ;;  %v1969_v17 = vsel %vm6304_vm10, %v8813_v31, -3.4028235e+38 }
 0x165   : > { %v1970_v59 = vsel %vm6319_vm6, %v8814_v25, -3.4028235e+38  ;;  %v2029_v2 = vmax.f32 %v1957_v34, %v1958_v14  ;;  %v1971_v20 = vsel %vm6304_vm10, %v8815_v39, -3.4028235e+38  ;;  %v1992_v29 = vrot.slane %v1991_v26, 1 }
 0x166   : > { %v6444_v21 = vmax.f32 %v2017_v37, %v2018_v63  ;;  %v1985_v18 = vrot.slane %v1984_v48, 1  ;;  %v1972_v63 = vsel %vm6319_vm6, %v8816_v30, -3.4028235e+38  ;;  %v1979_v33 = vmax.f32 %v1977_v15, %v1978_v62  ;;  %vm8824_vm6 = vmmov %vm8819_vm1 }
 0x167   : > { %v1999_v38 = vrot.slane %v6438_v53, 1  ;;  %v2006_v32 = vrot.slane %v6440_v1, 1  ;;  %v2030_v41 = vrot.slane %v2029_v2, 4  ;;  %v2013_v34 = vrot.slane %v6442_v50, 1 }
 0x168   : > { %v1986_v35 = vmax.f32 %v1984_v48, %v1985_v18  ;;  %v2020_v14 = vrot.slane %v6444_v21, 1  ;;  %v6463_v51 = vmax.f32 %v2024_v56, %v2025_v36  ;;  %v2036_v45 = vmax.f32 %v1959_v49, %v1960_v24 }
 0x169   : > { %v2031_v10 = vmax.f32 %v2029_v2, %v2030_v41  ;;  %v2043_v44 = vmax.f32 %v1961_v58, %v1962_v22  ;;  %v2050_v37 = vmax.f32 %v1963_v4, %v1964_v28  ;;  %v1993_v61 = vmax.f32 %v1991_v26, %v1992_v29 }
 0x16a   : > { %v2057_v19 = vmax.f32 %v1965_v54, %v1966_v47  ;;  %v2064_v0 = vmax.f32 %v1967_v6, %v1968_v11  ;;  %v2071_v15 = vmax.f32 %v1969_v17, %v1970_v59  ;;  %v2037_v31 = vrot.slane %v2036_v45, 4 }
 0x16b   : > { %v2032_v62 = vrot.slane %v2031_v10, 2  ;;  %v2044_v25 = vrot.slane %v2043_v44, 4  ;;  %v2051_v39 = vrot.slane %v2050_v37, 4  ;;  %v2078_v16 = vmax.f32 %v1971_v20, %v1972_v63 }
 0x16c   : > { %v2058_v30 = vrot.slane %v2057_v19, 4  ;;  %v2065_v48 = vrot.slane %v2064_v0, 4  ;;  %v2072_v18 = vrot.slane %v2071_v15, 4  ;;  %v2038_v56 = vmax.f32 %v2036_v45, %v2037_v31 }
 0x16d   : > { %v2033_v12 = vmax.f32 %v2031_v10, %v2032_v62  ;;  %v2045_v36 = vmax.f32 %v2043_v44, %v2044_v25  ;;  %v2052_v49 = vmax.f32 %v2050_v37, %v2051_v39  ;;  %v2079_v4 = vrot.slane %v2078_v16, 4 }
 0x16e   : > { %v2059_v22 = vmax.f32 %v2057_v19, %v2058_v30  ;;  %v2066_v24 = vmax.f32 %v2064_v0, %v2065_v48  ;;  %v2073_v58 = vmax.f32 %v2071_v15, %v2072_v18  ;;  %v2039_v54 = vrot.slane %v2038_v56, 2 }
 0x16f   : > { %v2034_v28 = vrot.slane %v2033_v12, 1  ;;  %v2046_v47 = vrot.slane %v2045_v36, 2  ;;  %v2053_v6 = vrot.slane %v2052_v49, 2  ;;  %v2080_v59 = vmax.f32 %v2078_v16, %v2079_v4 }
 0x170   : > { %v2060_v11 = vrot.slane %v2059_v22, 2  ;;  %v2067_v26 = vrot.slane %v2066_v24, 2  ;;  %v2074_v17 = vrot.slane %v2073_v58, 2  ;;  %v2040_v20 = vmax.f32 %v2038_v56, %v2039_v54 }
 0x171   : > { %v2035_v2 = vmax.f32 %v2033_v12, %v2034_v28  ;;  %v2047_v63 = vmax.f32 %v2045_v36, %v2046_v47  ;;  %v2054_v29 = vmax.f32 %v2052_v49, %v2053_v6  ;;  %v2081_v44 = vrot.slane %v2080_v59, 2 }
 0x172   : > { %v2061_v41 = vmax.f32 %v2059_v22, %v2060_v11  ;;  %v2068_v10 = vmax.f32 %v2066_v24, %v2067_v26  ;;  %v2075_v45 = vmax.f32 %v2073_v58, %v2074_v17  ;;  %v2041_v37 = vrot.slane %v2040_v20, 1 }
 0x173   : > { %v2048_v19 = vrot.slane %v2047_v63, 1  ;;  %v2055_v16 = vrot.slane %v2054_v29, 1  ;;  %v2102_v12 = vsel %vm8818_vm8, %v1986_v35, %v1979_v33  ;;  %v2000_v0 = vmax.f32 %v6438_v53, %v1999_v38 }
 0x174   : > { %v2027_v15 = vrot.slane %v6463_v51, 1  ;;  %v2062_v62 = vrot.slane %v2061_v41, 1  ;;  %v2082_v31 = vmax.f32 %v2080_v59, %v2081_v44  ;;  %v2042_v25 = vmax.f32 %v2040_v20, %v2041_v37 }
 0x175   : > { %v2049_v39 = vmax.f32 %v2047_v63, %v2048_v19  ;;  %v2069_v30 = vrot.slane %v2068_v10, 1  ;;  %v2103_v48 = vsel %vm8819_vm1, %v1993_v61, %v2102_v12  ;;  %v8820_v18 = vrot.slane %v6347_v5, 4 }
 0x176   : > { %v2007_v53 = vmax.f32 %v6440_v1, %v2006_v32  ;;  %v2014_v38 = vmax.f32 %v6442_v50, %v2013_v34  ;;  %v2076_v35 = vrot.slane %v2075_v45, 1  ;;  %v2056_v56 = vmax.f32 %v2054_v29, %v2055_v16 }
 0x177   : > { %v1876_v33 = vmax.f32 %v6347_v5, %v8820_v18  ;;  %v2083_v36 = vrot.slane %v2082_v31, 1  ;;  %vm8821_vm5 = vcmask 1043459   ;;  %v2109_v49 = vsel %vm8822_vm12, %v2042_v25, %v2035_v2 }
 0x178   : > { %v2104_v61 = vsel %vm8821_vm5, %v2000_v0, %v2103_v48  ;;  %v2021_v5 = vmax.f32 %v6444_v21, %v2020_v14  ;;  %v2063_v1 = vmax.f32 %v2061_v41, %v2062_v62  ;;  %vm8823_vm10 = vcmask 1044484   ;;  %vm8826_vm7 = vmmov %vm8821_vm5 }
 0x179   : > { %v2105_v50 = vsel %vm8823_vm10, %v2007_v53, %v2104_v61  ;;  %v2110_v32 = vsel %vm8824_vm6, %v2049_v39, %v2109_v49  ;;  %v2028_v34 = vmax.f32 %v6463_v51, %v2027_v15  ;;  %v2070_v22 = vmax.f32 %v2068_v10, %v2069_v30  ;;  %vm8828_vm1 = vmmov %vm8823_vm10 }
 0x17a   : > { %vm8825_vm11 = vcmask 1045509   ;;  %v2111_v58 = vsel %vm8826_vm7, %v2056_v56, %v2110_v32  ;;  %v1711_v21 = vrot.slane %v6352_v52, 1  ;;  %v2077_v14 = vmax.f32 %v2075_v45, %v2076_v35  ;;  %v8855_v32 = vld [vmem:[#allocation18_spill] sm:$0xff] }
 0x17b   : > { %v2106_v24 = vsel %vm8825_vm11, %v2014_v38, %v2105_v50  ;;  %vm8827_vm8 = vcmask 1046534   ;;  %v2112_v28 = vsel %vm8828_vm1, %v2063_v1, %v2111_v58  ;;  %v1835_v51 = vrot.slane %v6355_v13, 2  ;;  %vm8830_vm12 = vmmov %vm8825_vm11  ;;  %v8854_v50 = vld [vmem:[#allocation17_spill] sm:$0xff] }
 0x17c   : > { %v2107_v4 = vsel %vm8827_vm8, %v2021_v5, %v2106_v24  ;;  %v2084_v54 = vmax.f32 %v2082_v31, %v2083_v36  ;;  %vm8829_vm5 = vcmask 1047559   ;;  %v2113_v6 = vsel %vm8830_vm12, %v2070_v22, %v2112_v28  ;;  %vm8831_vm10 = vmmov %vm8827_vm8  ;;  %v8873_v31 = vld [vmem:[#allocation7_spill] sm:$0xff] }
 0x17d   : > { %v6526_v47 = vsel %vm8829_vm5, %v2028_v34, %v2107_v4  ;;  %v2114_v11 = vsel %vm8831_vm10, %v2077_v14, %v2113_v6  ;;  %vm8832_vm6 = vnez %v8535_v42  ;;  %v1753_v2 = vrot.slane %v6366_v57, 1  ;;  %vm8833_vm7 = vmmov %vm8829_vm5  ;;  %v8862_v6 = vld [vmem:[#allocation55_spill] sm:$0xff] }
 0x17e   : > { %v2118_v26 = vsel %vm4912_vm3, %v6526_v47, -3.4028235e+38  ;;  %v2160_v17 = vsel %vm4949_vm14, %v6526_v47, -3.4028235e+38  ;;  %v2202_v59 = vsel %vm8832_vm6, %v6526_v47, -3.4028235e+38  ;;  %v6547_v63 = vsel %vm8833_vm7, %v2084_v54, %v2114_v11 }
 0x17f   : > { %v1877_v20 = vrot.slane %v1876_v33, 2  ;;  %vm8834_vm8 = vnez %v8545_v55  ;;  %v8835_v41 = vstv %s6250_s5  ;;  %v8838_v45 = vrot.slane %v6325_v27, 2  ;;  %s2416_s5 = scalar_select %p2415_p11, %s6601_s28, 0 }
 0x180   : > { %v2244_v29 = vsel %vm8834_vm8, %v6526_v47, -3.4028235e+38  ;;  %vm6555_vm1 = vcmp.eq.s32.totalorder %v8835_v41, 1  ;;  %vm8839_vm5 = vnez %v8529_v3  ;;  %vm8840_vm12 = vnez %v8533_v43  ;;  %p2379_p11 = por %p6467_p1, %p5383_p9 }
 0x181   : > { %v1794_v44 = vmax.f32 %v6325_v27, %v8838_v45  ;;  %v2119_v37 = vsel %vm8839_vm5, %v6547_v63, -3.4028235e+38  ;;  %v2161_v19 = vsel %vm8840_vm12, %v6547_v63, -3.4028235e+38  ;;  %vm8841_vm10 = vnez %v8541_v23  ;;  %s9247_s5 = smov (!%p4086_p10, %s2416_s5), 16 }
 0x182   : > { %v2203_v16 = vsel %vm8841_vm10, %v6547_v63, -3.4028235e+38  ;;  %v2120_v12 = vmax.f32 %v2118_v26, %v2119_v37  ;;  %v2162_v27 = vmax.f32 %v2160_v17, %v2161_v19  ;;  %vm8842_vm7 = vnez %v8550_v46  ;;  %v8864_v17 = vld [vmem:[#allocation12_spill] sm:$0xff] }
 0x183   : > { %v2204_v0 = vmax.f32 %v2202_v59, %v2203_v16  ;;  %v2245_v15 = vsel %vm8842_vm7, %v6547_v63, -3.4028235e+38  ;;  %v8843_v62 = vstv %s6208_s16  ;;  %v1836_v25 = vmax.f32 %v6355_v13, %v1835_v51  ;;  %s6631_s16 = scalar_select %p2211_p12, 1, 0 }
 0x184   : > { %vm6587_vm11 = vcmp.eq.s32.totalorder %v8843_v62, 1  ;;  %v2246_v39 = vmax.f32 %v2244_v29, %v2245_v15  ;;  %v2286_v48 = vsel %vm8747_vm13, %v6526_v47, -3.4028235e+38  ;;  %v2287_v53 = vsel %vm8748_vm15, %v6547_v63, -3.4028235e+38  ;;  %p2337_p12 = por %p6467_p1, %p5377_p8 }
 0x185   : > { %v8848_v38 = vstv %s6220_s8  ;;  %v8851_v13 = vstv %s6262_s19  ;;  %v1878_v36 = vmax.f32 %v1876_v33, %v1877_v20  ;;  %v2121_v61 = vrot.slane %v2120_v12, 4  ;;  %s6660_s8 = scalar_select %p2253_p4, 1, 0 }
 0x186   : > { %vm6605_vm8 = vcmp.eq.s32.totalorder %v8848_v38, 1  ;;  %vm6611_vm10 = vcmp.eq.s32.totalorder %v8851_v13, 1  ;;  %v2163_v49 = vrot.slane %v2162_v27, 4  ;;  %v2288_v5 = vmax.f32 %v2286_v48, %v2287_v53  ;;  %v8870_v48 = vld [vmem:[#allocation9_spill] sm:$0xff]  ;;  %s2424_s19 = scalar_select %p2423_p2, %s6620_s18, 0 }
 0x187   : > { %v1712_v1 = vmax.f32 %v6352_v52, %v1711_v21  ;;  %vm1762_vm15 = vcmp.eq.s32.totalorder %v5086_v7, 23  ;;  %v1795_v33 = vrot.slane %v1794_v44, 1  ;;  %v8856_v34 = vstv %s6289_s15  ;;  %p4091_p4 = scmp.lt.s32.totalorder %s6620_s18, 16  ;;  %s4229_s18 = scvt.f32.s32 %s7141_s7 }
 0x188   : > { %vm6635_vm6 = vcmp.eq.s32.totalorder %v8856_v34, 1  ;;  %v8859_v52 = vstv %s6299_s10  ;;  %v2122_v58 = vmax.f32 %v2120_v12, %v2121_v61  ;;  %v2164_v21 = vmax.f32 %v2162_v27, %v2163_v49  ;;  %v8872_v49 = vld [vmem:[#allocation22_spill] sm:$0xff]  ;;  %s6756_s15 = scalar_select %p2295_p3, 1, 0 }
 0x189   : > { %vm6641_vm12 = vcmp.eq.s32.totalorder %v8859_v52, 1  ;;  %v2205_v14 = vrot.slane %v2204_v0, 4  ;;  %v1837_v4 = vrot.slane %v1836_v25, 1  ;;  %v1883_v28 = vstv %s6494_s0  ;;  %s9249_s19 = smov (!%p4091_p4, %s2424_s19), 16 }
 0x18a   : > { %v2247_v51 = vrot.slane %v2246_v39, 4  ;;  %v2289_v54 = vrot.slane %v2288_v5, 4  ;;  %v8863_v11 = vrot.slane %v8862_v6, 1  ;;  %v8865_v59 = vrot.slane %v8864_v17, 1  ;;  %s6765_s10 = scalar_select %p2337_p12, 1, 0 }
 0x18b   : > { %v1754_v29 = vmax.f32 %v6366_v57, %v1753_v2  ;;  %v1879_v41 = vrot.slane %v1878_v36, 1  ;;  %v2123_v45 = vrot.slane %v2122_v58, 2  ;;  %v2165_v37 = vrot.slane %v2164_v21, 2  ;;  %s6776_s0 = scalar_select %p2379_p11, 1, 0 }
 0x18c   : > { %v1628_v26 = vmax.f32 %v8862_v6, %v8863_v11  ;;  %v1670_v20 = vmax.f32 %v8864_v17, %v8865_v59  ;;  %v2328_v16 = vsel %vm5140_vm4, %v6526_v47, -3.4028235e+38  ;;  %v2329_v57 = vsel %vm8650_vm0, %v6547_v63, -3.4028235e+38  ;;  %p7071_p1 = scmp.le.s32.totalorder %s9249_s19, %s9247_s5 }
 0x18d   : > { %v1717_v2 = vsel %vm6555_vm1, 0.0, %v1712_v1  ;;  %v1796_v27 = vmax.f32 %v1794_v44, %v1795_v33  ;;  %vm6670_vm7 = vcmp.eq.s32.totalorder %v1883_v28, 1  ;;  %v2206_v62 = vmax.f32 %v2204_v0, %v2205_v14  ;;  %v8875_v33 = vld [vmem:[#allocation8_spill] sm:$0xff] }
 0x18e   : > { %vm8871_vm13 = vcmp.eq.s32.totalorder %v5086_v7, 16  ;;  %v1838_v38 = vmax.f32 %v1836_v25, %v1837_v4  ;;  %v2248_v13 = vmax.f32 %v2246_v39, %v2247_v51  ;;  %v2290_v10 = vmax.f32 %v2288_v5, %v2289_v54  ;;  %v8879_v4 = vld [vmem:[#allocation10_spill] sm:$0xff]  ;;  %v8882_v51 = vld [vmem:[#allocation11_spill] sm:$0xff]  ;;  %p2625_p2 = por %p7071_p1, %p5011_p13  ;;  %p2667_p3 = por %p7071_p1, %p5037_p0 }
 0x18f   : > { %v1741_v53 = vsel %vm8871_vm13, %v1717_v2, %v8870_v48  ;;  %v1633_v44 = vsel %vm6587_vm11, 0.0, %v1628_v26  ;;  %v1880_v61 = vmax.f32 %v1878_v36, %v1879_v41  ;;  %vm1891_vm1 = vcmp.eq.s32.totalorder %v8872_v49, 44  ;;  %p2709_p10 = por %p7071_p1, %p5359_p5  ;;  %p2751_p12 = por %p7071_p1, %p5365_p6 }
 0x190   : > { %v2330_v0 = vmax.f32 %v2328_v16, %v2329_v57  ;;  %v1675_v1 = vsel %vm6605_vm8, 0.0, %v1670_v20  ;;  %v1759_v25 = vsel %vm6611_vm10, 0.0, %v1754_v29  ;;  %v2124_v39 = vmax.f32 %v2122_v58, %v2123_v45  ;;  %v8887_v29 = vld [vmem:[#allocation23_spill] sm:$0xff]  ;;  %s7134_s11 = scalar_select %p2667_p3, 1, 0 }
 0x191   : > { %v2166_v5 = vmax.f32 %v2164_v21, %v2165_v37  ;;  %vm8874_vm13 = vcmp.eq.s32.totalorder %v4453_v8, 2  ;;  %vm8876_vm11 = vcmp.eq.s32.totalorder %v4458_v9, 9  ;;  %v6712_v56 = vsel %vm1762_vm15, %v1759_v25, %v1741_v53  ;;  %p2793_p3 = por %p7071_p1, %p5371_p7 }
 0x192   : > { %v6703_v36 = vsel %vm8874_vm13, %v1633_v44, %v8873_v31  ;;  %v6708_v35 = vsel %vm8876_vm11, %v1675_v1, %v8875_v33  ;;  %8878 = vst [vmem:[#allocation24_spill] sm:$0xff] %v6712_v56  ;;  %v2207_v34 = vrot.slane %v2206_v62, 2  ;;  %v1801_v52 = vsel %vm6635_vm6, 0.0, %v1796_v27  ;;  %v6882_v31 = vld [vmem:[%s4448_s29 + $0x50] sm:$0xff] }
 0x193   : > { %8877 = vst [vmem:[#allocation26_spill] sm:$0xff] %v6708_v35  ;;  %v1843_v58 = vsel %vm6641_vm12, 0.0, %v1838_v38  ;;  %v2249_v21 = vrot.slane %v2248_v13, 2  ;;  %v2291_v14 = vrot.slane %v2290_v10, 2  ;;  %vm8880_vm15 = vcmp.eq.s32.totalorder %v8854_v50, 30 }
 0x194   : > { %v6725_v28 = vsel %vm8880_vm15, %v1801_v52, %v8879_v4  ;;  %vm8883_vm8 = vcmp.eq.s32.totalorder %v8855_v32, 37  ;;  %v1885_v24 = vsel %vm6670_vm7, 0.0, %v1880_v61  ;;  %v2331_v54 = vrot.slane %v2330_v0, 4  ;;  %v6822_v4 = vld [vmem:[%s4448_s29 + $0x10] sm:$0xff]  ;;  %8910 = vst [vmem:[#allocation42_spill] sm:$0xff] %v6882_v31 }
 0x195   : > { %8881 = vst [vmem:[#allocation27_spill] sm:$0xff] %v6725_v28  ;;  %v6730_v22 = vsel %vm8883_vm8, %v1843_v58, %v8882_v51  ;;  %v2125_v6 = vrot.slane %v2124_v39, 1  ;;  %v2167_v11 = vrot.slane %v2166_v5, 1  ;;  %v2370_v17 = vsel %vm5192_vm9, %v6526_v47, -3.4028235e+38  ;;  %v6876_v58 = vld [vmem:[%s4448_s29 + $0x48] sm:$0xff] }
 0x196   : > { %8884 = vst [vmem:[#allocation25_spill] sm:$0xff] %v6730_v22  ;;  %v2371_v20 = vsel %vm5203_vm2, %v6547_v63, -3.4028235e+38  ;;  %v6747_v41 = vsel %vm1891_vm1, %v1885_v24, %v8887_v29  ;;  %v2129_v45 = vstv %s6508_s26  ;;  %v2171_v37 = vstv %s6580_s23  ;;  %s7095_s26 = sfloor.f32 %s2419_s25 }
 0x197   : > { %8888 = vst [vmem:[#allocation28_spill] sm:$0xff] %v6747_v41  ;;  %v2208_v16 = vmax.f32 %v2206_v62, %v2207_v34  ;;  %v2250_v57 = vmax.f32 %v2248_v13, %v2249_v21  ;;  %v6758_v2 = vmax.f32 %v2290_v10, %v2291_v14  ;;  %v2427_v47 = vstv %s9247_s5  ;;  %v6816_v21 = vld [vmem:[%s4448_s29] sm:$0xff]  ;;  %v6900_v10 = vld [vmem:[%s4448_s29 + $0x68] sm:$0xff]  ;;  %s7118_s25 = scalar_select %p2625_p2, 1, 0 }
 0x198   : > { %v2430_v63 = vstv %s9249_s19  ;;  %v6769_v27 = vmax.f32 %v2330_v0, %v2331_v54  ;;  %v2372_v15 = vmax.f32 %v2370_v17, %v2371_v20  ;;  %vm2428_vm6 = vcmp.ge.s32.totalorder %v4453_v8, %v2427_v47  ;;  %8899 = vst [vmem:[#allocation31_spill] sm:$0xff] %v6816_v21  ;;  %v6830_v54 = vld [vmem:[%s4448_s29 + $0x8] sm:$0xff]  ;;  %v6842_v20 = vld [vmem:[%s4448_s29 + $0x20] sm:$0xff]  ;;  %s4227_s6 = scvt.f32.s32 %s7095_s26 }
 0x199   : > { %vm2429_vm12 = vcmp.ge.s32.totalorder %v4458_v9, %v2427_v47  ;;  %v6780_v62 = vmax.f32 %v2124_v39, %v2125_v6  ;;  %v6782_v48 = vmax.f32 %v2166_v5, %v2167_v11  ;;  %vm2431_vm10 = vcmp.lt.s32.totalorder %v4453_v8, %v2430_v63  ;;  %8900 = vst [vmem:[#allocation32_spill] sm:$0xff] %v6822_v4  ;;  %v6836_v11 = vld [vmem:[%s4448_s29 + $0x18] sm:$0xff]  ;;  %v6856_v47 = vld [vmem:[%s4448_s29 + $0x30] sm:$0xff]  ;;  %v6870_v34 = vld [vmem:[%s4448_s29 + $0x40] sm:$0xff]  ;;  %s7164_s23 = scalar_select %p2709_p10, 1, 0 }
 0x19a   : > { %vm2432_vm7 = vcmp.lt.s32.totalorder %v4458_v9, %v2430_v63  ;;  %vm6786_vm1 = vcmp.eq.s32.totalorder %v2129_v45, 1  ;;  %vm6790_vm13 = vcmp.eq.s32.totalorder %v2171_v37, 1  ;;  %v8892_v38 = vmov 0  ;;  %vm6795_vm11 = vmand %vm2428_vm6, %vm2431_vm10  ;;  %8901 = vst [vmem:[#allocation33_spill] sm:$0xff] %v6830_v54  ;;  %v6850_v37 = vld [vmem:[%s4448_s29 + $0x28] sm:$0xff]  ;;  %v6894_v5 = vld [vmem:[%s4448_s29 + $0x60] sm:$0xff]  ;;  %s7188_s28 = sadd.s32 %s4227_s6, %s4398_s24  ;;  %p2835_p10 = por %p7071_p1, %p5377_p8 }
 0x19b   : > { %8889 = vst [vmem:[#allocation29_spill] sm:$0xff] %v6782_v48  ;;  %v8893_v38 = vsel %vm6790_vm13, 4294967295, %v8892_v38  ;;  %v2209_v13 = vrot.slane %v2208_v16, 1  ;;  %v2251_v61 = vrot.slane %v2250_v57, 1  ;;  %vm6802_vm15 = vmand %vm2429_vm12, %vm2432_vm7  ;;  %v2373_v33 = vrot.slane %v2372_v15, 4  ;;  %p2913_p4 = scmp.gt.s32.totalorder %s7188_s28, 0 }
 0x19c   : > { %8894 = vst [vmem:[#allocation30_spill] sm:$0xff] %v8893_v38  ;;  %v2439_v14 = vsel %vm6795_vm11, %v6816_v21, -3.4028235e+38  ;;  %v2441_v51 = vsel %vm6795_vm11, %v6822_v4, -3.4028235e+38  ;;  %vm2132_vm8 = vcmp.eq.s32.totalorder %v4453_v8, 3  ;;  %vm8968_vm7 = vnez %v8545_v55 }
 0x19d   : > { %v6827_v24 = vmax.f32 %v2208_v16, %v2209_v13  ;;  %v2440_v6 = vsel %vm6802_vm15, %v6830_v54, -3.4028235e+38  ;;  %8902 = vst [vmem:[#allocation34_spill] sm:$0xff] %v6836_v11  ;;  %v2442_v17 = vsel %vm6802_vm15, %v6836_v11, -3.4028235e+38  ;;  %v6847_v45 = vmax.f32 %v2250_v57, %v2251_v61  ;;  %v6862_v13 = vld [vmem:[%s4448_s29 + $0x38] sm:$0xff] }
 0x19e   : > { %8903 = vst [vmem:[#allocation35_spill] sm:$0xff] %v6842_v20  ;;  %v2443_v29 = vsel %vm6795_vm11, %v6842_v20, -3.4028235e+38  ;;  %v2444_v16 = vsel %vm6802_vm15, %v6850_v37, -3.4028235e+38  ;;  %v6867_v61 = vmax.f32 %v2372_v15, %v2373_v33  ;;  %v6888_v33 = vld [vmem:[%s4448_s29 + $0x58] sm:$0xff] }
 0x19f   : > { %8904 = vst [vmem:[#allocation36_spill] sm:$0xff] %v6847_v45  ;;  %v2445_v63 = vsel %vm6795_vm11, %v6856_v47, -3.4028235e+38  ;;  %v2446_v57 = vsel %vm6802_vm15, %v6862_v13, -3.4028235e+38  ;;  %v6918_v20 = vld [vmem:[%s4448_s29 + $0x80] sm:$0xff] }
 0x1a0   : > { %8905 = vst [vmem:[#allocation37_spill] sm:$0xff] %v6850_v37  ;;  %v2447_v25 = vsel %vm6795_vm11, %v6870_v34, -3.4028235e+38  ;;  %v2448_v1 = vsel %vm6802_vm15, %v6876_v58, -3.4028235e+38  ;;  %v2485_v37 = vmax.f32 %v2443_v29, %v2444_v16  ;;  %v6936_v29 = vld [vmem:[%s4448_s29 + $0x98] sm:$0xff] }
 0x1a1   : > { %8906 = vst [vmem:[#allocation38_spill] sm:$0xff] %v6856_v47  ;;  %v2449_v15 = vsel %vm6795_vm11, %v6882_v31, -3.4028235e+38  ;;  %v2450_v52 = vsel %vm6802_vm15, %v6888_v33, -3.4028235e+38  ;;  %v2478_v47 = vmax.f32 %v2441_v51, %v2442_v17  ;;  %v2492_v17 = vmax.f32 %v2445_v63, %v2446_v57  ;;  %v6954_v63 = vld [vmem:[%s4448_s29 + $0xb0] sm:$0xff] }
 0x1a2   : > { %8907 = vst [vmem:[#allocation39_spill] sm:$0xff] %v6862_v13  ;;  %v2451_v0 = vsel %vm6795_vm11, %v6894_v5, -3.4028235e+38  ;;  %v2452_v31 = vsel %vm6802_vm15, %v6900_v10, -3.4028235e+38  ;;  %v6912_v13 = vld [vmem:[%s4448_s29 + $0x78] sm:$0xff]  ;;  %v2499_v11 = vmax.f32 %v2447_v25, %v2448_v1  ;;  %v2506_v51 = vmax.f32 %v2449_v15, %v2450_v52 }
 0x1a3   : > { %8908 = vst [vmem:[#allocation40_spill] sm:$0xff] %v6870_v34  ;;  %v6906_v34 = vld [vmem:[%s4448_s29 + $0x70] sm:$0xff]  ;;  %v6960_v16 = vld [vmem:[%s4448_s29 + $0xb8] sm:$0xff]  ;;  %v6972_v1 = vld [vmem:[%s4448_s29 + $0xc8] sm:$0xff]  ;;  %v2479_v21 = vrot.slane %v2478_v47, 4  ;;  %v2486_v41 = vrot.slane %v2485_v37, 4  ;;  %v2513_v54 = vmax.f32 %v2451_v0, %v2452_v31 }
 0x1a4   : > { %8909 = vst [vmem:[#allocation41_spill] sm:$0xff] %v6876_v58  ;;  %v2471_v58 = vmax.f32 %v2439_v14, %v2440_v6  ;;  %v6924_v6 = vld [vmem:[%s4448_s29 + $0x88] sm:$0xff]  ;;  %v6942_v14 = vld [vmem:[%s4448_s29 + $0xa0] sm:$0xff]  ;;  %v2464_v25 = vsel %vm6802_vm15, %v6972_v1, -3.4028235e+38  ;;  %v2493_v22 = vrot.slane %v2492_v17, 4 }
 0x1a5   : > { %8911 = vst [vmem:[#allocation43_spill] sm:$0xff] %v6888_v33  ;;  %v2453_v33 = vsel %vm6795_vm11, %v6906_v34, -3.4028235e+38  ;;  %v2500_v56 = vrot.slane %v2499_v11, 4  ;;  %v2507_v28 = vrot.slane %v2506_v51, 4  ;;  %v2480_v26 = vmax.f32 %v2478_v47, %v2479_v21  ;;  %v6984_v21 = vld [vmem:[%s4448_s29 + $0xd0] sm:$0xff] }
 0x1a6   : > { %8912 = vst [vmem:[#allocation44_spill] sm:$0xff] %v6894_v5  ;;  %v2454_v5 = vsel %vm6802_vm15, %v6912_v13, -3.4028235e+38  ;;  %v2472_v57 = vrot.slane %v2471_v58, 4  ;;  %v2487_v45 = vmax.f32 %v2485_v37, %v2486_v41  ;;  %v2494_v12 = vmax.f32 %v2492_v17, %v2493_v22  ;;  %s2914_s5 = scalar_select %p2913_p4, %s7188_s28, 0 }
 0x1a7   : > { %8913 = vst [vmem:[#allocation45_spill] sm:$0xff] %v6900_v10  ;;  %v6930_v10 = vld [vmem:[%s4448_s29 + $0x90] sm:$0xff]  ;;  %v2520_v49 = vmax.f32 %v2453_v33, %v2454_v5  ;;  %v2501_v4 = vmax.f32 %v2499_v11, %v2500_v56  ;;  %v2508_v52 = vmax.f32 %v2506_v51, %v2507_v28  ;;  %v2514_v15 = vrot.slane %v2513_v54, 4  ;;  %p4096_p2 = scmp.lt.s32.totalorder %s7188_s28, 16  ;;  %p2877_p4 = por %p7071_p1, %p5383_p9 }
 0x1a8   : > { %8914 = vst [vmem:[#allocation46_spill] sm:$0xff] %v6906_v34  ;;  %v6966_v34 = vld [vmem:[%s4448_s29 + $0xc0] sm:$0xff]  ;;  %v2473_v59 = vmax.f32 %v2471_v58, %v2472_v57  ;;  %v2481_v48 = vrot.slane %v2480_v26, 2  ;;  %v2488_v38 = vrot.slane %v2487_v45, 2  ;;  %v2495_v35 = vrot.slane %v2494_v12, 2  ;;  %s3415_s6 = smul.f32 7.0, %s4423_s3 }
 0x1a9   : > { %8915 = vst [vmem:[#allocation47_spill] sm:$0xff] %v6912_v13  ;;  %v6948_v13 = vld [vmem:[%s4448_s29 + $0xa8] sm:$0xff]  ;;  %v2502_v19 = vrot.slane %v2501_v4, 2  ;;  %v2509_v18 = vrot.slane %v2508_v52, 2  ;;  %v2515_v30 = vmax.f32 %v2513_v54, %v2514_v15  ;;  %v2465_v54 = vsel %vm6795_vm11, %v6984_v21, -3.4028235e+38 }
 0x1aa   : > { %8916 = vst [vmem:[#allocation48_spill] sm:$0xff] %v6936_v29  ;;  %v2474_v32 = vrot.slane %v2473_v59, 2  ;;  %v2482_v31 = vmax.f32 %v2480_v26, %v2481_v48  ;;  %v2489_v41 = vmax.f32 %v2487_v45, %v2488_v38  ;;  %v6977_v22 = vmax.f32 %v2494_v12, %v2495_v35  ;;  %v7015_v45 = vld [vmem:[%s4448_s29 + $0xf8] sm:$0xff]  ;;  %s9251_s5 = smov (!%p4096_p2, %s2914_s5), 16 }
 0x1ab   : > { %8917 = vst [vmem:[#allocation49_spill] sm:$0xff] %v6942_v14  ;;  %v6979_v56 = vmax.f32 %v2501_v4, %v2502_v19  ;;  %v6981_v28 = vmax.f32 %v2508_v52, %v2509_v18  ;;  %v2516_v58 = vrot.slane %v2515_v30, 2  ;;  %v6997_v18 = vld [vmem:[%s4448_s29 + $0xe0] sm:$0xff]  ;;  %v7009_v4 = vld [vmem:[%s4448_s29 + $0xf0] sm:$0xff]  ;;  %v2470_v37 = vsel %vm6802_vm15, %v7015_v45, -3.4028235e+38 }
 0x1ac   : > { %8918 = vst [vmem:[#allocation50_spill] sm:$0xff] %v6948_v13  ;;  %v2475_v0 = vmax.f32 %v2473_v59, %v2474_v32  ;;  %v6990_v32 = vld [vmem:[%s4448_s29 + $0xd8] sm:$0xff]  ;;  %v2483_v35 = vrot.slane %v2482_v31, 1  ;;  %v2467_v26 = vsel %vm6795_vm11, %v6997_v18, -3.4028235e+38  ;;  %v7003_v59 = vld [vmem:[%s4448_s29 + $0xe8] sm:$0xff] }
 0x1ad   : > { %8919 = vst [vmem:[#allocation51_spill] sm:$0xff] %v6954_v63  ;;  %v2466_v12 = vsel %vm6802_vm15, %v6990_v32, -3.4028235e+38  ;;  %v2468_v48 = vsel %vm6802_vm15, %v7003_v59, -3.4028235e+38  ;;  %v2490_v38 = vrot.slane %v2489_v41, 1 }
 0x1ae   : > { %8920 = vst [vmem:[#allocation52_spill] sm:$0xff] %v6960_v16  ;;  %v2469_v11 = vsel %vm6795_vm11, %v7009_v4, -3.4028235e+38  ;;  %v2497_v47 = vrot.slane %v6977_v22, 1  ;;  %v7027_v52 = vmax.f32 %v2482_v31, %v2483_v35  ;;  %v8929_v15 = vsel %vm6802_vm15, %v6924_v6, -3.4028235e+38 }
 0x1af   : > { %8921 = vst [vmem:[#allocation53_spill] sm:$0xff] %v6966_v34  ;;  %v8930_v19 = vsel %vm6795_vm11, %v6918_v20, -3.4028235e+38  ;;  %v8933_v31 = vsel %vm6802_vm15, %v6948_v13, -3.4028235e+38  ;;  %v7053_v57 = vmax.f32 %v2489_v41, %v2490_v38  ;;  %vm8942_vm12 = vcmask 1041409  }
 0x1b0   : > { %8922 = vst [vmem:[#allocation54_spill] sm:$0xff] %v6972_v1  ;;  %v2521_v1 = vrot.slane %v2520_v49, 4  ;;  %vm8943_vm10 = vmmov %vm8942_vm12 }
 0x1b1   : > { %8923 = vst [vmem:[#allocation55_spill] sm:$0xff] %v6984_v21 }
 0x1b2   : > { %v2522_v5 = vmax.f32 %v2520_v49, %v2521_v1  ;;  %8924 = vst [vmem:[#allocation12_spill] sm:$0xff] %v6990_v32  ;;  %v2476_v49 = vrot.slane %v2475_v0, 1  ;;  %v7025_v1 = vmax.f32 %v2515_v30, %v2516_v58  ;;  %v8932_v30 = vsel %vm6795_vm11, %v6930_v10, -3.4028235e+38 }
 0x1b3   : > { %8925 = vst [vmem:[#allocation9_spill] sm:$0xff] %v6997_v18  ;;  %v2569_v32 = vmax.f32 %v2467_v26, %v2468_v48 }
 0x1b4   : > { %8926 = vst [vmem:[#allocation7_spill] sm:$0xff] %v7003_v59  ;;  %v2523_v33 = vrot.slane %v2522_v5, 2  ;;  %v7021_v51 = vmax.f32 %v2475_v0, %v2476_v49  ;;  %v8931_v0 = vsel %vm6802_vm15, %v6936_v29, -3.4028235e+38  ;;  %v8934_v49 = vsel %vm6795_vm11, %v6942_v14, -3.4028235e+38 }
 0x1b5   : > { %8927 = vst [vmem:[#allocation8_spill] sm:$0xff] %v7009_v4  ;;  %v2534_v58 = vmax.f32 %v8932_v30, %v8931_v0  ;;  %v2541_v35 = vmax.f32 %v8934_v49, %v8933_v31  ;;  %v8937_v30 = vsel %vm6795_vm11, %v6966_v34, -3.4028235e+38  ;;  %v2562_v4 = vmax.f32 %v2465_v54, %v2466_v12 }
 0x1b6   : > { %8928 = vst [vmem:[#allocation10_spill] sm:$0xff] %v7015_v45  ;;  %v2527_v45 = vmax.f32 %v8930_v19, %v8929_v15  ;;  %v8935_v19 = vsel %vm6802_vm15, %v6960_v16, -3.4028235e+38  ;;  %v8936_v15 = vsel %vm6795_vm11, %v6954_v63, -3.4028235e+38  ;;  %v2555_v17 = vmax.f32 %v8937_v30, %v2464_v25 }
 0x1b7   : > { %v2548_v0 = vmax.f32 %v8936_v15, %v8935_v19  ;;  %v7067_v59 = vmax.f32 %v2522_v5, %v2523_v33  ;;  %v2535_v41 = vrot.slane %v2534_v58, 4  ;;  %v2542_v38 = vrot.slane %v2541_v35, 4 }
 0x1b8   : > { %v2528_v31 = vrot.slane %v2527_v45, 4  ;;  %v2556_v39 = vrot.slane %v2555_v17, 4  ;;  %v2563_v18 = vrot.slane %v2562_v4, 4  ;;  %v2576_v15 = vmax.f32 %v2469_v11, %v2470_v37 }
 0x1b9   : > { %v2549_v49 = vrot.slane %v2548_v0, 4  ;;  %v2536_v16 = vmax.f32 %v2534_v58, %v2535_v41  ;;  %v2543_v19 = vmax.f32 %v2541_v35, %v2542_v38  ;;  %v2570_v25 = vrot.slane %v2569_v32, 4 }
 0x1ba   : > { %v2529_v21 = vmax.f32 %v2527_v45, %v2528_v31  ;;  %v2557_v63 = vmax.f32 %v2555_v17, %v2556_v39  ;;  %v2564_v34 = vmax.f32 %v2562_v4, %v2563_v18  ;;  %v2577_v33 = vrot.slane %v2576_v15, 4 }
 0x1bb   : > { %v2550_v44 = vmax.f32 %v2548_v0, %v2549_v49  ;;  %v2537_v5 = vrot.slane %v2536_v16, 2  ;;  %v2544_v12 = vrot.slane %v2543_v19, 2  ;;  %v2571_v29 = vmax.f32 %v2569_v32, %v2570_v25 }
 0x1bc   : > { %v2530_v54 = vrot.slane %v2529_v21, 2  ;;  %v2558_v13 = vrot.slane %v2557_v63, 2  ;;  %v2565_v14 = vrot.slane %v2564_v34, 2  ;;  %v2578_v18 = vmax.f32 %v2576_v15, %v2577_v33 }
 0x1bd   : > { %v2551_v30 = vrot.slane %v2550_v44, 2  ;;  %v2538_v48 = vmax.f32 %v2536_v16, %v2537_v5  ;;  %v2545_v11 = vmax.f32 %v2543_v19, %v2544_v12  ;;  %v2572_v17 = vrot.slane %v2571_v29, 2 }
 0x1be   : > { %v2531_v26 = vmax.f32 %v2529_v21, %v2530_v54  ;;  %v2559_v45 = vmax.f32 %v2557_v63, %v2558_v13  ;;  %v2566_v37 = vmax.f32 %v2564_v34, %v2565_v14  ;;  %v8939_v58 = vstv %s6631_s16  ;;  %s7243_s16 = sadd.s32 %s4229_s18, %s4398_s24 }
 0x1bf   : > { %v2552_v4 = vmax.f32 %v2550_v44, %v2551_v30  ;;  %vm7078_vm6 = vcmp.eq.s32.totalorder %v8939_v58, 1  ;;  %v2539_v0 = vrot.slane %v2538_v48, 1  ;;  %v2546_v16 = vrot.slane %v2545_v11, 1  ;;  %p2921_p11 = scmp.gt.s32.totalorder %s7243_s16, 0 }
 0x1c0   : > { %v2532_v32 = vrot.slane %v2531_v26, 1  ;;  %v2579_v21 = vrot.slane %v2578_v18, 2  ;;  %v2560_v41 = vrot.slane %v2559_v45, 1  ;;  %v2567_v38 = vrot.slane %v2566_v37, 1 }
 0x1c1   : > { %v2553_v31 = vrot.slane %v2552_v4, 1  ;;  %v2573_v49 = vmax.f32 %v2571_v29, %v2572_v17  ;;  %v2540_v13 = vmax.f32 %v2538_v48, %v2539_v0  ;;  %v2547_v14 = vmax.f32 %v2545_v11, %v2546_v16  ;;  %s2922_s19 = scalar_select %p2921_p11, %s7243_s16, 0 }
 0x1c2   : > { %v2533_v34 = vmax.f32 %v2531_v26, %v2532_v32  ;;  %v2580_v63 = vmax.f32 %v2578_v18, %v2579_v21  ;;  %v2498_v39 = vmax.f32 %v6977_v22, %v2497_v47  ;;  %v2518_v19 = vrot.slane %v7025_v1, 1 }
 0x1c3   : > { %v2525_v15 = vrot.slane %v7067_v59, 1  ;;  %v2574_v44 = vrot.slane %v2573_v49, 1  ;;  %v2554_v29 = vmax.f32 %v2552_v4, %v2553_v31  ;;  %v2600_v22 = vsel %vm8942_vm12, %v7027_v52, %v7021_v51 }
 0x1c4   : > { %v2581_v25 = vrot.slane %v2580_v63, 1  ;;  %v2607_v47 = vsel %vm8943_vm10, %v2540_v13, %v2533_v34  ;;  %v8944_v54 = vrot.slane %v6979_v56, 1  ;;  %v2561_v12 = vmax.f32 %v2559_v45, %v2560_v41 }
 0x1c5   : > { %vm8945_vm11 = vcmask 1042434   ;;  %v8947_v52 = vrot.slane %v6981_v28, 1  ;;  %v2568_v26 = vmax.f32 %v2566_v37, %v2567_v38  ;;  %vm8948_vm12 = vcmask 1043459  }
 0x1c6   : > { %v2505_v5 = vmax.f32 %v6979_v56, %v8944_v54  ;;  %v2601_v33 = vsel %vm8945_vm11, %v7053_v57, %v2600_v22  ;;  %vm8946_vm15 = vmmov %vm8945_vm11  ;;  %v2519_v57 = vmax.f32 %v7025_v1, %v2518_v19  ;;  %v2575_v11 = vmax.f32 %v2573_v49, %v2574_v44 }
 0x1c7   : > { %v2608_v51 = vsel %vm8946_vm15, %v2547_v14, %v2607_v47  ;;  %v2512_v30 = vmax.f32 %v6981_v28, %v8947_v52  ;;  %v2602_v56 = vsel %vm8948_vm12, %v2498_v39, %v2601_v33  ;;  %vm8949_vm10 = vmmov %vm8948_vm12  ;;  %vm8950_vm11 = vcmask 1044484   ;;  %v8975_v33 = vld [vmem:[#allocation15_spill] sm:$0xff] }
 0x1c8   : > { %v2609_v48 = vsel %vm8949_vm10, %v2554_v29, %v2608_v51  ;;  %v2603_v18 = vsel %vm8950_vm11, %v2505_v5, %v2602_v56  ;;  %vm8951_vm15 = vmmov %vm8950_vm11  ;;  %v2526_v28 = vmax.f32 %v7067_v59, %v2525_v15  ;;  %v2582_v45 = vmax.f32 %v2580_v63, %v2581_v25  ;;  %v8973_v5 = vld [vmem:[#allocation14_spill] sm:$0xff] }
 0x1c9   : > { %v2610_v4 = vsel %vm8951_vm15, %v2561_v12, %v2609_v48  ;;  %vm8952_vm12 = vcmask 1045509   ;;  %v2215_v1 = vsel %vm7078_vm6, 0.0, %v6827_v24  ;;  %v8954_v58 = vstv %s6660_s8  ;;  %s7260_s8 = scalar_select %p2751_p12, 1, 0 }
 0x1ca   : > { %v2604_v37 = vsel %vm8952_vm12, %v2512_v30, %v2603_v18  ;;  %vm8953_vm10 = vmmov %vm8952_vm12  ;;  %vm7148_vm11 = vcmp.eq.s32.totalorder %v8954_v58, 1  ;;  %v8957_v59 = vrot.slane %v6758_v2, 1  ;;  %vm8958_vm15 = vcmask 1046534   ;;  %v8980_v18 = vld [vmem:[#allocation29_spill] sm:$0xff]  ;;  %p4101_p12 = scmp.lt.s32.totalorder %s7243_s16, 16 }
 0x1cb   : > { %v2611_v17 = vsel %vm8953_vm10, %v2568_v26, %v2610_v4  ;;  %v2605_v16 = vsel %vm8958_vm15, %v2519_v57, %v2604_v37  ;;  %vm8959_vm12 = vmmov %vm8958_vm15  ;;  %v8960_v31 = vsel %vm6786_vm1, 0.0, %v6780_v62  ;;  %v8961_v41 = vrot.slane %v6769_v27, 2  ;;  %v8978_v57 = vld [vmem:[#allocation26_spill] sm:$0xff] }
 0x1cc   : > { %v7155_v0 = vmax.f32 %v6758_v2, %v8957_v59  ;;  %v2612_v21 = vsel %vm8959_vm12, %v2575_v11, %v2611_v17  ;;  %v7173_v2 = vsel %vm2132_vm8, %v8960_v31, %v6703_v36  ;;  %vm8962_vm15 = vcmask 1047559   ;;  %v8988_v31 = vld [vmem:[#allocation22_spill] sm:$0xff]  ;;  %s9253_s19 = smov (!%p4101_p12, %s2922_s19), 16 }
 0x1cd   : > { %v7179_v38 = vmax.f32 %v6769_v27, %v8961_v41  ;;  %v7182_v49 = vsel %vm8962_vm15, %v2526_v28, %v2605_v16  ;;  %vm8963_vm12 = vmmov %vm8962_vm15  ;;  %v8964_v62 = vrot.slane %v6867_v61, 2  ;;  %vm8965_vm1 = vnez %v8533_v43  ;;  %p7573_p1 = scmp.le.s32.totalorder %s9253_s19, %s9251_s5 }
 0x1ce   : > { %v7185_v53 = vsel %vm8963_vm12, %v2582_v45, %v2612_v21  ;;  %v2616_v34 = vsel %vm4912_vm3, %v7182_v49, -3.4028235e+38  ;;  %v2658_v13 = vsel %vm4949_vm14, %v7182_v49, -3.4028235e+38  ;;  %vm8966_vm8 = vnez %v8535_v42  ;;  %v8983_v45 = vld [vmem:[#allocation18_spill] sm:$0xff] }
 0x1cf   : > { %v7193_v36 = vmax.f32 %v6867_v61, %v8964_v62  ;;  %v2617_v27 = vsel %vm8839_vm5, %v7185_v53, -3.4028235e+38  ;;  %v2659_v61 = vsel %vm8965_vm1, %v7185_v53, -3.4028235e+38  ;;  %v2700_v63 = vsel %vm8966_vm8, %v7182_v49, -3.4028235e+38  ;;  %p3123_p11 = por %p7573_p1, %p5011_p13  ;;  %p3165_p2 = por %p7573_p1, %p5037_p0 }
 0x1d0   : > { %v2618_v14 = vmax.f32 %v2616_v34, %v2617_v27  ;;  %vm8967_vm15 = vnez %v8541_v23  ;;  %v2660_v19 = vmax.f32 %v2658_v13, %v2659_v61  ;;  %v2742_v44 = vsel %vm8968_vm7, %v7182_v49, -3.4028235e+38  ;;  %v8989_v13 = vld [vmem:[#allocation36_spill] sm:$0xff]  ;;  %p3249_p12 = por %p7573_p1, %p5365_p6 }
 0x1d1   : > { %v2701_v39 = vsel %vm8967_vm15, %v7185_v53, -3.4028235e+38  ;;  %vm8969_vm8 = vnez %v8550_v46  ;;  %v8970_v25 = vstv %s6756_s15  ;;  %vm8974_vm10 = vnez %v8973_v5  ;;  %s7361_s15 = scalar_select %p2793_p3, 1, 0 }
 0x1d2   : > { %v2702_v15 = vmax.f32 %v2700_v63, %v2701_v39  ;;  %v2743_v29 = vsel %vm8969_vm8, %v7185_v53, -3.4028235e+38  ;;  %vm7229_vm15 = vcmp.eq.s32.totalorder %v8970_v25, 1  ;;  %v2619_v47 = vrot.slane %v2618_v14, 4  ;;  %s7595_s26 = scalar_select %p3123_p11, 1, 0 }
 0x1d3   : > { %v2744_v54 = vmax.f32 %v2742_v44, %v2743_v29  ;;  %v2784_v12 = vsel %vm8974_vm10, %v7182_v49, -3.4028235e+38  ;;  %vm8976_vm12 = vnez %v8975_v33  ;;  %v2661_v52 = vrot.slane %v2660_v19, 4  ;;  %p3207_p3 = por %p7573_p1, %p5359_p5  ;;  %p3291_p11 = por %p7573_p1, %p5371_p7 }
 0x1d4   : > { %v2785_v51 = vsel %vm8976_vm12, %v7185_v53, -3.4028235e+38  ;;  %v2703_v30 = vrot.slane %v2702_v15, 4  ;;  %v2826_v48 = vsel %vm5140_vm4, %v7182_v49, -3.4028235e+38  ;;  %v8981_v4 = vsel %vm6790_vm13, 0.0, %v8980_v18 }
 0x1d5   : > { %v2786_v26 = vmax.f32 %v2784_v12, %v2785_v51  ;;  %vm8982_vm10 = vcmp.eq.s32.totalorder %v4458_v9, 10  ;;  %v2620_v37 = vmax.f32 %v2618_v14, %v2619_v47  ;;  %v2745_v17 = vrot.slane %v2744_v54, 4  ;;  %s7662_s7 = scalar_select %p3207_p3, 1, 0 }
 0x1d6   : > { %v7252_v28 = vsel %vm8982_vm10, %v8981_v4, %v8978_v57  ;;  %v2827_v59 = vsel %vm8650_vm0, %v7185_v53, -3.4028235e+38  ;;  %v8985_v16 = vstv %s6765_s10  ;;  %v2662_v41 = vmax.f32 %v2660_v19, %v2661_v52  ;;  %s7375_s10 = scalar_select %p2835_p10, 1, 0 }
 0x1d7   : > { %vm7267_vm13 = vcmp.eq.s32.totalorder %v8985_v16, 1  ;;  %v2704_v62 = vmax.f32 %v2702_v15, %v2703_v30  ;;  %v2787_v34 = vrot.slane %v2786_v26, 4  ;;  %v2828_v27 = vmax.f32 %v2826_v48, %v2827_v59  ;;  %v8995_v48 = vld [vmem:[#allocation27_spill] sm:$0xff]  ;;  %s7765_s16 = scalar_select %p3249_p12, 1, 0 }
 0x1d8   : > { %v2257_v14 = vsel %vm7148_vm11, 0.0, %v8989_v13  ;;  %v2335_v61 = vrot.slane %v7179_v38, 1  ;;  %v8990_v63 = vstv %s6776_s0  ;;  %v2621_v44 = vrot.slane %v2620_v37, 2  ;;  %s7383_s0 = scalar_select %p2877_p4, 1, 0 }
 0x1d9   : > { %vm7281_vm12 = vcmp.eq.s32.totalorder %v8990_v63, 1  ;;  %v2746_v29 = vmax.f32 %v2744_v54, %v2745_v17  ;;  %v2377_v19 = vrot.slane %v7193_v36, 1  ;;  %v2663_v15 = vrot.slane %v2662_v41, 2  ;;  %v9004_v63 = vld [vmem:[#allocation25_spill] sm:$0xff]  ;;  %p3333_p3 = por %p7573_p1, %p5377_p8  ;;  %p3375_p12 = por %p7573_p1, %p5383_p9 }
 0x1da   : > { %v2705_v25 = vrot.slane %v2704_v62, 2  ;;  %v2829_v32 = vrot.slane %v2828_v27, 4  ;;  %v2788_v12 = vmax.f32 %v2786_v26, %v2787_v34  ;;  %v2868_v52 = vsel %vm5192_vm9, %v7182_v49, -3.4028235e+38 }
 0x1db   : > { %v2747_v47 = vrot.slane %v2746_v29, 2  ;;  %v2869_v30 = vsel %vm5203_vm2, %v7185_v53, -3.4028235e+38  ;;  %vm8996_vm11 = vcmp.eq.s32.totalorder %v8854_v50, 24  ;;  %v2622_v11 = vmax.f32 %v2620_v37, %v2621_v44 }
 0x1dc   : > { %v2282_v57 = vsel %vm8996_vm11, %v2257_v14, %v8995_v48  ;;  %v2627_v18 = vstv %s7118_s25  ;;  %v2664_v4 = vmax.f32 %v2662_v41, %v2663_v15  ;;  %v2336_v26 = vmax.f32 %v7179_v38, %v2335_v61  ;;  %v8997_v38 = vld [vmem:[#allocation24_spill] sm:$0xff]  ;;  %v9030_v48 = vld [vmem:[#allocation39_spill] sm:$0xff]  ;;  %s7606_s25 = sfloor.f32 %s2917_s27 }
 0x1dd   : > { %v2669_v17 = vstv %s7134_s11  ;;  %v2706_v49 = vmax.f32 %v2704_v62, %v2705_v25  ;;  %v2748_v59 = vmax.f32 %v2746_v29, %v2747_v47  ;;  %v2299_v53 = vsel %vm7229_vm15, 0.0, %v7155_v0  ;;  %v9006_v15 = vld [vmem:[#allocation28_spill] sm:$0xff]  ;;  %s4231_s3 = scvt.f32.s32 %s7606_s25  ;;  %s7641_s11 = sceil.f32 %s3415_s6 }
 0x1de   : > { %v2378_v37 = vmax.f32 %v7193_v36, %v2377_v19  ;;  %v2830_v16 = vmax.f32 %v2828_v27, %v2829_v32  ;;  %v2870_v41 = vmax.f32 %v2868_v52, %v2869_v30  ;;  %vm8998_vm11 = vcmp.eq.s32.totalorder %v5086_v7, 17  ;;  %s7636_s27 = scalar_select %p3165_p2, 1, 0 }
 0x1df   : > { %v7320_v62 = vsel %vm8998_vm11, %v2215_v1, %v8997_v38  ;;  %vm8999_vm10 = vcmp.eq.s32.totalorder %v8854_v50, 31  ;;  %vm7326_vm15 = vcmp.eq.s32.totalorder %v2627_v18, 1  ;;  %v2789_v22 = vrot.slane %v2788_v12, 2  ;;  %s4233_s28 = scvt.f32.s32 %s7641_s11 }
 0x1e0   : > { %v7324_v0 = vsel %vm8999_vm10, %v2299_v53, %v2282_v57  ;;  %v2623_v24 = vrot.slane %v2622_v11, 1  ;;  %v2665_v35 = vrot.slane %v2664_v4, 1  ;;  %vm7335_vm6 = vcmp.eq.s32.totalorder %v2669_v17, 1 }
 0x1e1   : > { %v2711_v34 = vstv %s7164_s23  ;;  %v2341_v27 = vsel %vm7267_vm13, 0.0, %v2336_v26  ;;  %v2707_v13 = vrot.slane %v2706_v49, 1  ;;  %v2749_v14 = vrot.slane %v2748_v59, 1  ;;  %s7677_s23 = sadd.s32 %s4231_s3, %s4398_s24  ;;  %s7734_s18 = sadd.s32 %s4233_s28, %s4398_s24 }
 0x1e2   : > { %v2925_v61 = vstv %s9251_s5  ;;  %vm9005_vm10 = vcmp.eq.s32.totalorder %v8983_v45, 38  ;;  %v2383_v29 = vsel %vm7281_vm12, 0.0, %v2378_v37  ;;  %v2831_v21 = vrot.slane %v2830_v16, 2  ;;  %p3411_p10 = scmp.gt.s32.totalorder %s7677_s23, 0  ;;  %p3419_p4 = scmp.gt.s32.totalorder %s7734_s18, 0 }
 0x1e3   : > { %v7352_v44 = vsel %vm9005_vm10, %v2341_v27, %v9004_v63  ;;  %v2871_v19 = vrot.slane %v2870_v41, 4  ;;  %vm9007_vm13 = vcmp.eq.s32.totalorder %v8988_v31, 45  ;;  %v2790_v32 = vmax.f32 %v2788_v12, %v2789_v22  ;;  %v9021_v27 = vld [vmem:[#allocation31_spill] sm:$0xff]  ;;  %p4106_p2 = scmp.lt.s32.totalorder %s7677_s23, 16 }
 0x1e4   : > { %v7366_v25 = vsel %vm9007_vm13, %v2383_v29, %v9006_v15  ;;  %v2624_v39 = vmax.f32 %v2622_v11, %v2623_v24  ;;  %v2666_v47 = vmax.f32 %v2664_v4, %v2665_v35  ;;  %v2753_v52 = vstv %s7260_s8  ;;  %v9024_v29 = vld [vmem:[#allocation34_spill] sm:$0xff]  ;;  %s3412_s24 = scalar_select %p3411_p10, %s7677_s23, 0 }
 0x1e5   : > { %9008 = vst [vmem:[#allocation11_spill] sm:$0xff] %v7366_v25  ;;  %vm2926_vm12 = vcmp.ge.s32.totalorder %v4453_v8, %v2925_v61  ;;  %v2708_v30 = vmax.f32 %v2706_v49, %v2707_v13  ;;  %v7386_v12 = vmax.f32 %v2748_v59, %v2749_v14  ;;  %vm7389_vm13 = vcmp.ge.s32.totalorder %v4458_v9, %v2925_v61  ;;  %v9023_v61 = vld [vmem:[#allocation33_spill] sm:$0xff]  ;;  %s3420_s8 = scalar_select %p3419_p4, %s7734_s18, 0 }
 0x1e6   : > { %v2928_v57 = vstv %s9253_s19  ;;  %v7394_v11 = vmax.f32 %v2830_v16, %v2831_v21  ;;  %v7396_v18 = vmax.f32 %v2870_v41, %v2871_v19  ;;  %vm7400_vm2 = vcmp.eq.s32.totalorder %v2711_v34, 1  ;;  %v9025_v19 = vld [vmem:[#allocation35_spill] sm:$0xff]  ;;  %s9255_s24 = smov (!%p4106_p2, %s3412_s24), 16  ;;  %p4111_p10 = scmp.lt.s32.totalorder %s7734_s18, 16 }
 0x1e7   : > { %vm2929_vm10 = vcmp.lt.s32.totalorder %v4453_v8, %v2928_v57  ;;  %vm2930_vm11 = vcmp.lt.s32.totalorder %v4458_v9, %v2928_v57  ;;  %vm7405_vm0 = vcmp.eq.s32.totalorder %v2753_v52, 1  ;;  %v2791_v17 = vrot.slane %v2790_v32, 1  ;;  %v9029_v52 = vld [vmem:[#allocation38_spill] sm:$0xff]  ;;  %v9040_v16 = vld [vmem:[#allocation47_spill] sm:$0xff]  ;;  %s7797_s5 = scalar_select %p3291_p11, 1, 0 }
 0x1e8   : > { %vm7409_vm4 = vmand %vm2926_vm12, %vm2929_vm10  ;;  %v2629_v59 = vsel %vm7326_vm15, 0.0, %v2624_v39  ;;  %vm9019_vm9 = vcmp.eq.s32.totalorder %v4453_v8, 4  ;;  %v2671_v22 = vsel %vm7335_vm6, 0.0, %v2666_v47  ;;  %v2713_v36 = vsel %vm7400_vm2, 0.0, %v2708_v30  ;;  %v9028_v47 = vld [vmem:[#allocation37_spill] sm:$0xff]  ;;  %s9257_s8 = smov (!%p4111_p10, %s3420_s8), 16 }
 0x1e9   : > { %vm7420_vm8 = vmand %vm7389_vm13, %vm2930_vm11  ;;  %v7427_v38 = vsel %vm9019_vm9, %v2629_v59, %v7173_v2  ;;  %v2937_v13 = vsel %vm7409_vm4, %v9021_v27, -3.4028235e+38  ;;  %v9022_v2 = vld [vmem:[#allocation32_spill] sm:$0xff]  ;;  %v7444_v14 = vmax.f32 %v2790_v32, %v2791_v17  ;;  %v2941_v15 = vsel %vm7409_vm4, %v9025_v19, -3.4028235e+38  ;;  %v9034_v59 = vld [vmem:[#allocation41_spill] sm:$0xff]  ;;  %p7972_p1 = scmp.le.s32.totalorder %s9257_s8, %s9255_s24 }
 0x1ea   : > { %9020 = vst [vmem:[#allocation23_spill] sm:$0xff] %v7427_v38  ;;  %v2939_v1 = vsel %vm7409_vm4, %v9022_v2, -3.4028235e+38  ;;  %v2938_v63 = vsel %vm7420_vm8, %v9023_v61, -3.4028235e+38  ;;  %vm9026_vm9 = vcmp.eq.s32.totalorder %v4458_v9, 11 }
 0x1eb   : > { %v2940_v21 = vsel %vm7420_vm8, %v9024_v29, -3.4028235e+38  ;;  %v7458_v39 = vsel %vm9026_vm9, %v2671_v22, %v7252_v28  ;;  %v2942_v32 = vsel %vm7420_vm8, %v9028_v47, -3.4028235e+38  ;;  %v2943_v30 = vsel %vm7409_vm4, %v9029_v52, -3.4028235e+38  ;;  %p3621_p4 = por %p7972_p1, %p5011_p13  ;;  %p3663_p13 = por %p7972_p1, %p5037_p0 }
 0x1ec   : > { %9027 = vst [vmem:[#allocation26_spill] sm:$0xff] %v7458_v39  ;;  %v2944_v57 = vsel %vm7420_vm8, %v9030_v48, -3.4028235e+38  ;;  %vm9031_vm2 = vcmp.eq.s32.totalorder %v5086_v7, 18  ;;  %v9033_v17 = vld [vmem:[#allocation40_spill] sm:$0xff]  ;;  %v9035_v27 = vld [vmem:[#allocation42_spill] sm:$0xff]  ;;  %v2976_v47 = vmax.f32 %v2939_v1, %v2940_v21  ;;  %v2983_v37 = vmax.f32 %v2941_v15, %v2942_v32  ;;  %p3705_p11 = por %p7972_p1, %p5359_p5  ;;  %p3747_p2 = por %p7972_p1, %p5365_p6 }
 0x1ed   : > { %v7472_v4 = vsel %vm9031_vm2, %v2713_v36, %v7320_v62  ;;  %v2945_v28 = vsel %vm7409_vm4, %v9033_v17, -3.4028235e+38  ;;  %v2946_v22 = vsel %vm7420_vm8, %v9034_v59, -3.4028235e+38  ;;  %v2947_v2 = vsel %vm7409_vm4, %v9035_v27, -3.4028235e+38  ;;  %p3789_p0 = por %p7972_p1, %p5371_p7  ;;  %p3831_p6 = por %p7972_p1, %p5377_p8 }
 0x1ee   : > { %9032 = vst [vmem:[#allocation30_spill] sm:$0xff] %v7472_v4  ;;  %v9036_v61 = vld [vmem:[#allocation43_spill] sm:$0xff]  ;;  %v9037_v19 = vld [vmem:[#allocation44_spill] sm:$0xff]  ;;  %v2969_v36 = vmax.f32 %v2937_v13, %v2938_v63  ;;  %v9038_v52 = vld [vmem:[#allocation45_spill] sm:$0xff]  ;;  %v2952_v27 = vsel %vm7420_vm8, %v9040_v16, -3.4028235e+38  ;;  %v2990_v1 = vmax.f32 %v2943_v30, %v2944_v57  ;;  %v2997_v63 = vmax.f32 %v2945_v28, %v2946_v22  ;;  %p3873_p7 = por %p7972_p1, %p5383_p9 }
 0x1ef   : > { %v2948_v29 = vsel %vm7420_vm8, %v9036_v61, -3.4028235e+38  ;;  %v2949_v62 = vsel %vm7409_vm4, %v9037_v19, -3.4028235e+38  ;;  %v2950_v48 = vsel %vm7420_vm8, %v9038_v52, -3.4028235e+38 }
 0x1f0   : > { %v9039_v17 = vld [vmem:[#allocation46_spill] sm:$0xff]  ;;  %v2953_v61 = vsel %vm7409_vm4, %v6918_v20, -3.4028235e+38  ;;  %v2954_v13 = vsel %vm7420_vm8, %v6924_v6, -3.4028235e+38  ;;  %v9041_v19 = vld [vmem:[#allocation48_spill] sm:$0xff]  ;;  %v3004_v32 = vmax.f32 %v2947_v2, %v2948_v29  ;;  %v3011_v28 = vmax.f32 %v2949_v62, %v2950_v48 }
 0x1f1   : > { %v2951_v59 = vsel %vm7409_vm4, %v9039_v17, -3.4028235e+38  ;;  %v2955_v21 = vsel %vm7409_vm4, %v6930_v10, -3.4028235e+38  ;;  %v2956_v52 = vsel %vm7420_vm8, %v9041_v19, -3.4028235e+38  ;;  %v3025_v49 = vmax.f32 %v2953_v61, %v2954_v13 }
 0x1f2   : > { %v9042_v16 = vld [vmem:[#allocation49_spill] sm:$0xff]  ;;  %v9043_v20 = vld [vmem:[#allocation50_spill] sm:$0xff]  ;;  %v9044_v6 = vld [vmem:[#allocation51_spill] sm:$0xff]  ;;  %v2970_v35 = vrot.slane %v2969_v36, 4  ;;  %v2984_v2 = vrot.slane %v2983_v37, 4  ;;  %v2991_v29 = vrot.slane %v2990_v1, 4 }
 0x1f3   : > { %v2957_v15 = vsel %vm7409_vm4, %v9042_v16, -3.4028235e+38  ;;  %v2958_v17 = vsel %vm7420_vm8, %v9043_v20, -3.4028235e+38  ;;  %v2959_v30 = vsel %vm7409_vm4, %v9044_v6, -3.4028235e+38  ;;  %v3018_v6 = vmax.f32 %v2951_v59, %v2952_v27 }
 0x1f4   : > { %v9045_v57 = vld [vmem:[#allocation52_spill] sm:$0xff]  ;;  %v9046_v22 = vld [vmem:[#allocation53_spill] sm:$0xff]  ;;  %v2977_v16 = vrot.slane %v2976_v47, 4  ;;  %v2998_v24 = vrot.slane %v2997_v63, 4  ;;  %v3005_v53 = vrot.slane %v3004_v32, 4  ;;  %v3012_v20 = vrot.slane %v3011_v28, 4 }
 0x1f5   : > { %v2960_v10 = vsel %vm7420_vm8, %v9045_v57, -3.4028235e+38  ;;  %v2961_v19 = vsel %vm7409_vm4, %v9046_v22, -3.4028235e+38  ;;  %v2971_v34 = vmax.f32 %v2969_v36, %v2970_v35  ;;  %v2985_v39 = vmax.f32 %v2983_v37, %v2984_v2  ;;  %v9047_v36 = vld [vmem:[#allocation54_spill] sm:$0xff]  ;;  %v9048_v59 = vld [vmem:[#allocation55_spill] sm:$0xff] }
 0x1f6   : > { %v2978_v4 = vmax.f32 %v2976_v47, %v2977_v16  ;;  %v2992_v38 = vmax.f32 %v2990_v1, %v2991_v29  ;;  %v2999_v7 = vmax.f32 %v2997_v63, %v2998_v24  ;;  %v3006_v9 = vmax.f32 %v3004_v32, %v3005_v53  ;;  %v9049_v1 = vld [vmem:[#allocation12_spill] sm:$0xff]  ;;  %v9054_v32 = vld [vmem:[#allocation10_spill] sm:$0xff]  ;;  %s7835_s19 = scalar_select %p3333_p3, 1, 0 }
 0x1f7   : > { %v3013_v57 = vmax.f32 %v3011_v28, %v3012_v20  ;;  %v2972_v62 = vrot.slane %v2971_v34, 2  ;;  %v2986_v8 = vrot.slane %v2985_v39, 2  ;;  %v3019_v25 = vrot.slane %v3018_v6, 4  ;;  %s8155_s17 = scalar_select %p3705_p11, 1, 0 }
 0x1f8   : > { %v2979_v48 = vrot.slane %v2978_v4, 2  ;;  %v2993_v22 = vrot.slane %v2992_v38, 2  ;;  %v3000_v54 = vrot.slane %v2999_v7, 2  ;;  %v3007_v51 = vrot.slane %v3006_v9, 2  ;;  %s8191_s12 = scalar_select %p3747_p2, 1, 0 }
 0x1f9   : > { %v3014_v58 = vrot.slane %v3013_v57, 2  ;;  %v2973_v56 = vmax.f32 %v2971_v34, %v2972_v62  ;;  %v7525_v5 = vmax.f32 %v2985_v39, %v2986_v8  ;;  %v3020_v35 = vmax.f32 %v3018_v6, %v3019_v25  ;;  %s8223_s30 = scalar_select %p3789_p0, 1, 0 }
 0x1fa   : > { %v2980_v33 = vmax.f32 %v2978_v4, %v2979_v48  ;;  %v2962_v37 = vsel %vm7420_vm8, %v9047_v36, -3.4028235e+38  ;;  %v7530_v24 = vmax.f32 %v2992_v38, %v2993_v22  ;;  %v7532_v53 = vmax.f32 %v2999_v7, %v3000_v54  ;;  %v9051_v38 = vld [vmem:[#allocation9_spill] sm:$0xff]  ;;  %v9052_v7 = vld [vmem:[#allocation7_spill] sm:$0xff]  ;;  %v9053_v54 = vld [vmem:[#allocation8_spill] sm:$0xff]  ;;  %p135_p5 = scmp.lt.s32.totalorder %s4390_s14, 2 }
 0x1fb   : > { %v7534_v47 = vmax.f32 %v3006_v9, %v3007_v51  ;;  %v2963_v27 = vsel %vm7409_vm4, %v9048_v59, -3.4028235e+38  ;;  %v2964_v8 = vsel %vm7420_vm8, %v9049_v1, -3.4028235e+38  ;;  %v2974_v34 = vrot.slane %v2973_v56, 1 }
 0x1fc   : > { %v2981_v25 = vrot.slane %v2980_v33, 1  ;;  %v9050_v39 = vrot.slane %v7396_v18, 2  ;;  %v2965_v9 = vsel %vm7409_vm4, %v9051_v38, -3.4028235e+38  ;;  %v2966_v51 = vsel %vm7420_vm8, %v9052_v7, -3.4028235e+38 }
 0x1fd   : > { %v2967_v63 = vsel %vm7409_vm4, %v9053_v54, -3.4028235e+38  ;;  %v2968_v28 = vsel %vm7420_vm8, %v9054_v32, -3.4028235e+38  ;;  %v2988_v16 = vrot.slane %v7525_v5, 1  ;;  %v3021_v2 = vrot.slane %v3020_v35, 2 }
 0x1fe   : > { %v7545_v4 = vmax.f32 %v7396_v18, %v9050_v39  ;;  %v7560_v18 = vmax.f32 %v3013_v57, %v3014_v58  ;;  %v7562_v29 = vmax.f32 %v2973_v56, %v2974_v34  ;;  %v2995_v20 = vrot.slane %v7530_v24, 1  ;;  %s9259_s14 = smov (!%p135_p5, %s4390_s14), 2 }
 0x1ff   : > { %v3002_v6 = vrot.slane %v7532_v53, 1  ;;  %v3009_v62 = vrot.slane %v7534_v47, 1  ;;  %v7567_v48 = vmax.f32 %v2980_v33, %v2981_v25  ;;  %v3032_v22 = vmax.f32 %v2955_v21, %v2956_v52  ;;  %s8293_s20 = scalar_select %p3831_p6, 1, 0 }
 0x200   : > { %v3039_v36 = vmax.f32 %v2957_v15, %v2958_v17  ;;  %v3046_v41 = vmax.f32 %v2959_v30, %v2960_v10  ;;  %v3053_v59 = vmax.f32 %v2961_v19, %v2962_v37  ;;  %v3060_v58 = vmax.f32 %v2963_v27, %v2964_v8  ;;  %s4175_s22 = smul.u32 56, %s9259_s14 }
 0x201   : > { %v3067_v57 = vmax.f32 %v2965_v9, %v2966_v51  ;;  %v7569_v1 = vmax.f32 %v3020_v35, %v3021_v2  ;;  %v3026_v56 = vrot.slane %v3025_v49, 4  ;;  %v3033_v34 = vrot.slane %v3032_v22, 4 }
 0x202   : > { %v3040_v39 = vrot.slane %v3039_v36, 4  ;;  %v3047_v38 = vrot.slane %v3046_v41, 4  ;;  %v3054_v7 = vrot.slane %v3053_v59, 4  ;;  %v3061_v54 = vrot.slane %v3060_v58, 4  ;;  %s8307_s4 = scalar_lea.vmem %s8357_s2, %s4175_s22 }
 0x203   : > { %v3068_v32 = vrot.slane %v3067_v57, 4  ;;  %v3027_v33 = vmax.f32 %v3025_v49, %v3026_v56  ;;  %v3034_v25 = vmax.f32 %v3032_v22, %v3033_v34  ;;  %v3074_v13 = vmax.f32 %v2967_v63, %v2968_v28 }
 0x204   : > { %v3041_v61 = vmax.f32 %v3039_v36, %v3040_v39  ;;  %v3048_v21 = vmax.f32 %v3046_v41, %v3047_v38  ;;  %v3055_v52 = vmax.f32 %v3053_v59, %v3054_v7  ;;  %v3062_v15 = vmax.f32 %v3060_v58, %v3061_v54 }
 0x205   : > { %v3069_v17 = vmax.f32 %v3067_v57, %v3068_v32  ;;  %v3028_v30 = vrot.slane %v3027_v33, 2  ;;  %v3035_v10 = vrot.slane %v3034_v25, 2  ;;  %v3075_v35 = vrot.slane %v3074_v13, 4 }
 0x206   : > { %v3042_v19 = vrot.slane %v3041_v61, 2  ;;  %v3049_v37 = vrot.slane %v3048_v21, 2  ;;  %v3056_v27 = vrot.slane %v3055_v52, 2  ;;  %v3063_v8 = vrot.slane %v3062_v15, 2 }
 0x207   : > { %v3070_v9 = vrot.slane %v3069_v17, 2  ;;  %vm2759_vm4 = vcmp.eq.s32.totalorder %v8854_v50, 25  ;;  %v3029_v51 = vmax.f32 %v3027_v33, %v3028_v30  ;;  %v3036_v63 = vmax.f32 %v3034_v25, %v3035_v10 }
 0x208   : > { %v3043_v28 = vmax.f32 %v3041_v61, %v3042_v19  ;;  %v3076_v2 = vmax.f32 %v3074_v13, %v3075_v35  ;;  %vm2802_vm8 = vcmp.eq.s32.totalorder %v8983_v45, 32  ;;  %v3050_v49 = vmax.f32 %v3048_v21, %v3049_v37 }
 0x209   : > { %v3057_v22 = vmax.f32 %v3055_v52, %v3056_v27  ;;  %v3064_v36 = vmax.f32 %v3062_v15, %v3063_v8  ;;  %v3071_v41 = vmax.f32 %v3069_v17, %v3070_v9  ;;  %v9056_v59 = vstv %s7361_s15  ;;  %s7842_s15 = scalar_select %p3375_p12, 1, 0 }
 0x20a   : > { %vm7585_vm15 = vcmp.eq.s32.totalorder %v9056_v59, 1  ;;  %v3030_v57 = vrot.slane %v3029_v51, 1  ;;  %v3037_v56 = vrot.slane %v3036_v63, 1  ;;  %v3044_v34 = vrot.slane %v3043_v28, 1 }
 0x20b   : > { %v3077_v39 = vrot.slane %v3076_v2, 2  ;;  %v2989_v38 = vmax.f32 %v7525_v5, %v2988_v16  ;;  %v3051_v7 = vrot.slane %v3050_v49, 1  ;;  %v3058_v54 = vrot.slane %v3057_v22, 1 }
 0x20c   : > { %v3065_v32 = vrot.slane %v3064_v36, 1  ;;  %v3031_v33 = vmax.f32 %v3029_v51, %v3030_v57  ;;  %v3038_v25 = vmax.f32 %v3036_v63, %v3037_v56  ;;  %v3045_v61 = vmax.f32 %v3043_v28, %v3044_v34 }
 0x20d   : > { %v3078_v13 = vmax.f32 %v3076_v2, %v3077_v39  ;;  %v2996_v21 = vmax.f32 %v7530_v24, %v2995_v20  ;;  %v3016_v52 = vrot.slane %v7560_v18, 1  ;;  %v3023_v5 = vrot.slane %v7569_v1, 1 }
 0x20e   : > { %v3072_v16 = vrot.slane %v3071_v41, 1  ;;  %v3052_v15 = vmax.f32 %v3050_v49, %v3051_v7  ;;  %vm9059_vm6 = vcmask 1041409   ;;  %v3003_v20 = vmax.f32 %v7532_v53, %v3002_v6 }
 0x20f   : > { %v3079_v17 = vrot.slane %v3078_v13, 1  ;;  %v3098_v30 = vsel %vm9059_vm6, %v7567_v48, %v7562_v29  ;;  %vm9060_vm11 = vmmov %vm9059_vm6  ;;  %v3059_v10 = vmax.f32 %v3057_v22, %v3058_v54  ;;  %vm9061_vm10 = vcmask 1042434  }
 0x210   : > { %v3105_v24 = vsel %vm9060_vm11, %v3038_v25, %v3031_v33  ;;  %v3099_v19 = vsel %vm9061_vm10, %v2989_v38, %v3098_v30  ;;  %vm9062_vm12 = vmmov %vm9061_vm10  ;;  %v3010_v29 = vmax.f32 %v7534_v47, %v3009_v62  ;;  %v3066_v48 = vmax.f32 %v3064_v36, %v3065_v32 }
 0x211   : > { %v3106_v35 = vsel %vm9062_vm12, %v3045_v61, %v3105_v24  ;;  %vm9063_vm13 = vcmask 1043459   ;;  %v3017_v53 = vmax.f32 %v7560_v18, %v3016_v52  ;;  %v3073_v6 = vmax.f32 %v3071_v41, %v3072_v16  ;;  %v9088_v24 = vld [vmem:[#allocation16_spill] sm:$0xff] }
 0x212   : > { %v3100_v37 = vsel %vm9063_vm13, %v2996_v21, %v3099_v19  ;;  %vm9064_vm9 = vmmov %vm9063_vm13  ;;  %vm9065_vm2 = vcmask 1044484   ;;  %v3024_v47 = vmax.f32 %v7569_v1, %v3023_v5  ;;  %v3080_v62 = vmax.f32 %v3078_v13, %v3079_v17  ;;  %v9084_v21 = vld [vmem:[#allocation14_spill] sm:$0xff]  ;;  %v9086_v5 = vld [vmem:[#allocation15_spill] sm:$0xff] }
 0x213   : > { %v3107_v27 = vsel %vm9064_vm9, %v3052_v15, %v3106_v35  ;;  %v3101_v8 = vsel %vm9065_vm2, %v3003_v20, %v3100_v37  ;;  %vm9066_vm6 = vmmov %vm9065_vm2  ;;  %vm9067_vm11 = vcmask 1045509   ;;  %v9069_v18 = vsel %vm7405_vm0, 0.0, %v7386_v12 }
 0x214   : > { %v3108_v9 = vsel %vm9066_vm6, %v3059_v10, %v3107_v27  ;;  %v3102_v51 = vsel %vm9067_vm11, %v3010_v29, %v3101_v8  ;;  %vm9068_vm10 = vmmov %vm9067_vm11  ;;  %v7650_v28 = vsel %vm2759_vm4, %v9069_v18, %v7324_v0  ;;  %v2797_v1 = vsel %vm7585_vm15, 0.0, %v7444_v14  ;;  %v9090_v29 = vld [vmem:[#allocation19_spill] sm:$0xff] }
 0x215   : > { %v3109_v63 = vsel %vm9068_vm10, %v3066_v48, %v3108_v9  ;;  %vm9070_vm12 = vcmask 1046534   ;;  %v7667_v12 = vsel %vm2802_vm8, %v2797_v1, %v7352_v44  ;;  %v2875_v0 = vrot.slane %v7545_v4, 1 }
 0x216   : > { %v3103_v2 = vsel %vm9070_vm12, %v3017_v53, %v3102_v51  ;;  %vm9071_vm13 = vmmov %vm9070_vm12  ;;  %vm9072_vm0 = vcmask 1047559   ;;  %v9074_v22 = vrot.slane %v7394_v11, 1  ;;  %v9075_v41 = vstv %s7375_s10 }
 0x217   : > { %v3110_v49 = vsel %vm9071_vm13, %v3073_v6, %v3109_v63  ;;  %v7671_v26 = vsel %vm9072_vm0, %v3024_v47, %v3103_v2  ;;  %vm9073_vm4 = vmmov %vm9072_vm0  ;;  %vm7686_vm15 = vcmp.eq.s32.totalorder %v9075_v41, 1  ;;  %vm9078_vm2 = vnez %v8535_v42 }
 0x218   : > { %v7674_v14 = vsel %vm9073_vm4, %v3080_v62, %v3110_v49  ;;  %v7682_v36 = vmax.f32 %v7394_v11, %v9074_v22  ;;  %v3114_v59 = vsel %vm4912_vm3, %v7671_v26, -3.4028235e+38  ;;  %v3156_v57 = vsel %vm4949_vm14, %v7671_v26, -3.4028235e+38  ;;  %v9092_v62 = vld [vmem:[#allocation20_spill] sm:$0xff] }
 0x219   : > { %v3115_v58 = vsel %vm8839_vm5, %v7674_v14, -3.4028235e+38  ;;  %v3157_v56 = vsel %vm8965_vm1, %v7674_v14, -3.4028235e+38  ;;  %v3198_v34 = vsel %vm9078_vm2, %v7671_v26, -3.4028235e+38  ;;  %vm9079_vm6 = vnez %v8541_v23 }
 0x21a   : > { %v3116_v11 = vmax.f32 %v3114_v59, %v3115_v58  ;;  %v3199_v39 = vsel %vm9079_vm6, %v7674_v14, -3.4028235e+38  ;;  %v9080_v38 = vstv %s7383_s0  ;;  %v3158_v54 = vmax.f32 %v3156_v57, %v3157_v56  ;;  %s8027_s0 = scalar_select %p3621_p4, 1, 0 }
 0x21b   : > { %vm7713_vm11 = vcmp.eq.s32.totalorder %v9080_v38, 1  ;;  %v3200_v32 = vmax.f32 %v3198_v34, %v3199_v39  ;;  %v3240_v33 = vsel %vm8968_vm7, %v7671_v26, -3.4028235e+38  ;;  %vm9083_vm10 = vnez %v8550_v46  ;;  %v9097_v34 = vld [vmem:[#allocation11_spill] sm:$0xff] }
 0x21c   : > { %v3241_v25 = vsel %vm9083_vm10, %v7674_v14, -3.4028235e+38  ;;  %v3117_v61 = vrot.slane %v3116_v11, 4  ;;  %vm9085_vm12 = vnez %v9084_v21  ;;  %vm9087_vm13 = vnez %v9086_v5 }
 0x21d   : > { %v3242_v13 = vmax.f32 %v3240_v33, %v3241_v25  ;;  %v3282_v52 = vsel %vm9085_vm12, %v7671_v26, -3.4028235e+38  ;;  %v3283_v16 = vsel %vm9087_vm13, %v7674_v14, -3.4028235e+38  ;;  %v3159_v15 = vrot.slane %v3158_v54, 4 }
 0x21e   : > { %v3201_v17 = vrot.slane %v3200_v32, 4  ;;  %v3284_v30 = vmax.f32 %v3282_v52, %v3283_v16  ;;  %vm9089_vm0 = vnez %v9088_v24  ;;  %v3118_v10 = vmax.f32 %v3116_v11, %v3117_v61  ;;  %v4311_v61 = vld [vmem:[%s4448_s29 + $0x10] sm:$0xff] }
 0x21f   : > { %v3324_v20 = vsel %vm9089_vm0, %v7671_v26, -3.4028235e+38  ;;  %v3125_v19 = vstv %s7595_s26  ;;  %v3243_v35 = vrot.slane %v3242_v13, 4  ;;  %vm9091_vm4 = vnez %v9090_v29  ;;  %s3874_s26 = scalar_select %p3873_p7, 1, 0 }
 0x220   : > { %v3325_v48 = vsel %vm9091_vm4, %v7674_v14, -3.4028235e+38  ;;  %v3160_v37 = vmax.f32 %v3158_v54, %v3159_v15  ;;  %v3202_v27 = vmax.f32 %v3200_v32, %v3201_v17  ;;  %v3285_v53 = vrot.slane %v3284_v30, 4  ;;  %v9101_v32 = vld [vmem:[#allocation5_spill] sm:$0xff] }
 0x221   : > { %v3326_v6 = vmax.f32 %v3324_v20, %v3325_v48  ;;  %v2876_v8 = vmax.f32 %v7545_v4, %v2875_v0  ;;  %v3119_v9 = vrot.slane %v3118_v10, 2  ;;  %v3244_v47 = vmax.f32 %v3242_v13, %v3243_v35  ;;  %v9104_v20 = vld [vmem:[#allocation6_spill] sm:$0xff] }
 0x222   : > { %vm9093_vm9 = vnez %v9092_v62  ;;  %v3161_v63 = vrot.slane %v3160_v37, 2  ;;  %v3203_v18 = vrot.slane %v3202_v27, 2  ;;  %v3286_v1 = vmax.f32 %v3284_v30, %v3285_v53 }
 0x223   : > { %v3366_v51 = vsel %vm9093_vm9, %v7671_v26, -3.4028235e+38  ;;  %v3327_v2 = vrot.slane %v3326_v6, 4  ;;  %v2839_v4 = vsel %vm7686_vm15, 0.0, %v7682_v36  ;;  %v3120_v49 = vmax.f32 %v3118_v10, %v3119_v9  ;;  %v9094_v26 = vld [vmem:[#allocation21_spill] sm:$0xff] }
 0x224   : > { %v3245_v0 = vrot.slane %v3244_v47, 2  ;;  %vm9095_vm8 = vnez %v9094_v26  ;;  %v3162_v41 = vmax.f32 %v3160_v37, %v3161_v63  ;;  %v3167_v59 = vstv %s7636_s27  ;;  %v4314_v10 = vld [vmem:[%s4448_s29 + $0x20] sm:$0xff] }
 0x225   : > { %v3367_v22 = vsel %vm9095_vm8, %v7674_v14, -3.4028235e+38  ;;  %v3204_v58 = vmax.f32 %v3202_v27, %v3203_v18  ;;  %v3287_v36 = vrot.slane %v3286_v1, 2  ;;  %v2881_v44 = vsel %vm7713_vm11, 0.0, %v2876_v8 }
 0x226   : > { %v3246_v57 = vmax.f32 %v3244_v47, %v3245_v0  ;;  %v3328_v11 = vmax.f32 %v3326_v6, %v3327_v2  ;;  %v3368_v56 = vmax.f32 %v3366_v51, %v3367_v22  ;;  %vm9096_vm15 = vcmp.eq.s32.totalorder %v8983_v45, 39  ;;  %v9116_v22 = vld [vmem:[#allocation23_spill] sm:$0xff]  ;;  %v4318_v51 = vld [vmem:[%s4448_s29 + $0x40] sm:$0xff] }
 0x227   : > { %v7781_v14 = vsel %vm9096_vm15, %v2839_v4, %v7667_v12  ;;  %vm9098_vm8 = vcmp.eq.s32.totalorder %v8988_v31, 46  ;;  %vm7788_vm9 = vcmp.eq.s32.totalorder %v3125_v19, 1  ;;  %v3288_v7 = vmax.f32 %v3286_v1, %v3287_v36  ;;  %v9107_v19 = vld [vmem:[#allocation13_spill] sm:$0xff] }
 0x228   : > { %v7786_v39 = vsel %vm9098_vm8, %v2881_v44, %v9097_v34  ;;  %v3121_v54 = vrot.slane %v3120_v49, 1  ;;  %v3209_v12 = vstv %s7662_s7  ;;  %v3369_v33 = vrot.slane %v3368_v56, 4 }
 0x229   : > { %v3163_v25 = vrot.slane %v3162_v41, 1  ;;  %vm7806_vm8 = vcmp.eq.s32.totalorder %v3167_v59, 1  ;;  %v3205_v13 = vrot.slane %v3204_v58, 1  ;;  %v3251_v52 = vstv %s7765_s16 }
 0x22a   : > { %v3247_v16 = vrot.slane %v3246_v57, 1  ;;  %v3329_v15 = vrot.slane %v3328_v11, 2  ;;  %v3370_v17 = vmax.f32 %v3368_v56, %v3369_v33  ;;  %v3423_v30 = vstv %s9255_s24  ;;  %v9124_v56 = vld [vmem:[#allocation30_spill] sm:$0xff]  ;;  %v4310_v33 = vld [vmem:[%s4448_s29] sm:$0xff] }
 0x22b   : > { %vm7819_vm11 = vcmp.eq.s32.totalorder %v3209_v12, 1  ;;  %v3289_v35 = vrot.slane %v3288_v7, 1  ;;  %v3122_v48 = vmax.f32 %v3120_v49, %v3121_v54  ;;  %vm7824_vm0 = vcmp.eq.s32.totalorder %v3251_v52, 1 }
 0x22c   : > { %v3293_v27 = vstv %s7797_s5  ;;  %v3164_v53 = vmax.f32 %v3162_v41, %v3163_v25  ;;  %v3206_v6 = vmax.f32 %v3204_v58, %v3205_v13  ;;  %v3371_v8 = vrot.slane %v3370_v17, 2 }
 0x22d   : > { %vm3424_vm4 = vcmp.ge.s32.totalorder %v9101_v32, %v3423_v30  ;;  %v3248_v9 = vmax.f32 %v3246_v57, %v3247_v16  ;;  %v3330_v47 = vmax.f32 %v3328_v11, %v3329_v15  ;;  %vm7846_vm13 = vcmp.ge.s32.totalorder %v9104_v20, %v3423_v30  ;;  %v9121_v57 = vld [vmem:[#allocation26_spill] sm:$0xff] }
 0x22e   : > { %v3426_v63 = vstv %s9257_s8  ;;  %v3290_v18 = vmax.f32 %v3288_v7, %v3289_v35  ;;  %v7851_v1 = vmax.f32 %v3370_v17, %v3371_v8  ;;  %v3127_v2 = vsel %vm7788_vm9, 0.0, %v3122_v48  ;;  %v4312_v16 = vld [vmem:[%s4448_s29 + $0x8] sm:$0xff]  ;;  %v4313_v17 = vld [vmem:[%s4448_s29 + $0x18] sm:$0xff] }
 0x22f   : > { %vm3427_vm15 = vcmp.lt.s32.totalorder %v9101_v32, %v3426_v63  ;;  %vm3428_vm12 = vcmp.lt.s32.totalorder %v9104_v20, %v3426_v63  ;;  %vm7857_vm10 = vcmp.eq.s32.totalorder %v3293_v27, 1  ;;  %vm3300_vm7 = vcmp.eq.s32.totalorder %v8983_v45, 33  ;;  %v4315_v48 = vld [vmem:[%s4448_s29 + $0x28] sm:$0xff]  ;;  %v4316_v27 = vld [vmem:[%s4448_s29 + $0x30] sm:$0xff] }
 0x230   : > { %vm7863_vm6 = vmand %vm3424_vm4, %vm3427_vm15  ;;  %vm9117_vm2 = vcmp.eq.s32.totalorder %v9101_v32, 5  ;;  %v3169_v59 = vsel %vm7806_vm8, 0.0, %v3164_v53  ;;  %v3211_v58 = vsel %vm7819_vm11, 0.0, %v3206_v6  ;;  %vm9122_vm4 = vcmp.eq.s32.totalorder %v9104_v20, 12  ;;  %v4317_v6 = vld [vmem:[%s4448_s29 + $0x38] sm:$0xff]  ;;  %v4319_v63 = vld [vmem:[%s4448_s29 + $0x48] sm:$0xff] }
 0x231   : > { %v7870_v41 = vsel %vm9117_vm2, %v3127_v2, %v9116_v22  ;;  %vm7879_vm9 = vmand %vm7846_vm13, %vm3428_vm12  ;;  %v7886_v11 = vsel %vm9122_vm4, %v3169_v59, %v9121_v57  ;;  %vm9125_vm2 = vcmp.eq.s32.totalorder %v9107_v19, 19  ;;  %v3253_v38 = vsel %vm7824_vm0, 0.0, %v3248_v9  ;;  %v4320_v2 = vld [vmem:[%s4448_s29 + $0x50] sm:$0xff]  ;;  %v4321_v22 = vld [vmem:[%s4448_s29 + $0x58] sm:$0xff] }
 0x232   : > { %9118 = vst [vmem:[#allocation29_spill] sm:$0xff] %v7870_v41  ;;  %v7891_v34 = vsel %vm9125_vm2, %v3211_v58, %v9124_v56  ;;  %v3331_v7 = vrot.slane %v3330_v47, 1  ;;  %v3295_v54 = vsel %vm7857_vm10, 0.0, %v3290_v18  ;;  %v3435_v25 = vsel %vm7863_vm6, %v4310_v33, -3.4028235e+38  ;;  %v4322_v59 = vld [vmem:[%s4448_s29 + $0x60] sm:$0xff] }
 0x233   : > { %9123 = vst [vmem:[#allocation22_spill] sm:$0xff] %v7886_v11  ;;  %v3437_v13 = vsel %vm7863_vm6, %v4311_v61, -3.4028235e+38  ;;  %vm9127_vm12 = vcmp.eq.s32.totalorder %v8854_v50, 26  ;;  %v3436_v15 = vsel %vm7879_vm9, %v4312_v16, -3.4028235e+38 }
 0x234   : > { %9126 = vst [vmem:[#allocation36_spill] sm:$0xff] %v7891_v34  ;;  %v7907_v52 = vsel %vm9127_vm12, %v3253_v38, %v7650_v28  ;;  %v3438_v30 = vsel %vm7879_vm9, %v4313_v17, -3.4028235e+38  ;;  %v3439_v35 = vsel %vm7863_vm6, %v4314_v10, -3.4028235e+38  ;;  %v7921_v28 = vsel %vm3300_vm7, %v3295_v54, %v7781_v14  ;;  %v4323_v38 = vld [vmem:[%s4448_s29 + $0x68] sm:$0xff] }
 0x235   : > { %9128 = vst [vmem:[#allocation27_spill] sm:$0xff] %v7907_v52  ;;  %v3440_v37 = vsel %vm7879_vm9, %v4315_v48, -3.4028235e+38  ;;  %v3441_v53 = vsel %vm7863_vm6, %v4316_v27, -3.4028235e+38  ;;  %v7932_v9 = vmax.f32 %v3330_v47, %v3331_v7  ;;  %v3467_v57 = vmax.f32 %v3435_v25, %v3436_v15  ;;  %v4324_v54 = vld [vmem:[%s4448_s29 + $0x70] sm:$0xff] }
 0x236   : > { %9129 = vst [vmem:[#allocation24_spill] sm:$0xff] %v7921_v28  ;;  %v3442_v8 = vsel %vm7879_vm9, %v4317_v6, -3.4028235e+38  ;;  %v3443_v14 = vsel %vm7863_vm6, %v4318_v51, -3.4028235e+38  ;;  %v3474_v56 = vmax.f32 %v3437_v13, %v3438_v30  ;;  %v4325_v61 = vld [vmem:[%s4448_s29 + $0x78] sm:$0xff]  ;;  %v3481_v17 = vmax.f32 %v3439_v35, %v3440_v37 }
 0x237   : > { %v3444_v18 = vsel %vm7879_vm9, %v4319_v63, -3.4028235e+38  ;;  %v3445_v4 = vsel %vm7863_vm6, %v4320_v2, -3.4028235e+38  ;;  %v3446_v47 = vsel %vm7879_vm9, %v4321_v22, -3.4028235e+38  ;;  %v3488_v30 = vmax.f32 %v3441_v53, %v3442_v8 }
 0x238   : > { %v3447_v58 = vsel %vm7863_vm6, %v4322_v59, -3.4028235e+38  ;;  %v3448_v7 = vsel %vm7879_vm9, %v4323_v38, -3.4028235e+38  ;;  %v3449_v33 = vsel %vm7863_vm6, %v4324_v54, -3.4028235e+38  ;;  %v3495_v48 = vmax.f32 %v3443_v14, %v3444_v18 }
 0x239   : > { %v3450_v16 = vsel %vm7879_vm9, %v4325_v61, -3.4028235e+38  ;;  %v7959_v10 = vld [vmem:[%s4448_s29 + $0x80] sm:$0xff]  ;;  %v7965_v13 = vld [vmem:[%s4448_s29 + $0x88] sm:$0xff]  ;;  %v7977_v35 = vld [vmem:[%s4448_s29 + $0x90] sm:$0xff]  ;;  %v3502_v8 = vmax.f32 %v3445_v4, %v3446_v47  ;;  %v3509_v47 = vmax.f32 %v3447_v58, %v3448_v7  ;;  %v3468_v54 = vrot.slane %v3467_v57, 4 }
 0x23a   : > { %v7983_v27 = vld [vmem:[%s4448_s29 + $0x98] sm:$0xff]  ;;  %v7989_v51 = vld [vmem:[%s4448_s29 + $0xa0] sm:$0xff]  ;;  %v7995_v14 = vld [vmem:[%s4448_s29 + $0xa8] sm:$0xff]  ;;  %v3475_v61 = vrot.slane %v3474_v56, 4  ;;  %v3482_v36 = vrot.slane %v3481_v17, 4  ;;  %v3489_v12 = vrot.slane %v3488_v30, 4  ;;  %v3516_v4 = vmax.f32 %v3449_v33, %v3450_v16 }
 0x23b   : > { %v8001_v18 = vld [vmem:[%s4448_s29 + $0xb0] sm:$0xff]  ;;  %v8007_v22 = vld [vmem:[%s4448_s29 + $0xb8] sm:$0xff]  ;;  %v8013_v59 = vld [vmem:[%s4448_s29 + $0xc0] sm:$0xff]  ;;  %v3496_v49 = vrot.slane %v3495_v48, 4  ;;  %v3503_v53 = vrot.slane %v3502_v8, 4  ;;  %v3510_v2 = vrot.slane %v3509_v47, 4  ;;  %v3469_v63 = vmax.f32 %v3467_v57, %v3468_v54 }
 0x23c   : > { %v3459_v38 = vsel %vm7863_vm6, %v8013_v59, -3.4028235e+38  ;;  %v3476_v58 = vmax.f32 %v3474_v56, %v3475_v61  ;;  %v3483_v7 = vmax.f32 %v3481_v17, %v3482_v36  ;;  %v3490_v37 = vmax.f32 %v3488_v30, %v3489_v12  ;;  %v4335_v33 = vld [vmem:[%s4448_s29 + $0xc8] sm:$0xff] }
 0x23d   : > { %v3497_v6 = vmax.f32 %v3495_v48, %v3496_v49  ;;  %v3504_v59 = vmax.f32 %v3502_v8, %v3503_v53  ;;  %v3511_v25 = vmax.f32 %v3509_v47, %v3510_v2  ;;  %v3470_v15 = vrot.slane %v3469_v63, 2  ;;  %v4336_v53 = vld [vmem:[%s4448_s29 + $0xd0] sm:$0xff] }
 0x23e   : > { %v3477_v28 = vrot.slane %v3476_v58, 2  ;;  %v3484_v52 = vrot.slane %v3483_v7, 2  ;;  %v3517_v34 = vrot.slane %v3516_v4, 4  ;;  %v3491_v11 = vrot.slane %v3490_v37, 2 }
 0x23f   : > { %v3498_v41 = vrot.slane %v3497_v6, 2  ;;  %v3505_v45 = vrot.slane %v3504_v59, 2  ;;  %v3512_v57 = vrot.slane %v3511_v25, 2  ;;  %v3471_v49 = vmax.f32 %v3469_v63, %v3470_v15  ;;  %v4338_v63 = vld [vmem:[%s4448_s29 + $0xe0] sm:$0xff] }
 0x240   : > { %v3478_v36 = vmax.f32 %v3476_v58, %v3477_v28  ;;  %v8029_v12 = vmax.f32 %v3483_v7, %v3484_v52  ;;  %v3518_v56 = vmax.f32 %v3516_v4, %v3517_v34  ;;  %v3460_v16 = vsel %vm7879_vm9, %v4335_v33, -3.4028235e+38  ;;  %v4337_v52 = vld [vmem:[%s4448_s29 + $0xd8] sm:$0xff] }
 0x241   : > { %v8034_v17 = vmax.f32 %v3490_v37, %v3491_v11  ;;  %v8036_v30 = vmax.f32 %v3497_v6, %v3498_v41  ;;  %v8038_v48 = vmax.f32 %v3504_v59, %v3505_v45  ;;  %v3461_v28 = vsel %vm7863_vm6, %v4336_v53, -3.4028235e+38  ;;  %v4339_v37 = vld [vmem:[%s4448_s29 + $0xe8] sm:$0xff]  ;;  %v4340_v45 = vld [vmem:[%s4448_s29 + $0xf0] sm:$0xff]  ;;  %v4341_v4 = vld [vmem:[%s4448_s29 + $0xf8] sm:$0xff] }
 0x242   : > { %v3462_v34 = vsel %vm7879_vm9, %v4337_v52, -3.4028235e+38  ;;  %v3472_v15 = vrot.slane %v3471_v49, 1  ;;  %v3479_v8 = vrot.slane %v3478_v36, 1  ;;  %v3463_v11 = vsel %vm7863_vm6, %v4338_v63, -3.4028235e+38 }
 0x243   : > { %v3464_v41 = vsel %vm7879_vm9, %v4339_v37, -3.4028235e+38  ;;  %v3465_v6 = vsel %vm7863_vm6, %v4340_v45, -3.4028235e+38  ;;  %v3466_v47 = vsel %vm7879_vm9, %v4341_v4, -3.4028235e+38  ;;  %v8060_v61 = vmax.f32 %v3511_v25, %v3512_v57 }
 0x244   : > { %v3486_v54 = vrot.slane %v8029_v12, 1  ;;  %v3519_v58 = vrot.slane %v3518_v56, 2  ;;  %v8062_v7 = vmax.f32 %v3471_v49, %v3472_v15  ;;  %v3493_v59 = vrot.slane %v8034_v17, 1  ;;  %s8136_s29 = scalar_select %p3663_p13, 1, 0 }
 0x245   : > { %v8067_v52 = vmax.f32 %v3478_v36, %v3479_v8  ;;  %v9131_v63 = vsel %vm7879_vm9, %v7965_v13, -3.4028235e+38  ;;  %v9132_v25 = vsel %vm7863_vm6, %v7959_v10, -3.4028235e+38  ;;  %v9133_v49 = vsel %vm7879_vm9, %v7983_v27, -3.4028235e+38 }
 0x246   : > { %v3523_v57 = vmax.f32 %v9132_v25, %v9131_v63  ;;  %v9134_v15 = vsel %vm7863_vm6, %v7977_v35, -3.4028235e+38  ;;  %v9135_v36 = vsel %vm7879_vm9, %v7995_v14, -3.4028235e+38  ;;  %v9136_v13 = vsel %vm7863_vm6, %v7989_v51, -3.4028235e+38 }
 0x247   : > { %v3530_v37 = vmax.f32 %v9134_v15, %v9133_v49  ;;  %v3537_v8 = vmax.f32 %v9136_v13, %v9135_v36  ;;  %v9137_v10 = vsel %vm7879_vm9, %v8007_v22, -3.4028235e+38  ;;  %v9138_v27 = vsel %vm7863_vm6, %v8001_v18, -3.4028235e+38 }
 0x248   : > { %v3544_v45 = vmax.f32 %v9138_v27, %v9137_v10  ;;  %v3551_v35 = vmax.f32 %v3459_v38, %v3460_v16  ;;  %v3558_v4 = vmax.f32 %v3461_v28, %v3462_v34  ;;  %v3565_v63 = vmax.f32 %v3463_v11, %v3464_v41 }
 0x249   : > { %v8101_v25 = vmax.f32 %v3518_v56, %v3519_v58  ;;  %v3524_v14 = vrot.slane %v3523_v57, 4  ;;  %v3531_v49 = vrot.slane %v3530_v37, 4  ;;  %v3538_v15 = vrot.slane %v3537_v8, 4 }
 0x24a   : > { %v3545_v2 = vrot.slane %v3544_v45, 4  ;;  %v3552_v51 = vrot.slane %v3551_v35, 4  ;;  %v3559_v36 = vrot.slane %v3558_v4, 4  ;;  %v3566_v13 = vrot.slane %v3565_v63, 4 }
 0x24b   : > { %v3525_v44 = vmax.f32 %v3523_v57, %v3524_v14  ;;  %v3532_v53 = vmax.f32 %v3530_v37, %v3531_v49  ;;  %v3539_v22 = vmax.f32 %v3537_v8, %v3538_v15  ;;  %v3572_v33 = vmax.f32 %v3465_v6, %v3466_v47 }
 0x24c   : > { %v3546_v0 = vmax.f32 %v3544_v45, %v3545_v2  ;;  %v3553_v26 = vmax.f32 %v3551_v35, %v3552_v51  ;;  %v3560_v18 = vmax.f32 %v3558_v4, %v3559_v36  ;;  %v3567_v10 = vmax.f32 %v3565_v63, %v3566_v13 }
 0x24d   : > { %v3526_v38 = vrot.slane %v3525_v44, 2  ;;  %v3533_v16 = vrot.slane %v3532_v53, 2  ;;  %v3540_v56 = vrot.slane %v3539_v22, 2  ;;  %v3573_v28 = vrot.slane %v3572_v33, 4 }
 0x24e   : > { %v3547_v34 = vrot.slane %v3546_v0, 2  ;;  %v3554_v11 = vrot.slane %v3553_v26, 2  ;;  %v3561_v41 = vrot.slane %v3560_v18, 2  ;;  %v3568_v58 = vrot.slane %v3567_v10, 2 }
 0x24f   : > { %v3527_v27 = vmax.f32 %v3525_v44, %v3526_v38  ;;  %v3534_v62 = vmax.f32 %v3532_v53, %v3533_v16  ;;  %v3541_v50 = vmax.f32 %v3539_v22, %v3540_v56  ;;  %v3574_v57 = vmax.f32 %v3572_v33, %v3573_v28 }
 0x250   : > { %vm3343_vm7 = vcmp.eq.s32.totalorder %v8988_v31, 40  ;;  %v3548_v6 = vmax.f32 %v3546_v0, %v3547_v34  ;;  %v3555_v2 = vmax.f32 %v3553_v26, %v3554_v11  ;;  %v3562_v47 = vmax.f32 %v3560_v18, %v3561_v41 }
 0x251   : > { %v3569_v37 = vmax.f32 %v3567_v10, %v3568_v58  ;;  %v9139_v8 = vstv %s7835_s19  ;;  %v3528_v35 = vrot.slane %v3527_v27, 1  ;;  %v3535_v4 = vrot.slane %v3534_v62, 1 }
 0x252   : > { %vm8106_vm6 = vcmp.eq.s32.totalorder %v9139_v8, 1  ;;  %v3542_v53 = vrot.slane %v3541_v50, 1  ;;  %v3575_v63 = vrot.slane %v3574_v57, 2  ;;  %v3487_v14 = vmax.f32 %v8029_v12, %v3486_v54 }
 0x253   : > { %v3549_v33 = vrot.slane %v3548_v6, 1  ;;  %v3556_v49 = vrot.slane %v3555_v2, 1  ;;  %v3563_v15 = vrot.slane %v3562_v47, 1  ;;  %v3529_v26 = vmax.f32 %v3527_v27, %v3528_v35 }
 0x254   : > { %v3536_v51 = vmax.f32 %v3534_v62, %v3535_v4  ;;  %v3543_v36 = vmax.f32 %v3541_v50, %v3542_v53  ;;  %v3576_v13 = vmax.f32 %v3574_v57, %v3575_v63  ;;  %v3494_v44 = vmax.f32 %v8034_v17, %v3493_v59 }
 0x255   : > { %v3514_v22 = vrot.slane %v8060_v61, 1  ;;  %v3521_v0 = vrot.slane %v8101_v25, 1  ;;  %v3570_v12 = vrot.slane %v3569_v37, 1  ;;  %v3550_v54 = vmax.f32 %v3548_v6, %v3549_v33 }
 0x256   : > { %v3577_v18 = vrot.slane %v3576_v13, 1  ;;  %vm9142_vm10 = vcmask 1041409   ;;  %v9144_v17 = vrot.slane %v8036_v30, 1  ;;  %v3557_v10 = vmax.f32 %v3555_v2, %v3556_v49 }
 0x257   : > { %v3596_v62 = vsel %vm9142_vm10, %v8067_v52, %v8062_v7  ;;  %vm9143_vm13 = vmmov %vm9142_vm10  ;;  %vm9145_vm0 = vcmask 1042434   ;;  %v9147_v7 = vrot.slane %v8038_v48, 1  ;;  %v3564_v56 = vmax.f32 %v3562_v47, %v3563_v15 }
 0x258   : > { %v3603_v50 = vsel %vm9143_vm13, %v3536_v51, %v3529_v26  ;;  %v3501_v59 = vmax.f32 %v8036_v30, %v9144_v17  ;;  %v3597_v38 = vsel %vm9145_vm0, %v3487_v14, %v3596_v62  ;;  %vm9146_vm11 = vmmov %vm9145_vm0  ;;  %vm9148_vm8 = vcmask 1043459  }
 0x259   : > { %v3604_v16 = vsel %vm9146_vm11, %v3543_v36, %v3603_v50  ;;  %v3508_v52 = vmax.f32 %v8038_v48, %v9147_v7  ;;  %v3598_v28 = vsel %vm9148_vm8, %v3494_v44, %v3597_v38  ;;  %vm9149_vm15 = vmmov %vm9148_vm8  ;;  %v3515_v34 = vmax.f32 %v8060_v61, %v3514_v22  ;;  %v9175_v38 = vld [vmem:[#allocation20_spill] sm:$0xff] }
 0x25a   : > { %v3605_v30 = vsel %vm9149_vm15, %v3550_v54, %v3604_v16  ;;  %v3571_v11 = vmax.f32 %v3569_v37, %v3570_v12  ;;  %vm9150_vm9 = vcmask 1044484   ;;  %v3522_v58 = vmax.f32 %v8101_v25, %v3521_v0 }
 0x25b   : > { %v3599_v41 = vsel %vm9150_vm9, %v3501_v59, %v3598_v28  ;;  %vm9151_vm4 = vmmov %vm9150_vm9  ;;  %v3578_v27 = vmax.f32 %v3576_v13, %v3577_v18  ;;  %vm9152_vm2 = vcmask 1045509   ;;  %v3337_v6 = vsel %vm8106_vm6, 0.0, %v7932_v9  ;;  %v9174_v59 = vld [vmem:[#allocation17_spill] sm:$0xff] }
 0x25c   : > { %v3606_v48 = vsel %vm9151_vm4, %v3557_v10, %v3605_v30  ;;  %v3600_v57 = vsel %vm9152_vm2, %v3508_v52, %v3599_v41  ;;  %vm9153_vm12 = vmmov %vm9152_vm2  ;;  %vm9154_vm10 = vcmask 1046534   ;;  %v3665_v37 = vstv %s8136_s29 }
 0x25d   : > { %v3607_v61 = vsel %vm9153_vm12, %v3564_v56, %v3606_v48  ;;  %v3601_v2 = vsel %vm9154_vm10, %v3515_v34, %v3600_v57  ;;  %vm9155_vm13 = vmmov %vm9154_vm10  ;;  %v8173_v25 = vsel %vm3343_vm7, %v3337_v6, %v7786_v39  ;;  %v9156_v8 = vrot.slane %v7851_v1, 1 }
 0x25e   : > { %v3608_v47 = vsel %vm9155_vm13, %v3571_v11, %v3607_v61  ;;  %vm9157_vm0 = vcmask 1047559   ;;  %v3707_v53 = vstv %s8155_s17  ;;  %vm9159_vm7 = vnez %v8535_v42 }
 0x25f   : > { %v8178_v35 = vmax.f32 %v7851_v1, %v9156_v8  ;;  %v8181_v9 = vsel %vm9157_vm0, %v3522_v58, %v3601_v2  ;;  %vm9158_vm6 = vmmov %vm9157_vm0  ;;  %vm9164_vm11 = vnez %v9086_v5  ;;  %vm9165_vm8 = vnez %v9088_v24  ;;  %v9182_v58 = vld [vmem:[#allocation21_spill] sm:$0xff] }
 0x260   : > { %v8184_v45 = vsel %vm9158_vm6, %v3578_v27, %v3608_v47  ;;  %v3612_v39 = vsel %vm4912_vm3, %v8181_v9, -3.4028235e+38  ;;  %v3654_v4 = vsel %vm4949_vm14, %v8181_v9, -3.4028235e+38  ;;  %v3696_v40 = vsel %vm9159_vm7, %v8181_v9, -3.4028235e+38 }
 0x261   : > { %v3613_v1 = vsel %vm8839_vm5, %v8184_v45, -3.4028235e+38  ;;  %v3655_v14 = vsel %vm8965_vm1, %v8184_v45, -3.4028235e+38  ;;  %vm9160_vm3 = vnez %v8541_v23  ;;  %vm9161_vm5 = vnez %v8545_v55 }
 0x262   : > { %v3614_v63 = vmax.f32 %v3612_v39, %v3613_v1  ;;  %v3697_v3 = vsel %vm9160_vm3, %v8184_v45, -3.4028235e+38  ;;  %v3656_v33 = vmax.f32 %v3654_v4, %v3655_v14  ;;  %v3738_v60 = vsel %vm9161_vm5, %v8181_v9, -3.4028235e+38  ;;  %v9186_v14 = vld [vmem:[#allocation18_spill] sm:$0xff] }
 0x263   : > { %v3698_v49 = vmax.f32 %v3696_v40, %v3697_v3  ;;  %vm9162_vm14 = vnez %v8550_v46  ;;  %vm9163_vm1 = vnez %v9084_v21  ;;  %v3781_v55 = vsel %vm9164_vm11, %v8184_v45, -3.4028235e+38 }
 0x264   : > { %v3739_v43 = vsel %vm9162_vm14, %v8184_v45, -3.4028235e+38  ;;  %v3615_v42 = vrot.slane %v3614_v63, 4  ;;  %v3780_v15 = vsel %vm9163_vm1, %v8181_v9, -3.4028235e+38  ;;  %v3657_v26 = vrot.slane %v3656_v33, 4 }
 0x265   : > { %v3740_v23 = vmax.f32 %v3738_v60, %v3739_v43  ;;  %v3699_v46 = vrot.slane %v3698_v49, 4  ;;  %v3782_v51 = vmax.f32 %v3780_v15, %v3781_v55  ;;  %v3822_v36 = vsel %vm9165_vm8, %v8181_v9, -3.4028235e+38  ;;  %v9187_v55 = vld [vmem:[#allocation29_spill] sm:$0xff] }
 0x266   : > { %v3616_v13 = vmax.f32 %v3614_v63, %v3615_v42  ;;  %vm3626_vm15 = vcmp.eq.s32.totalorder %v9101_v32, 6  ;;  %v3749_v21 = vstv %s8191_s12  ;;  %vm9166_vm9 = vnez %v9090_v29 }
 0x267   : > { %v3741_v44 = vrot.slane %v3740_v23, 4  ;;  %v3823_v5 = vsel %vm9166_vm9, %v8184_v45, -3.4028235e+38  ;;  %v9167_v22 = vstv %s8027_s0  ;;  %v3658_v24 = vmax.f32 %v3656_v33, %v3657_v26 }
 0x268   : > { %vm8242_vm4 = vcmp.eq.s32.totalorder %v9167_v22, 1  ;;  %vm3669_vm2 = vcmp.eq.s32.totalorder %v9104_v20, 13  ;;  %v3700_v12 = vmax.f32 %v3698_v49, %v3699_v46  ;;  %vm3712_vm12 = vcmp.eq.s32.totalorder %v9107_v19, 20 }
 0x269   : > { %v3783_v54 = vrot.slane %v3782_v51, 4  ;;  %v3824_v18 = vmax.f32 %v3822_v36, %v3823_v5  ;;  %v3617_v62 = vrot.slane %v3616_v13, 2  ;;  %vm8248_vm10 = vcmp.eq.s32.totalorder %v3665_v37, 1 }
 0x26a   : > { %vm8252_vm13 = vcmp.eq.s32.totalorder %v3707_v53, 1  ;;  %v3742_v17 = vmax.f32 %v3740_v23, %v3741_v44  ;;  %vm3755_vm0 = vcmp.eq.s32.totalorder %v9174_v59, 27  ;;  %v3791_v10 = vstv %s8223_s30 }
 0x26b   : > { %vm9176_vm6 = vnez %v9175_v38  ;;  %vm3385_vm7 = vcmp.eq.s32.totalorder %v8988_v31, 47  ;;  %v3659_v7 = vrot.slane %v3658_v24, 2  ;;  %v3701_v52 = vrot.slane %v3700_v12, 2 }
 0x26c   : > { %v3864_v16 = vsel %vm9176_vm6, %v8181_v9, -3.4028235e+38  ;;  %v3784_v56 = vmax.f32 %v3782_v51, %v3783_v54  ;;  %v3825_v28 = vrot.slane %v3824_v18, 4  ;;  %v9177_v30 = vstv %s7842_s15 }
 0x26d   : > { %vm8273_vm3 = vcmp.eq.s32.totalorder %v9177_v30, 1  ;;  %v3618_v11 = vmax.f32 %v3616_v13, %v3617_v62  ;;  %v3743_v41 = vrot.slane %v3742_v17, 2  ;;  %vm8277_vm5 = vcmp.eq.s32.totalorder %v3749_v21, 1  ;;  %v9188_v13 = vld [vmem:[#allocation22_spill] sm:$0xff]  ;;  %v9189_v21 = vld [vmem:[#allocation36_spill] sm:$0xff] }
 0x26e   : > { %vm9183_vm14 = vnez %v9182_v58  ;;  %v3660_v57 = vmax.f32 %v3658_v24, %v3659_v7  ;;  %v3702_v61 = vmax.f32 %v3700_v12, %v3701_v52  ;;  %v3785_v6 = vrot.slane %v3784_v56, 2  ;;  %v9190_v12 = vld [vmem:[#allocation27_spill] sm:$0xff] }
 0x26f   : > { %v3865_v27 = vsel %vm9183_vm14, %v8184_v45, -3.4028235e+38  ;;  %v3826_v2 = vmax.f32 %v3824_v18, %v3825_v28  ;;  %v3619_v47 = vrot.slane %v3618_v11, 1  ;;  %v3744_v37 = vmax.f32 %v3742_v17, %v3743_v41 }
 0x270   : > { %vm8284_vm1 = vcmp.eq.s32.totalorder %v3791_v10, 1  ;;  %v3866_v9 = vmax.f32 %v3864_v16, %v3865_v27  ;;  %v3661_v45 = vrot.slane %v3660_v57, 1  ;;  %v3703_v39 = vrot.slane %v3702_v61, 1 }
 0x271   : > { %v3786_v1 = vmax.f32 %v3784_v56, %v3785_v6  ;;  %v3827_v4 = vrot.slane %v3826_v2, 2  ;;  %v3620_v53 = vmax.f32 %v3618_v11, %v3619_v47  ;;  %v3745_v63 = vrot.slane %v3744_v37, 1 }
 0x272   : > { %vm3798_vm11 = vcmp.eq.s32.totalorder %v9186_v14, 34  ;;  %v3867_v40 = vrot.slane %v3866_v9, 4  ;;  %v3662_v3 = vmax.f32 %v3660_v57, %v3661_v45  ;;  %v3704_v33 = vmax.f32 %v3702_v61, %v3703_v39 }
 0x273   : > { %v3787_v49 = vrot.slane %v3786_v1, 1  ;;  %v3828_v60 = vmax.f32 %v3826_v2, %v3827_v4  ;;  %v3625_v43 = vsel %vm8242_vm4, 0.0, %v3620_v53  ;;  %v3746_v42 = vmax.f32 %v3744_v37, %v3745_v63 }
 0x274   : > { %v3833_v23 = vstv %s8293_s20  ;;  %v3868_v15 = vmax.f32 %v3866_v9, %v3867_v40  ;;  %v3647_v26 = vsel %vm3626_vm15, %v3625_v43, %v9187_v55  ;;  %v3667_v46 = vsel %vm8248_vm10, 0.0, %v3662_v3 }
 0x275   : > { %v3709_v51 = vsel %vm8252_vm13, 0.0, %v3704_v33  ;;  %v3788_v36 = vmax.f32 %v3786_v1, %v3787_v49  ;;  %v3690_v44 = vsel %vm3669_vm2, %v3667_v46, %v9188_v13  ;;  %v3751_v22 = vsel %vm8277_vm5, 0.0, %v3746_v42  ;;  %3906 = vst [vmem:[%s8307_s4] sm:$0xff] %v3647_v26 }
 0x276   : > { %v3733_v5 = vsel %vm3712_vm12, %v3709_v51, %v9189_v21  ;;  %v3829_v0 = vrot.slane %v3828_v60, 1  ;;  %v3379_v24 = vsel %vm8273_vm3, 0.0, %v8178_v35  ;;  %v3776_v20 = vsel %vm3755_vm0, %v3751_v22, %v9190_v12  ;;  %3907 = vst [vmem:[%s8307_s4 + $0x8] sm:$0xff] %v3690_v44  ;;  %v9191_v35 = vld [vmem:[#allocation24_spill] sm:$0xff] }
 0x277   : > { %v3793_v54 = vsel %vm8284_vm1, 0.0, %v3788_v36  ;;  %v3869_v19 = vrot.slane %v3868_v15, 2  ;;  %v3406_v18 = vsel %vm3385_vm7, %v3379_v24, %v8173_v25  ;;  %vm3841_vm8 = vcmp.eq.s32.totalorder %v8988_v31, 41  ;;  %3908 = vst [vmem:[%s8307_s4 + $0x10] sm:$0xff] %v3733_v5 }
 0x278   : > { %v3819_v62 = vsel %vm3798_vm11, %v3793_v54, %v9191_v35  ;;  %v3830_v29 = vmax.f32 %v3828_v60, %v3829_v0  ;;  %v184_v50 = vadd.s32 48, %v9101_v32  ;;  %vm3834_vm15 = vcmp.eq.s32.totalorder %v3833_v23, 1  ;;  %3909 = vst [vmem:[%s8307_s4 + $0x18] sm:$0xff] %v3776_v20 }
 0x279   : > { %v3870_v17 = vmax.f32 %v3868_v15, %v3869_v19  ;;  %3910 = vst [vmem:[%s8307_s4 + $0x20] sm:$0xff] %v3819_v62  ;;  %v3875_v16 = vstv %s3874_s26 }
 0x27a   : > { %v3835_v59 = vsel %vm3834_vm15, 0.0, %v3830_v29  ;;  %vm3884_vm9 = vcmp.eq.s32.totalorder %v184_v50, 48  ;;  %vm3876_vm4 = vcmp.eq.s32.totalorder %v3875_v16, 1 }
 0x27b   : > { %v3862_v10 = vsel %vm3841_vm8, %v3835_v59, %v3406_v18  ;;  %v3871_v38 = vrot.slane %v3870_v17, 1 }
 0x27c   : > { %3911 = vst [vmem:[%s8307_s4 + $0x28] sm:$0xff] %v3862_v10 }
 0x27d   : > { %v3872_v25 = vmax.f32 %v3870_v17, %v3871_v38 }
 0x27f   : > { %v3877_v7 = vsel %vm3876_vm4, 0.0, %v3872_v25 }
 0x280   : > { %v3905_v52 = vsel %vm3884_vm9, %v3877_v7, 0.0 }
 0x281   : > { %3912 = vst [vmem:[%s8307_s4 + $0x30] sm:$0x1] %v3905_v52 }
 0x282 PF: > { %s20_s13 = sadd.s32 1, %s4362_s13  }
 0x283   : > { %p17_p8 = scmp.ge.s32.totalorder %s20_s13, 5  }
 0x285   :  { %19 = sbr.rel (!%p17_p8) target bundleno = 7 (0x7), region = 54 }

</bundles_post_ra>
